<compile_context>
chip_gen: v7x
topology: tpu7x:2x2x1
jax: 0.10.0
libtpu: 0.0.40
codegen_flags: <defaults>
</compile_context>

<pallas_src>
import math

import jax
import jax.numpy as jnp
from jax.experimental import pallas as pl
from jax.experimental.pallas import tpu as pltpu

# ----------------------- hyper-parameters (scaled down) -----------------------
# Original: in_chans=22, chans_num=19, T=1024, patch=64 (16 patches), embed_dim=512,
# embed_num=4, depth=8, heads=8, probe1: 2048->16, probe2: 16*16->4.
B          = 2
IN_CHANS   = 6      # original 22
CHANS_NUM  = 5      # original 19
T          = 128    # original 1024
PATCH      = 32     # original 64
N_PATCHES  = T // PATCH            # 4   (original 16)
EMBED_DIM  = 64     # original 512
EMBED_NUM  = 2      # original 4
DEPTH      = 2      # original 8
NUM_HEADS  = 4      # original 8
HEAD_DIM   = EMBED_DIM // NUM_HEADS
MLP_RATIO  = 4
HIDDEN     = EMBED_DIM * MLP_RATIO
P1_OUT     = 8      # original 16
N_CLASSES  = 4
CHAN_DICT_SIZE = 58 # size of EEGPT channel-embedding table
LN_EPS     = 1e-6

S_REAL = CHANS_NUM + EMBED_NUM      # 7 tokens per patch group (channels + summary)
SP     = 8                          # padded to the 8-sublane granularity
NTOK   = N_PATCHES * SP             # 32 tokens handled per grid step (one batch element)


# ------------------------------- helpers --------------------------------------
def _renorm_rows(w, max_norm):
    """torch.renorm(w, p=2, dim=0, maxnorm): clip the L2 norm of each dim-0 slice."""
    flat = w.reshape(w.shape[0], -1)
    n = jnp.sqrt(jnp.sum(flat * flat, axis=1))
    scale = jnp.where(n > max_norm, max_norm / (n + 1e-7), 1.0)
    return w * scale.reshape((w.shape[0],) + (1,) * (w.ndim - 1))


def _const_spec(arr):
    """Whole-array VMEM input, identical for every grid step."""
    nd = arr.ndim
    return pl.BlockSpec(arr.shape, lambda b, _n=nd: (0,) * _n)


def _ln(x, g, b):
    """LayerNorm over the last dim (eps=1e-6) on in-kernel values."""
    mu = jnp.mean(x, axis=-1, keepdims=True)
    xc = x - mu
    var = jnp.mean(xc * xc, axis=-1, keepdims=True)
    return xc * jax.lax.rsqrt(var + LN_EPS) * g + b


def _build_patch_weight(patch_w):
    """Per-patch projection as a zero-padded (N_PATCHES, T, D) weight so patch embedding
    becomes ONE batched matmul inside the kernel (no lane slicing / per-patch loop)."""
    wpe = jnp.zeros((N_PATCHES, T, EMBED_DIM), patch_w.dtype)
    for n in range(N_PATCHES):
        wpe = wpe.at[n, n * PATCH:(n + 1) * PATCH, :].set(patch_w)
    return wpe


# -------------------- fully fused forward kernel (per batch) -------------------
def _fused_kernel(x_ref, convw_ref, convb_ref, wpe_ref, pos_ref, summary_ref,
                  ln1_g_ref, ln1_b_ref, qkv_w_ref, qkv_b_ref,
                  proj_w_ref, proj_b_ref, ln2_g_ref, ln2_b_ref,
                  fc1_w_ref, fc1_b_ref, fc2_w_ref, fc2_b_ref,
                  norm_g_ref, norm_b_ref, w1t_ref, b1_ref, w2t_ref, b2_ref,
                  xc_ref, logit_ref, h_scr):
    scale = 1.0 / math.sqrt(HEAD_DIM)

    # ---- chan_conv: Conv1dWithConstraint(kernel=1) == (Cout,Cin)@(Cin,T), T lane-dense ----
    x = x_ref[0]                                                     # (IN_CHANS, T)
    y = jnp.dot(convw_ref[...], x, preferred_element_type=jnp.float32) + convb_ref[...]
    xc_ref[0] = y.astype(xc_ref.dtype)                               # (CHANS_NUM, T)

    # ---- patch embed for ALL patches at once (batched over patch groups) ----
    # tok[n,c,:] = y[c, n*P:(n+1)*P] @ patch_w  (wpe is the zero-padded per-patch weight)
    yb = jnp.broadcast_to(y[None], (N_PATCHES, CHANS_NUM, T))
    tok = jax.lax.dot_general(yb, wpe_ref[...],
                              (((2,), (1,)), ((0,), (0,))),
                              preferred_element_type=jnp.float32)    # (N_PATCHES, CHANS_NUM, D)
    tok = tok + pos_ref[...][None]            # channel embedding (+ folded patch-embed bias)

    # ---- token stack built once into scratch: (N_PATCHES, SP, D), pad row 7 zeroed ----
    h_scr[:, 0:CHANS_NUM, :] = tok
    h_scr[:, CHANS_NUM:S_REAL, :] = jnp.broadcast_to(
        summary_ref[...][None], (N_PATCHES, EMBED_NUM, EMBED_DIM))
    h_scr[:, S_REAL:SP, :] = jnp.zeros((N_PATCHES, SP - S_REAL, EMBED_DIM), jnp.float32)
    h = h_scr[...].reshape(NTOK, EMBED_DIM)                          # (32, D) group-batched

    # key mask: padded rows never attended to (computed once per grid step)
    kidx = jax.lax.broadcasted_iota(jnp.int32, (1, SP, SP), 2)
    neg_mask = jnp.where(kidx >= S_REAL, jnp.float32(-1e30), jnp.float32(0.0))

    # TODO(synk): the reference EEGPT encoder may additionally apply rotary/time position
    # embeddings inside attention; here attention over (channel + summary) tokens is plain SDPA.
    for d in range(DEPTH):
        # --- multi-head attention (pre-LN), all patch groups batched ---
        hn = _ln(h, ln1_g_ref[d], ln1_b_ref[d])
        qkv = jnp.dot(hn, qkv_w_ref[d], preferred_element_type=jnp.float32) + qkv_b_ref[d]
        proj_w_d = proj_w_ref[d]                                     # (D, D)
        attn = jnp.zeros((NTOK, EMBED_DIM), jnp.float32)
        for hd in range(NUM_HEADS):
            q = qkv[:, hd * HEAD_DIM:(hd + 1) * HEAD_DIM].reshape(N_PATCHES, SP, HEAD_DIM)
            k = qkv[:, EMBED_DIM + hd * HEAD_DIM:
                       EMBED_DIM + (hd + 1) * HEAD_DIM].reshape(N_PATCHES, SP, HEAD_DIM)
            v = qkv[:, 2 * EMBED_DIM + hd * HEAD_DIM:
                       2 * EMBED_DIM + (hd + 1) * HEAD_DIM].reshape(N_PATCHES, SP, HEAD_DIM)
            # batched over patch groups: 'gqd,gkd->gqk'
            s = jax.lax.dot_general(q, k, (((2,), (2,)), ((0,), (0,))),
                                    preferred_element_type=jnp.float32) * scale
            s = s + neg_mask
            s = s - jnp.max(s, axis=-1, keepdims=True)
            p = jnp.exp(s)
            # approx reciprocal on EUP; few-ULP deviation from exact PyTorch softmax (inference).
            p = p * pl.reciprocal(jnp.sum(p, axis=-1, keepdims=True), approx=True)
            # 'gqk,gkd->gqd'
            o = jax.lax.dot_general(p, v, (((2,), (1,)), ((0,), (0,))),
                                    preferred_element_type=jnp.float32)
            # accumulate straight into the output projection -> no lane-axis concat of heads
            attn = attn + jnp.dot(o.reshape(NTOK, HEAD_DIM),
                                  proj_w_d[hd * HEAD_DIM:(hd + 1) * HEAD_DIM, :],
                                  preferred_element_type=jnp.float32)
        h = h + attn + proj_b_ref[d]

        # --- MLP (pre-LN); tanh GELU -> EUP slot (slight deviation vs nn.GELU exact erf) ---
        hn = _ln(h, ln2_g_ref[d], ln2_b_ref[d])
        m = jnp.dot(hn, fc1_w_ref[d], preferred_element_type=jnp.float32) + fc1_b_ref[d]
        m = jax.nn.gelu(m, approximate=True)
        m = jnp.dot(m, fc2_w_ref[d], preferred_element_type=jnp.float32) + fc2_b_ref[d]
        h = h + m

    # ---- summary tokens + final LayerNorm (encoder output norm) ----
    h3 = h.reshape(N_PATCHES, SP, EMBED_DIM)
    z = _ln(h3[:, CHANS_NUM:S_REAL, :], norm_g_ref[...], norm_b_ref[...])   # (G, EMBED_NUM, D)

    # ---- fused probes (Dropout p=0.5 is identity in eval) ----
    # probe1 on all patch groups: h1[g] = concat_e(z[g,e,:]) @ w1.T + b1
    h1 = jnp.broadcast_to(b1_ref[...], (N_PATCHES, P1_OUT))
    for e in range(EMBED_NUM):
        h1 = h1 + jnp.dot(z[:, e, :], w1t_ref[e * EMBED_DIM:(e + 1) * EMBED_DIM, :],
                          preferred_element_type=jnp.float32)
    # probe2: logits = flatten_over_patches(h1) @ w2.T + b2  (patch-major flatten, no reshape)
    logits = b2_ref[...]                                             # (1, N_CLASSES)
    for n in range(N_PATCHES):
        logits = logits + jnp.dot(h1[n:n + 1, :],
                                  w2t_ref[n * P1_OUT:(n + 1) * P1_OUT, :],
                                  preferred_element_type=jnp.float32)
    logit_ref[0] = logits.astype(logit_ref.dtype)                    # (1, N_CLASSES)


def eegpt_fused(x, consts):
    in_specs = [pl.BlockSpec((1, IN_CHANS, T), lambda b: (b, 0, 0))]
    in_specs += [_const_spec(c) for c in consts]
    return pl.pallas_call(
        _fused_kernel,
        out_shape=(jax.ShapeDtypeStruct((B, CHANS_NUM, T), jnp.float32),
                   jax.ShapeDtypeStruct((B, 1, N_CLASSES), jnp.float32)),
        grid=(B,),
        in_specs=in_specs,
        out_specs=(pl.BlockSpec((1, CHANS_NUM, T), lambda b: (b, 0, 0)),
                   pl.BlockSpec((1, 1, N_CLASSES), lambda b: (b, 0, 0))),
        scratch_shapes=[pltpu.VMEM((N_PATCHES, SP, EMBED_DIM), jnp.float32)],
        compiler_params=pltpu.CompilerParams(dimension_semantics=("parallel",)),
    )(x, *consts)


# ------------------------------- parameters -----------------------------------
def init_params(key):
    std = 0.02
    keys = iter(jax.random.split(key, 32))
    nrm = lambda shape: std * jax.random.normal(next(keys), shape, jnp.float32)
    params = {
        # Conv1dWithConstraint(IN_CHANS -> CHANS_NUM, kernel=1): weight (out, in, 1) stored (out, in)
        "chan_conv_w": nrm((CHANS_NUM, IN_CHANS)),
        "chan_conv_b": jnp.zeros((CHANS_NUM,), jnp.float32),
        # PatchEmbed: Conv2d(1, D, kernel=(1,PATCH), stride=(1,PATCH)) == per-patch Linear(PATCH->D)
        "patch_w": nrm((PATCH, EMBED_DIM)),
        "patch_b": jnp.zeros((EMBED_DIM,), jnp.float32),
        "chan_embed": nrm((CHAN_DICT_SIZE, EMBED_DIM)),
        "summary_token": nrm((EMBED_NUM, EMBED_DIM)),
        "norm_g": jnp.ones((EMBED_DIM,), jnp.float32),
        "norm_b": jnp.zeros((EMBED_DIM,), jnp.float32),
        # linear probes keep PyTorch (out, in) layout so the max_norm constraint acts on rows
        "probe1_w": nrm((P1_OUT, EMBED_NUM * EMBED_DIM)),
        "probe1_b": jnp.zeros((P1_OUT,), jnp.float32),
        "probe2_w": nrm((N_CLASSES, N_PATCHES * P1_OUT)),
        "probe2_b": jnp.zeros((N_CLASSES,), jnp.float32),
        # deterministic channel ids (stand-in for prepare_chan_ids(use_channels_names))
        "chan_ids": jnp.array([1, 4, 9, 16, 23][:CHANS_NUM], dtype=jnp.int32),
        # transformer block weights stacked over depth (read as ref[d] inside the fused kernel)
        "ln1_g": jnp.ones((DEPTH, 1, EMBED_DIM), jnp.float32),
        "ln1_b": jnp.zeros((DEPTH, 1, EMBED_DIM), jnp.float32),
        "qkv_w": nrm((DEPTH, EMBED_DIM, 3 * EMBED_DIM)),
        "qkv_b": jnp.zeros((DEPTH, 1, 3 * EMBED_DIM), jnp.float32),
        "proj_w": nrm((DEPTH, EMBED_DIM, EMBED_DIM)),
        "proj_b": jnp.zeros((DEPTH, 1, EMBED_DIM), jnp.float32),
        "ln2_g": jnp.ones((DEPTH, 1, EMBED_DIM), jnp.float32),
        "ln2_b": jnp.zeros((DEPTH, 1, EMBED_DIM), jnp.float32),
        "fc1_w": nrm((DEPTH, EMBED_DIM, HIDDEN)),
        "fc1_b": jnp.zeros((DEPTH, 1, HIDDEN), jnp.float32),
        "fc2_w": nrm((DEPTH, HIDDEN, EMBED_DIM)),
        "fc2_b": jnp.zeros((DEPTH, 1, EMBED_DIM), jnp.float32),
    }
    return params


# --------------------------------- forward ------------------------------------
def eegpt_causal_forward(params, x):
    """Replicates LitEEGPTCausal.forward in eval mode.  x: (B, IN_CHANS, T) in NCT."""
    # host-side weight prep (constraint renorms / layout) — tiny, runs once per call
    w_conv = _renorm_rows(params["chan_conv_w"], 1.0)
    wpe = _build_patch_weight(params["patch_w"])
    # patch-embed bias folded into the channel positional term
    pos_eff = params["chan_embed"][params["chan_ids"]] + params["patch_b"][None, :]
    w1 = _renorm_rows(params["probe1_w"], 1.0)
    w2 = _renorm_rows(params["probe2_w"], 0.25)

    consts = [
        w_conv, params["chan_conv_b"].reshape(CHANS_NUM, 1),
        wpe, pos_eff, params["summary_token"],
        params["ln1_g"], params["ln1_b"], params["qkv_w"], params["qkv_b"],
        params["proj_w"], params["proj_b"], params["ln2_g"], params["ln2_b"],
        params["fc1_w"], params["fc1_b"], params["fc2_w"], params["fc2_b"],
        params["norm_g"].reshape(1, EMBED_DIM), params["norm_b"].reshape(1, EMBED_DIM),
        w1.T, params["probe1_b"].reshape(1, P1_OUT),
        w2.T, params["probe2_b"].reshape(1, N_CLASSES),
    ]
    x_conv, logits3 = eegpt_fused(x, consts)
    return x_conv, logits3.reshape(B, N_CLASSES)


# ----------------------------------- main --------------------------------------
if __name__ == "__main__":
    key = jax.random.PRNGKey(0)
    pkey, xkey = jax.random.split(key)
    params = init_params(pkey)
    x = jax.random.normal(xkey, (B, IN_CHANS, T), jnp.float32)

    fwd = jax.jit(eegpt_causal_forward)
    x_conv, logits = fwd(params, x)
    jax.block_until_ready((x_conv, logits))

    assert x_conv.shape == (B, CHANS_NUM, T), x_conv.shape
    assert logits.shape == (B, N_CLASSES), logits.shape
    assert bool(jnp.all(jnp.isfinite(x_conv))) and bool(jnp.all(jnp.isfinite(logits)))
    print("KERNEL_OK")
</pallas_src>

<mosaic_0001>
module attributes {stable_mosaic.version = 11 : i64} {
  func.func @_fused_kernel(%arg0: i32, %arg1: memref<1x6x128xf32, #tpu.memory_space<vmem>>, %arg2: memref<5x6xf32, #tpu.memory_space<vmem>>, %arg3: memref<5x1xf32, #tpu.memory_space<vmem>>, %arg4: memref<4x128x64xf32, #tpu.memory_space<vmem>>, %arg5: memref<5x64xf32, #tpu.memory_space<vmem>>, %arg6: memref<2x64xf32, #tpu.memory_space<vmem>>, %arg7: memref<2x1x64xf32, #tpu.memory_space<vmem>>, %arg8: memref<2x1x64xf32, #tpu.memory_space<vmem>>, %arg9: memref<2x64x192xf32, #tpu.memory_space<vmem>>, %arg10: memref<2x1x192xf32, #tpu.memory_space<vmem>>, %arg11: memref<2x64x64xf32, #tpu.memory_space<vmem>>, %arg12: memref<2x1x64xf32, #tpu.memory_space<vmem>>, %arg13: memref<2x1x64xf32, #tpu.memory_space<vmem>>, %arg14: memref<2x1x64xf32, #tpu.memory_space<vmem>>, %arg15: memref<2x64x256xf32, #tpu.memory_space<vmem>>, %arg16: memref<2x1x256xf32, #tpu.memory_space<vmem>>, %arg17: memref<2x256x64xf32, #tpu.memory_space<vmem>>, %arg18: memref<2x1x64xf32, #tpu.memory_space<vmem>>, %arg19: memref<1x64xf32, #tpu.memory_space<vmem>>, %arg20: memref<1x64xf32, #tpu.memory_space<vmem>>, %arg21: memref<128x8xf32, #tpu.memory_space<vmem>>, %arg22: memref<1x8xf32, #tpu.memory_space<vmem>>, %arg23: memref<32x4xf32, #tpu.memory_space<vmem>>, %arg24: memref<1x4xf32, #tpu.memory_space<vmem>>, %arg25: memref<1x5x128xf32, #tpu.memory_space<vmem>>, %arg26: memref<1x1x4xf32, #tpu.memory_space<vmem>>, %arg27: memref<4x8x64xf32, #tpu.memory_space<vmem>>) attributes {dimension_semantics = [#tpu.dimension_semantics<parallel>], iteration_bounds = array<i64: 2>, scalar_prefetch = 0 : i64, scratch_operands = 1 : i64, tpu.core_type = #tpu.core_type<tc>, window_params = [{transform_indices = @transform_0, window_bounds = array<i64: 1, 6, 128>}, {pipeline_mode = #tpu.pipeline_mode<synchronous>, transform_indices = @transform_1, window_bounds = array<i64: 5, 6>}, {pipeline_mode = #tpu.pipeline_mode<synchronous>, transform_indices = @transform_2, window_bounds = array<i64: 5, 1>}, {pipeline_mode = #tpu.pipeline_mode<synchronous>, transform_indices = @transform_3, window_bounds = array<i64: 4, 128, 64>}, {pipeline_mode = #tpu.pipeline_mode<synchronous>, transform_indices = @transform_4, window_bounds = array<i64: 5, 64>}, {pipeline_mode = #tpu.pipeline_mode<synchronous>, transform_indices = @transform_5, window_bounds = array<i64: 2, 64>}, {pipeline_mode = #tpu.pipeline_mode<synchronous>, transform_indices = @transform_6, window_bounds = array<i64: 2, 1, 64>}, {pipeline_mode = #tpu.pipeline_mode<synchronous>, transform_indices = @transform_7, window_bounds = array<i64: 2, 1, 64>}, {pipeline_mode = #tpu.pipeline_mode<synchronous>, transform_indices = @transform_8, window_bounds = array<i64: 2, 64, 192>}, {pipeline_mode = #tpu.pipeline_mode<synchronous>, transform_indices = @transform_9, window_bounds = array<i64: 2, 1, 192>}, {pipeline_mode = #tpu.pipeline_mode<synchronous>, transform_indices = @transform_10, window_bounds = array<i64: 2, 64, 64>}, {pipeline_mode = #tpu.pipeline_mode<synchronous>, transform_indices = @transform_11, window_bounds = array<i64: 2, 1, 64>}, {pipeline_mode = #tpu.pipeline_mode<synchronous>, transform_indices = @transform_12, window_bounds = array<i64: 2, 1, 64>}, {pipeline_mode = #tpu.pipeline_mode<synchronous>, transform_indices = @transform_13, window_bounds = array<i64: 2, 1, 64>}, {pipeline_mode = #tpu.pipeline_mode<synchronous>, transform_indices = @transform_14, window_bounds = array<i64: 2, 64, 256>}, {pipeline_mode = #tpu.pipeline_mode<synchronous>, transform_indices = @transform_15, window_bounds = array<i64: 2, 1, 256>}, {pipeline_mode = #tpu.pipeline_mode<synchronous>, transform_indices = @transform_16, window_bounds = array<i64: 2, 256, 64>}, {pipeline_mode = #tpu.pipeline_mode<synchronous>, transform_indices = @transform_17, window_bounds = array<i64: 2, 1, 64>}, {pipeline_mode = #tpu.pipeline_mode<synchronous>, transform_indices = @transform_18, window_bounds = array<i64: 1, 64>}, {pipeline_mode = #tpu.pipeline_mode<synchronous>, transform_indices = @transform_19, window_bounds = array<i64: 1, 64>}, {pipeline_mode = #tpu.pipeline_mode<synchronous>, transform_indices = @transform_20, window_bounds = array<i64: 128, 8>}, {pipeline_mode = #tpu.pipeline_mode<synchronous>, transform_indices = @transform_21, window_bounds = array<i64: 1, 8>}, {pipeline_mode = #tpu.pipeline_mode<synchronous>, transform_indices = @transform_22, window_bounds = array<i64: 32, 4>}, {pipeline_mode = #tpu.pipeline_mode<synchronous>, transform_indices = @transform_23, window_bounds = array<i64: 1, 4>}, {transform_indices = @transform_24, window_bounds = array<i64: 1, 5, 128>}, {transform_indices = @transform_25, window_bounds = array<i64: 1, 1, 4>}]} {
    %c0 = arith.constant 0 : index
    %c0_0 = arith.constant 0 : index
    %c0_1 = arith.constant 0 : index
    %0 = vector.load %arg1[%c0, %c0_0, %c0_1] : memref<1x6x128xf32, #tpu.memory_space<vmem>>, vector<1x6x128xf32>
    %1 = vector.shape_cast %0 : vector<1x6x128xf32> to vector<6x128xf32>
    %c0_2 = arith.constant 0 : index
    %c0_3 = arith.constant 0 : index
    %2 = vector.load %arg2[%c0_2, %c0_3] : memref<5x6xf32, #tpu.memory_space<vmem>>, vector<5x6xf32>
    %cst = arith.constant dense<0.000000e+00> : vector<5x128xf32>
    %3 = tpu.matmul %2, %1, %cst {dimension_numbers = #tpu.dot_dimension_numbers<[1], [0], [0], [1], [0, 0, 1, 1], [], []>} : vector<5x6xf32>, vector<6x128xf32>, vector<5x128xf32> -> vector<5x128xf32>
    %c0_4 = arith.constant 0 : index
    %c0_5 = arith.constant 0 : index
    %4 = vector.load %arg3[%c0_4, %c0_5] : memref<5x1xf32, #tpu.memory_space<vmem>>, vector<5x1xf32>
    %5 = vector.broadcast %4 : vector<5x1xf32> to vector<5x128xf32>
    %6 = arith.addf %3, %5 : vector<5x128xf32>
    %c0_6 = arith.constant 0 : index
    %c0_7 = arith.constant 0 : index
    %c0_8 = arith.constant 0 : index
    %7 = vector.load %arg25[%c0_6, %c0_7, %c0_8] : memref<1x5x128xf32, #tpu.memory_space<vmem>>, vector<1x5x128xf32>
    %8 = vector.shape_cast %7 : vector<1x5x128xf32> to vector<5x128xf32>
    %9 = vector.shape_cast %6 : vector<5x128xf32> to vector<1x5x128xf32>
    tpu.vector_store %arg25[%c0_6, %c0_7, %c0_8], %9 {strides = array<i32>} : memref<1x5x128xf32, #tpu.memory_space<vmem>>, vector<1x5x128xf32>,
    %10 = vector.shape_cast %6 : vector<5x128xf32> to vector<1x5x128xf32>
    %11 = vector.shape_cast %10 : vector<1x5x128xf32> to vector<1x5x128xf32>
    %12 = vector.broadcast %11 : vector<1x5x128xf32> to vector<4x5x128xf32>
    %c0_9 = arith.constant 0 : index
    %c0_10 = arith.constant 0 : index
    %c0_11 = arith.constant 0 : index
    %13 = vector.load %arg4[%c0_9, %c0_10, %c0_11] : memref<4x128x64xf32, #tpu.memory_space<vmem>>, vector<4x128x64xf32>
    %cst_12 = arith.constant dense<0.000000e+00> : vector<4x5x64xf32>
    %14 = tpu.matmul %12, %13, %cst_12 {dimension_numbers = #tpu.dot_dimension_numbers<[2], [1], [1], [2], [0, 0, 0, 1, 1, 2], [0], [0]>} : vector<4x5x128xf32>, vector<4x128x64xf32>, vector<4x5x64xf32> -> vector<4x5x64xf32>
    %c0_13 = arith.constant 0 : index
    %c0_14 = arith.constant 0 : index
    %15 = vector.load %arg5[%c0_13, %c0_14] : memref<5x64xf32, #tpu.memory_space<vmem>>, vector<5x64xf32>
    %16 = vector.shape_cast %15 : vector<5x64xf32> to vector<1x5x64xf32>
    %17 = vector.broadcast %16 : vector<1x5x64xf32> to vector<4x5x64xf32>
    %18 = arith.addf %14, %17 : vector<4x5x64xf32>
    %c0_15 = arith.constant 0 : index
    %c0_16 = arith.constant 0 : index
    %c0_17 = arith.constant 0 : index
    %19 = vector.load %arg27[%c0_15, %c0_16, %c0_17] : memref<4x8x64xf32, #tpu.memory_space<vmem>>, vector<4x5x64xf32>
    tpu.vector_store %arg27[%c0_15, %c0_16, %c0_17], %18 {strides = array<i32>} : memref<4x8x64xf32, #tpu.memory_space<vmem>>, vector<4x5x64xf32>,
    %c0_18 = arith.constant 0 : index
    %c0_19 = arith.constant 0 : index
    %20 = vector.load %arg6[%c0_18, %c0_19] : memref<2x64xf32, #tpu.memory_space<vmem>>, vector<2x64xf32>
    %21 = vector.shape_cast %20 : vector<2x64xf32> to vector<1x2x64xf32>
    %22 = vector.shape_cast %21 : vector<1x2x64xf32> to vector<1x2x64xf32>
    %23 = vector.broadcast %22 : vector<1x2x64xf32> to vector<4x2x64xf32>
    %c0_20 = arith.constant 0 : index
    %c5 = arith.constant 5 : index
    %c0_21 = arith.constant 0 : index
    %24 = vector.load %arg27[%c0_20, %c5, %c0_21] : memref<4x8x64xf32, #tpu.memory_space<vmem>>, vector<4x2x64xf32>
    tpu.vector_store %arg27[%c0_20, %c5, %c0_21], %23 {strides = array<i32>} : memref<4x8x64xf32, #tpu.memory_space<vmem>>, vector<4x2x64xf32>,
    %cst_22 = arith.constant 0.000000e+00 : f32
    %25 = vector.broadcast %cst_22 : f32 to vector<4x1x64xf32>
    %c0_23 = arith.constant 0 : index
    %c7 = arith.constant 7 : index
    %c0_24 = arith.constant 0 : index
    %26 = vector.load %arg27[%c0_23, %c7, %c0_24] : memref<4x8x64xf32, #tpu.memory_space<vmem>>, vector<4x1x64xf32>
    tpu.vector_store %arg27[%c0_23, %c7, %c0_24], %25 {strides = array<i32>} : memref<4x8x64xf32, #tpu.memory_space<vmem>>, vector<4x1x64xf32>,
    %c0_25 = arith.constant 0 : index
    %c0_26 = arith.constant 0 : index
    %c0_27 = arith.constant 0 : index
    %27 = vector.load %arg27[%c0_25, %c0_26, %c0_27] : memref<4x8x64xf32, #tpu.memory_space<vmem>>, vector<4x8x64xf32>
    %28 = vector.shape_cast %27 : vector<4x8x64xf32> to vector<32x64xf32>
    %29 = tpu.iota {dimensions = array<i32: 2>} : vector<1x8x8xi32>
    %c7_i32 = arith.constant 7 : i32
    %30 = vector.broadcast %c7_i32 : i32 to vector<1x8x8xi32>
    %31 = arith.cmpi sge, %29, %30 : vector<1x8x8xi32>
    %cst_28 = arith.constant -1.000000e+30 : f32
    %cst_29 = arith.constant 0.000000e+00 : f32
    %32 = vector.broadcast %cst_28 : f32 to vector<1x8x8xf32>
    %33 = vector.broadcast %cst_29 : f32 to vector<1x8x8xf32>
    %34 = arith.select %31, %32, %33 : vector<1x8x8xi1>, vector<1x8x8xf32>
    %c0_30 = arith.constant 0 : index
    %c0_31 = arith.constant 0 : index
    %c0_32 = arith.constant 0 : index
    %35 = vector.load %arg7[%c0_30, %c0_31, %c0_32] : memref<2x1x64xf32, #tpu.memory_space<vmem>>, vector<1x1x64xf32>
    %36 = vector.shape_cast %35 : vector<1x1x64xf32> to vector<1x64xf32>
    %c0_33 = arith.constant 0 : index
    %c0_34 = arith.constant 0 : index
    %c0_35 = arith.constant 0 : index
    %37 = vector.load %arg8[%c0_33, %c0_34, %c0_35] : memref<2x1x64xf32, #tpu.memory_space<vmem>>, vector<1x1x64xf32>
    %38 = vector.shape_cast %37 : vector<1x1x64xf32> to vector<1x64xf32>
    %cst_36 = arith.constant dense<0.000000e+00> : vector<32xf32>
    %39 = vector.multi_reduction <add>, %28, %cst_36 [1] : vector<32x64xf32> to vector<32xf32>
    %40 = vector.shape_cast %39 : vector<32xf32> to vector<32x1xf32>
    %cst_37 = arith.constant 6.400000e+01 : f32
    %41 = vector.broadcast %cst_37 : f32 to vector<32x1xf32>
    %42 = arith.divf %40, %41 : vector<32x1xf32>
    %43 = vector.broadcast %42 : vector<32x1xf32> to vector<32x64xf32>
    %44 = arith.subf %28, %43 : vector<32x64xf32>
    %45 = arith.mulf %44, %44 : vector<32x64xf32>
    %cst_38 = arith.constant dense<0.000000e+00> : vector<32xf32>
    %46 = vector.multi_reduction <add>, %45, %cst_38 [1] : vector<32x64xf32> to vector<32xf32>
    %47 = vector.shape_cast %46 : vector<32xf32> to vector<32x1xf32>
    %cst_39 = arith.constant 6.400000e+01 : f32
    %48 = vector.broadcast %cst_39 : f32 to vector<32x1xf32>
    %49 = arith.divf %47, %48 : vector<32x1xf32>
    %cst_40 = arith.constant 9.99999997E-7 : f32
    %50 = vector.broadcast %cst_40 : f32 to vector<32x1xf32>
    %51 = arith.addf %49, %50 : vector<32x1xf32>
    %52 = math.rsqrt %51 : vector<32x1xf32>
    %53 = vector.broadcast %52 : vector<32x1xf32> to vector<32x64xf32>
    %54 = arith.mulf %44, %53 : vector<32x64xf32>
    %55 = vector.broadcast %36 : vector<1x64xf32> to vector<32x64xf32>
    %56 = arith.mulf %54, %55 : vector<32x64xf32>
    %57 = vector.broadcast %38 : vector<1x64xf32> to vector<32x64xf32>
    %58 = arith.addf %56, %57 : vector<32x64xf32>
    %c0_41 = arith.constant 0 : index
    %c0_42 = arith.constant 0 : index
    %c0_43 = arith.constant 0 : index
    %59 = vector.load %arg9[%c0_41, %c0_42, %c0_43] : memref<2x64x192xf32, #tpu.memory_space<vmem>>, vector<1x64x192xf32>
    %60 = vector.shape_cast %59 : vector<1x64x192xf32> to vector<64x192xf32>
    %cst_44 = arith.constant dense<0.000000e+00> : vector<32x192xf32>
    %61 = tpu.matmul %58, %60, %cst_44 {dimension_numbers = #tpu.dot_dimension_numbers<[1], [0], [0], [1], [0, 0, 1, 1], [], []>} : vector<32x64xf32>, vector<64x192xf32>, vector<32x192xf32> -> vector<32x192xf32>
    %c0_45 = arith.constant 0 : index
    %c0_46 = arith.constant 0 : index
    %c0_47 = arith.constant 0 : index
    %62 = vector.load %arg10[%c0_45, %c0_46, %c0_47] : memref<2x1x192xf32, #tpu.memory_space<vmem>>, vector<1x1x192xf32>
    %63 = vector.shape_cast %62 : vector<1x1x192xf32> to vector<1x192xf32>
    %64 = vector.broadcast %63 : vector<1x192xf32> to vector<32x192xf32>
    %65 = arith.addf %61, %64 : vector<32x192xf32>
    %c0_48 = arith.constant 0 : index
    %c0_49 = arith.constant 0 : index
    %c0_50 = arith.constant 0 : index
    %66 = vector.load %arg11[%c0_48, %c0_49, %c0_50] : memref<2x64x64xf32, #tpu.memory_space<vmem>>, vector<1x64x64xf32>
    %67 = vector.shape_cast %66 : vector<1x64x64xf32> to vector<64x64xf32>
    %cst_51 = arith.constant 0.000000e+00 : f32
    %68 = vector.broadcast %cst_51 : f32 to vector<32x64xf32>
    %69 = vector.extract_strided_slice %65 {offsets = [0, 0], sizes = [32, 16], strides = [1, 1]} : vector<32x192xf32> to vector<32x16xf32>
    %70 = vector.shape_cast %69 : vector<32x16xf32> to vector<4x8x16xf32>
    %71 = vector.extract_strided_slice %65 {offsets = [0, 64], sizes = [32, 16], strides = [1, 1]} : vector<32x192xf32> to vector<32x16xf32>
    %72 = vector.shape_cast %71 : vector<32x16xf32> to vector<4x8x16xf32>
    %73 = vector.extract_strided_slice %65 {offsets = [0, 128], sizes = [32, 16], strides = [1, 1]} : vector<32x192xf32> to vector<32x16xf32>
    %74 = vector.shape_cast %73 : vector<32x16xf32> to vector<4x8x16xf32>
    %cst_52 = arith.constant dense<0.000000e+00> : vector<4x8x8xf32>
    %75 = tpu.matmul %70, %72, %cst_52 {dimension_numbers = #tpu.dot_dimension_numbers<[2], [2], [1], [1], [0, 0, 0, 1, 1, 1], [0], [0]>} : vector<4x8x16xf32>, vector<4x8x16xf32>, vector<4x8x8xf32> -> vector<4x8x8xf32>
    %cst_53 = arith.constant 2.500000e-01 : f32
    %76 = vector.broadcast %cst_53 : f32 to vector<4x8x8xf32>
    %77 = arith.mulf %75, %76 : vector<4x8x8xf32>
    %78 = vector.broadcast %34 : vector<1x8x8xf32> to vector<4x8x8xf32>
    %79 = arith.addf %77, %78 : vector<4x8x8xf32>
    %cst_54 = arith.constant dense<0xFF800000> : vector<4x8xf32>
    %80 = vector.multi_reduction <maximumf>, %79, %cst_54 [2] : vector<4x8x8xf32> to vector<4x8xf32>
    %81 = vector.shape_cast %80 : vector<4x8xf32> to vector<4x8x1xf32>
    %82 = vector.broadcast %81 : vector<4x8x1xf32> to vector<4x8x8xf32>
    %83 = arith.subf %79, %82 : vector<4x8x8xf32>
    %84 = math.exp %83 : vector<4x8x8xf32>
    %cst_55 = arith.constant dense<0.000000e+00> : vector<4x8xf32>
    %85 = vector.multi_reduction <add>, %84, %cst_55 [2] : vector<4x8x8xf32> to vector<4x8xf32>
    %86 = vector.shape_cast %85 : vector<4x8xf32> to vector<4x8x1xf32>
    %87 = tpu.reciprocal %86 {approx = true} : vector<4x8x1xf32> -> vector<4x8x1xf32>
    %88 = vector.broadcast %87 : vector<4x8x1xf32> to vector<4x8x8xf32>
    %89 = arith.mulf %84, %88 : vector<4x8x8xf32>
    %cst_56 = arith.constant dense<0.000000e+00> : vector<4x8x16xf32>
    %90 = tpu.matmul %89, %74, %cst_56 {dimension_numbers = #tpu.dot_dimension_numbers<[2], [1], [1], [2], [0, 0, 0, 1, 1, 2], [0], [0]>} : vector<4x8x8xf32>, vector<4x8x16xf32>, vector<4x8x16xf32> -> vector<4x8x16xf32>
    %91 = vector.shape_cast %90 : vector<4x8x16xf32> to vector<32x16xf32>
    %92 = vector.extract_strided_slice %67 {offsets = [0, 0], sizes = [16, 64], strides = [1, 1]} : vector<64x64xf32> to vector<16x64xf32>
    %cst_57 = arith.constant dense<0.000000e+00> : vector<32x64xf32>
    %93 = tpu.matmul %91, %92, %cst_57 {dimension_numbers = #tpu.dot_dimension_numbers<[1], [0], [0], [1], [0, 0, 1, 1], [], []>} : vector<32x16xf32>, vector<16x64xf32>, vector<32x64xf32> -> vector<32x64xf32>
    %94 = arith.addf %68, %93 : vector<32x64xf32>
    %95 = vector.extract_strided_slice %65 {offsets = [0, 16], sizes = [32, 16], strides = [1, 1]} : vector<32x192xf32> to vector<32x16xf32>
    %96 = vector.shape_cast %95 : vector<32x16xf32> to vector<4x8x16xf32>
    %97 = vector.extract_strided_slice %65 {offsets = [0, 80], sizes = [32, 16], strides = [1, 1]} : vector<32x192xf32> to vector<32x16xf32>
    %98 = vector.shape_cast %97 : vector<32x16xf32> to vector<4x8x16xf32>
    %99 = vector.extract_strided_slice %65 {offsets = [0, 144], sizes = [32, 16], strides = [1, 1]} : vector<32x192xf32> to vector<32x16xf32>
    %100 = vector.shape_cast %99 : vector<32x16xf32> to vector<4x8x16xf32>
    %cst_58 = arith.constant dense<0.000000e+00> : vector<4x8x8xf32>
    %101 = tpu.matmul %96, %98, %cst_58 {dimension_numbers = #tpu.dot_dimension_numbers<[2], [2], [1], [1], [0, 0, 0, 1, 1, 1], [0], [0]>} : vector<4x8x16xf32>, vector<4x8x16xf32>, vector<4x8x8xf32> -> vector<4x8x8xf32>
    %cst_59 = arith.constant 2.500000e-01 : f32
    %102 = vector.broadcast %cst_59 : f32 to vector<4x8x8xf32>
    %103 = arith.mulf %101, %102 : vector<4x8x8xf32>
    %104 = vector.broadcast %34 : vector<1x8x8xf32> to vector<4x8x8xf32>
    %105 = arith.addf %103, %104 : vector<4x8x8xf32>
    %cst_60 = arith.constant dense<0xFF800000> : vector<4x8xf32>
    %106 = vector.multi_reduction <maximumf>, %105, %cst_60 [2] : vector<4x8x8xf32> to vector<4x8xf32>
    %107 = vector.shape_cast %106 : vector<4x8xf32> to vector<4x8x1xf32>
    %108 = vector.broadcast %107 : vector<4x8x1xf32> to vector<4x8x8xf32>
    %109 = arith.subf %105, %108 : vector<4x8x8xf32>
    %110 = math.exp %109 : vector<4x8x8xf32>
    %cst_61 = arith.constant dense<0.000000e+00> : vector<4x8xf32>
    %111 = vector.multi_reduction <add>, %110, %cst_61 [2] : vector<4x8x8xf32> to vector<4x8xf32>
    %112 = vector.shape_cast %111 : vector<4x8xf32> to vector<4x8x1xf32>
    %113 = tpu.reciprocal %112 {approx = true} : vector<4x8x1xf32> -> vector<4x8x1xf32>
    %114 = vector.broadcast %113 : vector<4x8x1xf32> to vector<4x8x8xf32>
    %115 = arith.mulf %110, %114 : vector<4x8x8xf32>
    %cst_62 = arith.constant dense<0.000000e+00> : vector<4x8x16xf32>
    %116 = tpu.matmul %115, %100, %cst_62 {dimension_numbers = #tpu.dot_dimension_numbers<[2], [1], [1], [2], [0, 0, 0, 1, 1, 2], [0], [0]>} : vector<4x8x8xf32>, vector<4x8x16xf32>, vector<4x8x16xf32> -> vector<4x8x16xf32>
    %117 = vector.shape_cast %116 : vector<4x8x16xf32> to vector<32x16xf32>
    %118 = vector.extract_strided_slice %67 {offsets = [16, 0], sizes = [16, 64], strides = [1, 1]} : vector<64x64xf32> to vector<16x64xf32>
    %cst_63 = arith.constant dense<0.000000e+00> : vector<32x64xf32>
    %119 = tpu.matmul %117, %118, %cst_63 {dimension_numbers = #tpu.dot_dimension_numbers<[1], [0], [0], [1], [0, 0, 1, 1], [], []>} : vector<32x16xf32>, vector<16x64xf32>, vector<32x64xf32> -> vector<32x64xf32>
    %120 = arith.addf %94, %119 : vector<32x64xf32>
    %121 = vector.extract_strided_slice %65 {offsets = [0, 32], sizes = [32, 16], strides = [1, 1]} : vector<32x192xf32> to vector<32x16xf32>
    %122 = vector.shape_cast %121 : vector<32x16xf32> to vector<4x8x16xf32>
    %123 = vector.extract_strided_slice %65 {offsets = [0, 96], sizes = [32, 16], strides = [1, 1]} : vector<32x192xf32> to vector<32x16xf32>
    %124 = vector.shape_cast %123 : vector<32x16xf32> to vector<4x8x16xf32>
    %125 = vector.extract_strided_slice %65 {offsets = [0, 160], sizes = [32, 16], strides = [1, 1]} : vector<32x192xf32> to vector<32x16xf32>
    %126 = vector.shape_cast %125 : vector<32x16xf32> to vector<4x8x16xf32>
    %cst_64 = arith.constant dense<0.000000e+00> : vector<4x8x8xf32>
    %127 = tpu.matmul %122, %124, %cst_64 {dimension_numbers = #tpu.dot_dimension_numbers<[2], [2], [1], [1], [0, 0, 0, 1, 1, 1], [0], [0]>} : vector<4x8x16xf32>, vector<4x8x16xf32>, vector<4x8x8xf32> -> vector<4x8x8xf32>
    %cst_65 = arith.constant 2.500000e-01 : f32
    %128 = vector.broadcast %cst_65 : f32 to vector<4x8x8xf32>
    %129 = arith.mulf %127, %128 : vector<4x8x8xf32>
    %130 = vector.broadcast %34 : vector<1x8x8xf32> to vector<4x8x8xf32>
    %131 = arith.addf %129, %130 : vector<4x8x8xf32>
    %cst_66 = arith.constant dense<0xFF800000> : vector<4x8xf32>
    %132 = vector.multi_reduction <maximumf>, %131, %cst_66 [2] : vector<4x8x8xf32> to vector<4x8xf32>
    %133 = vector.shape_cast %132 : vector<4x8xf32> to vector<4x8x1xf32>
    %134 = vector.broadcast %133 : vector<4x8x1xf32> to vector<4x8x8xf32>
    %135 = arith.subf %131, %134 : vector<4x8x8xf32>
    %136 = math.exp %135 : vector<4x8x8xf32>
    %cst_67 = arith.constant dense<0.000000e+00> : vector<4x8xf32>
    %137 = vector.multi_reduction <add>, %136, %cst_67 [2] : vector<4x8x8xf32> to vector<4x8xf32>
    %138 = vector.shape_cast %137 : vector<4x8xf32> to vector<4x8x1xf32>
    %139 = tpu.reciprocal %138 {approx = true} : vector<4x8x1xf32> -> vector<4x8x1xf32>
    %140 = vector.broadcast %139 : vector<4x8x1xf32> to vector<4x8x8xf32>
    %141 = arith.mulf %136, %140 : vector<4x8x8xf32>
    %cst_68 = arith.constant dense<0.000000e+00> : vector<4x8x16xf32>
    %142 = tpu.matmul %141, %126, %cst_68 {dimension_numbers = #tpu.dot_dimension_numbers<[2], [1], [1], [2], [0, 0, 0, 1, 1, 2], [0], [0]>} : vector<4x8x8xf32>, vector<4x8x16xf32>, vector<4x8x16xf32> -> vector<4x8x16xf32>
    %143 = vector.shape_cast %142 : vector<4x8x16xf32> to vector<32x16xf32>
    %144 = vector.extract_strided_slice %67 {offsets = [32, 0], sizes = [16, 64], strides = [1, 1]} : vector<64x64xf32> to vector<16x64xf32>
    %cst_69 = arith.constant dense<0.000000e+00> : vector<32x64xf32>
    %145 = tpu.matmul %143, %144, %cst_69 {dimension_numbers = #tpu.dot_dimension_numbers<[1], [0], [0], [1], [0, 0, 1, 1], [], []>} : vector<32x16xf32>, vector<16x64xf32>, vector<32x64xf32> -> vector<32x64xf32>
    %146 = arith.addf %120, %145 : vector<32x64xf32>
    %147 = vector.extract_strided_slice %65 {offsets = [0, 48], sizes = [32, 16], strides = [1, 1]} : vector<32x192xf32> to vector<32x16xf32>
    %148 = vector.shape_cast %147 : vector<32x16xf32> to vector<4x8x16xf32>
    %149 = vector.extract_strided_slice %65 {offsets = [0, 112], sizes = [32, 16], strides = [1, 1]} : vector<32x192xf32> to vector<32x16xf32>
    %150 = vector.shape_cast %149 : vector<32x16xf32> to vector<4x8x16xf32>
    %151 = vector.extract_strided_slice %65 {offsets = [0, 176], sizes = [32, 16], strides = [1, 1]} : vector<32x192xf32> to vector<32x16xf32>
    %152 = vector.shape_cast %151 : vector<32x16xf32> to vector<4x8x16xf32>
    %cst_70 = arith.constant dense<0.000000e+00> : vector<4x8x8xf32>
    %153 = tpu.matmul %148, %150, %cst_70 {dimension_numbers = #tpu.dot_dimension_numbers<[2], [2], [1], [1], [0, 0, 0, 1, 1, 1], [0], [0]>} : vector<4x8x16xf32>, vector<4x8x16xf32>, vector<4x8x8xf32> -> vector<4x8x8xf32>
    %cst_71 = arith.constant 2.500000e-01 : f32
    %154 = vector.broadcast %cst_71 : f32 to vector<4x8x8xf32>
    %155 = arith.mulf %153, %154 : vector<4x8x8xf32>
    %156 = vector.broadcast %34 : vector<1x8x8xf32> to vector<4x8x8xf32>
    %157 = arith.addf %155, %156 : vector<4x8x8xf32>
    %cst_72 = arith.constant dense<0xFF800000> : vector<4x8xf32>
    %158 = vector.multi_reduction <maximumf>, %157, %cst_72 [2] : vector<4x8x8xf32> to vector<4x8xf32>
    %159 = vector.shape_cast %158 : vector<4x8xf32> to vector<4x8x1xf32>
    %160 = vector.broadcast %159 : vector<4x8x1xf32> to vector<4x8x8xf32>
    %161 = arith.subf %157, %160 : vector<4x8x8xf32>
    %162 = math.exp %161 : vector<4x8x8xf32>
    %cst_73 = arith.constant dense<0.000000e+00> : vector<4x8xf32>
    %163 = vector.multi_reduction <add>, %162, %cst_73 [2] : vector<4x8x8xf32> to vector<4x8xf32>
    %164 = vector.shape_cast %163 : vector<4x8xf32> to vector<4x8x1xf32>
    %165 = tpu.reciprocal %164 {approx = true} : vector<4x8x1xf32> -> vector<4x8x1xf32>
    %166 = vector.broadcast %165 : vector<4x8x1xf32> to vector<4x8x8xf32>
    %167 = arith.mulf %162, %166 : vector<4x8x8xf32>
    %cst_74 = arith.constant dense<0.000000e+00> : vector<4x8x16xf32>
    %168 = tpu.matmul %167, %152, %cst_74 {dimension_numbers = #tpu.dot_dimension_numbers<[2], [1], [1], [2], [0, 0, 0, 1, 1, 2], [0], [0]>} : vector<4x8x8xf32>, vector<4x8x16xf32>, vector<4x8x16xf32> -> vector<4x8x16xf32>
    %169 = vector.shape_cast %168 : vector<4x8x16xf32> to vector<32x16xf32>
    %170 = vector.extract_strided_slice %67 {offsets = [48, 0], sizes = [16, 64], strides = [1, 1]} : vector<64x64xf32> to vector<16x64xf32>
    %cst_75 = arith.constant dense<0.000000e+00> : vector<32x64xf32>
    %171 = tpu.matmul %169, %170, %cst_75 {dimension_numbers = #tpu.dot_dimension_numbers<[1], [0], [0], [1], [0, 0, 1, 1], [], []>} : vector<32x16xf32>, vector<16x64xf32>, vector<32x64xf32> -> vector<32x64xf32>
    %172 = arith.addf %146, %171 : vector<32x64xf32>
    %173 = arith.addf %28, %172 : vector<32x64xf32>
    %c0_76 = arith.constant 0 : index
    %c0_77 = arith.constant 0 : index
    %c0_78 = arith.constant 0 : index
    %174 = vector.load %arg12[%c0_76, %c0_77, %c0_78] : memref<2x1x64xf32, #tpu.memory_space<vmem>>, vector<1x1x64xf32>
    %175 = vector.shape_cast %174 : vector<1x1x64xf32> to vector<1x64xf32>
    %176 = vector.broadcast %175 : vector<1x64xf32> to vector<32x64xf32>
    %177 = arith.addf %173, %176 : vector<32x64xf32>
    %c0_79 = arith.constant 0 : index
    %c0_80 = arith.constant 0 : index
    %c0_81 = arith.constant 0 : index
    %178 = vector.load %arg13[%c0_79, %c0_80, %c0_81] : memref<2x1x64xf32, #tpu.memory_space<vmem>>, vector<1x1x64xf32>
    %179 = vector.shape_cast %178 : vector<1x1x64xf32> to vector<1x64xf32>
    %c0_82 = arith.constant 0 : index
    %c0_83 = arith.constant 0 : index
    %c0_84 = arith.constant 0 : index
    %180 = vector.load %arg14[%c0_82, %c0_83, %c0_84] : memref<2x1x64xf32, #tpu.memory_space<vmem>>, vector<1x1x64xf32>
    %181 = vector.shape_cast %180 : vector<1x1x64xf32> to vector<1x64xf32>
    %cst_85 = arith.constant dense<0.000000e+00> : vector<32xf32>
    %182 = vector.multi_reduction <add>, %177, %cst_85 [1] : vector<32x64xf32> to vector<32xf32>
    %183 = vector.shape_cast %182 : vector<32xf32> to vector<32x1xf32>
    %cst_86 = arith.constant 6.400000e+01 : f32
    %184 = vector.broadcast %cst_86 : f32 to vector<32x1xf32>
    %185 = arith.divf %183, %184 : vector<32x1xf32>
    %186 = vector.broadcast %185 : vector<32x1xf32> to vector<32x64xf32>
    %187 = arith.subf %177, %186 : vector<32x64xf32>
    %188 = arith.mulf %187, %187 : vector<32x64xf32>
    %cst_87 = arith.constant dense<0.000000e+00> : vector<32xf32>
    %189 = vector.multi_reduction <add>, %188, %cst_87 [1] : vector<32x64xf32> to vector<32xf32>
    %190 = vector.shape_cast %189 : vector<32xf32> to vector<32x1xf32>
    %cst_88 = arith.constant 6.400000e+01 : f32
    %191 = vector.broadcast %cst_88 : f32 to vector<32x1xf32>
    %192 = arith.divf %190, %191 : vector<32x1xf32>
    %cst_89 = arith.constant 9.99999997E-7 : f32
    %193 = vector.broadcast %cst_89 : f32 to vector<32x1xf32>
    %194 = arith.addf %192, %193 : vector<32x1xf32>
    %195 = math.rsqrt %194 : vector<32x1xf32>
    %196 = vector.broadcast %195 : vector<32x1xf32> to vector<32x64xf32>
    %197 = arith.mulf %187, %196 : vector<32x64xf32>
    %198 = vector.broadcast %179 : vector<1x64xf32> to vector<32x64xf32>
    %199 = arith.mulf %197, %198 : vector<32x64xf32>
    %200 = vector.broadcast %181 : vector<1x64xf32> to vector<32x64xf32>
    %201 = arith.addf %199, %200 : vector<32x64xf32>
    %c0_90 = arith.constant 0 : index
    %c0_91 = arith.constant 0 : index
    %c0_92 = arith.constant 0 : index
    %202 = vector.load %arg15[%c0_90, %c0_91, %c0_92] : memref<2x64x256xf32, #tpu.memory_space<vmem>>, vector<1x64x256xf32>
    %203 = vector.shape_cast %202 : vector<1x64x256xf32> to vector<64x256xf32>
    %cst_93 = arith.constant dense<0.000000e+00> : vector<32x256xf32>
    %204 = tpu.matmul %201, %203, %cst_93 {dimension_numbers = #tpu.dot_dimension_numbers<[1], [0], [0], [1], [0, 0, 1, 1], [], []>} : vector<32x64xf32>, vector<64x256xf32>, vector<32x256xf32> -> vector<32x256xf32>
    %c0_94 = arith.constant 0 : index
    %c0_95 = arith.constant 0 : index
    %c0_96 = arith.constant 0 : index
    %205 = vector.load %arg16[%c0_94, %c0_95, %c0_96] : memref<2x1x256xf32, #tpu.memory_space<vmem>>, vector<1x1x256xf32>
    %206 = vector.shape_cast %205 : vector<1x1x256xf32> to vector<1x256xf32>
    %207 = vector.broadcast %206 : vector<1x256xf32> to vector<32x256xf32>
    %208 = arith.addf %204, %207 : vector<32x256xf32>
    %209 = arith.mulf %208, %208 : vector<32x256xf32>
    %210 = arith.mulf %208, %209 : vector<32x256xf32>
    %cst_97 = arith.constant 4.471500e-02 : f32
    %211 = vector.broadcast %cst_97 : f32 to vector<32x256xf32>
    %212 = arith.mulf %211, %210 : vector<32x256xf32>
    %213 = arith.addf %208, %212 : vector<32x256xf32>
    %cst_98 = arith.constant 0.797884583 : f32
    %214 = vector.broadcast %cst_98 : f32 to vector<32x256xf32>
    %215 = arith.mulf %214, %213 : vector<32x256xf32>
    %216 = math.tanh %215 : vector<32x256xf32>
    %cst_99 = arith.constant 1.000000e+00 : f32
    %217 = vector.broadcast %cst_99 : f32 to vector<32x256xf32>
    %218 = arith.addf %217, %216 : vector<32x256xf32>
    %cst_100 = arith.constant 5.000000e-01 : f32
    %219 = vector.broadcast %cst_100 : f32 to vector<32x256xf32>
    %220 = arith.mulf %219, %218 : vector<32x256xf32>
    %221 = arith.mulf %208, %220 : vector<32x256xf32>
    %c0_101 = arith.constant 0 : index
    %c0_102 = arith.constant 0 : index
    %c0_103 = arith.constant 0 : index
    %222 = vector.load %arg17[%c0_101, %c0_102, %c0_103] : memref<2x256x64xf32, #tpu.memory_space<vmem>>, vector<1x256x64xf32>
    %223 = vector.shape_cast %222 : vector<1x256x64xf32> to vector<256x64xf32>
    %cst_104 = arith.constant dense<0.000000e+00> : vector<32x64xf32>
    %224 = tpu.matmul %221, %223, %cst_104 {dimension_numbers = #tpu.dot_dimension_numbers<[1], [0], [0], [1], [0, 0, 1, 1], [], []>} : vector<32x256xf32>, vector<256x64xf32>, vector<32x64xf32> -> vector<32x64xf32>
    %c0_105 = arith.constant 0 : index
    %c0_106 = arith.constant 0 : index
    %c0_107 = arith.constant 0 : index
    %225 = vector.load %arg18[%c0_105, %c0_106, %c0_107] : memref<2x1x64xf32, #tpu.memory_space<vmem>>, vector<1x1x64xf32>
    %226 = vector.shape_cast %225 : vector<1x1x64xf32> to vector<1x64xf32>
    %227 = vector.broadcast %226 : vector<1x64xf32> to vector<32x64xf32>
    %228 = arith.addf %224, %227 : vector<32x64xf32>
    %229 = arith.addf %177, %228 : vector<32x64xf32>
    %c1 = arith.constant 1 : index
    %c0_108 = arith.constant 0 : index
    %c0_109 = arith.constant 0 : index
    %230 = vector.load %arg7[%c1, %c0_108, %c0_109] : memref<2x1x64xf32, #tpu.memory_space<vmem>>, vector<1x1x64xf32>
    %231 = vector.shape_cast %230 : vector<1x1x64xf32> to vector<1x64xf32>
    %c1_110 = arith.constant 1 : index
    %c0_111 = arith.constant 0 : index
    %c0_112 = arith.constant 0 : index
    %232 = vector.load %arg8[%c1_110, %c0_111, %c0_112] : memref<2x1x64xf32, #tpu.memory_space<vmem>>, vector<1x1x64xf32>
    %233 = vector.shape_cast %232 : vector<1x1x64xf32> to vector<1x64xf32>
    %cst_113 = arith.constant dense<0.000000e+00> : vector<32xf32>
    %234 = vector.multi_reduction <add>, %229, %cst_113 [1] : vector<32x64xf32> to vector<32xf32>
    %235 = vector.shape_cast %234 : vector<32xf32> to vector<32x1xf32>
    %cst_114 = arith.constant 6.400000e+01 : f32
    %236 = vector.broadcast %cst_114 : f32 to vector<32x1xf32>
    %237 = arith.divf %235, %236 : vector<32x1xf32>
    %238 = vector.broadcast %237 : vector<32x1xf32> to vector<32x64xf32>
    %239 = arith.subf %229, %238 : vector<32x64xf32>
    %240 = arith.mulf %239, %239 : vector<32x64xf32>
    %cst_115 = arith.constant dense<0.000000e+00> : vector<32xf32>
    %241 = vector.multi_reduction <add>, %240, %cst_115 [1] : vector<32x64xf32> to vector<32xf32>
    %242 = vector.shape_cast %241 : vector<32xf32> to vector<32x1xf32>
    %cst_116 = arith.constant 6.400000e+01 : f32
    %243 = vector.broadcast %cst_116 : f32 to vector<32x1xf32>
    %244 = arith.divf %242, %243 : vector<32x1xf32>
    %cst_117 = arith.constant 9.99999997E-7 : f32
    %245 = vector.broadcast %cst_117 : f32 to vector<32x1xf32>
    %246 = arith.addf %244, %245 : vector<32x1xf32>
    %247 = math.rsqrt %246 : vector<32x1xf32>
    %248 = vector.broadcast %247 : vector<32x1xf32> to vector<32x64xf32>
    %249 = arith.mulf %239, %248 : vector<32x64xf32>
    %250 = vector.broadcast %231 : vector<1x64xf32> to vector<32x64xf32>
    %251 = arith.mulf %249, %250 : vector<32x64xf32>
    %252 = vector.broadcast %233 : vector<1x64xf32> to vector<32x64xf32>
    %253 = arith.addf %251, %252 : vector<32x64xf32>
    %c1_118 = arith.constant 1 : index
    %c0_119 = arith.constant 0 : index
    %c0_120 = arith.constant 0 : index
    %254 = vector.load %arg9[%c1_118, %c0_119, %c0_120] : memref<2x64x192xf32, #tpu.memory_space<vmem>>, vector<1x64x192xf32>
    %255 = vector.shape_cast %254 : vector<1x64x192xf32> to vector<64x192xf32>
    %cst_121 = arith.constant dense<0.000000e+00> : vector<32x192xf32>
    %256 = tpu.matmul %253, %255, %cst_121 {dimension_numbers = #tpu.dot_dimension_numbers<[1], [0], [0], [1], [0, 0, 1, 1], [], []>} : vector<32x64xf32>, vector<64x192xf32>, vector<32x192xf32> -> vector<32x192xf32>
    %c1_122 = arith.constant 1 : index
    %c0_123 = arith.constant 0 : index
    %c0_124 = arith.constant 0 : index
    %257 = vector.load %arg10[%c1_122, %c0_123, %c0_124] : memref<2x1x192xf32, #tpu.memory_space<vmem>>, vector<1x1x192xf32>
    %258 = vector.shape_cast %257 : vector<1x1x192xf32> to vector<1x192xf32>
    %259 = vector.broadcast %258 : vector<1x192xf32> to vector<32x192xf32>
    %260 = arith.addf %256, %259 : vector<32x192xf32>
    %c1_125 = arith.constant 1 : index
    %c0_126 = arith.constant 0 : index
    %c0_127 = arith.constant 0 : index
    %261 = vector.load %arg11[%c1_125, %c0_126, %c0_127] : memref<2x64x64xf32, #tpu.memory_space<vmem>>, vector<1x64x64xf32>
    %262 = vector.shape_cast %261 : vector<1x64x64xf32> to vector<64x64xf32>
    %cst_128 = arith.constant 0.000000e+00 : f32
    %263 = vector.broadcast %cst_128 : f32 to vector<32x64xf32>
    %264 = vector.extract_strided_slice %260 {offsets = [0, 0], sizes = [32, 16], strides = [1, 1]} : vector<32x192xf32> to vector<32x16xf32>
    %265 = vector.shape_cast %264 : vector<32x16xf32> to vector<4x8x16xf32>
    %266 = vector.extract_strided_slice %260 {offsets = [0, 64], sizes = [32, 16], strides = [1, 1]} : vector<32x192xf32> to vector<32x16xf32>
    %267 = vector.shape_cast %266 : vector<32x16xf32> to vector<4x8x16xf32>
    %268 = vector.extract_strided_slice %260 {offsets = [0, 128], sizes = [32, 16], strides = [1, 1]} : vector<32x192xf32> to vector<32x16xf32>
    %269 = vector.shape_cast %268 : vector<32x16xf32> to vector<4x8x16xf32>
    %cst_129 = arith.constant dense<0.000000e+00> : vector<4x8x8xf32>
    %270 = tpu.matmul %265, %267, %cst_129 {dimension_numbers = #tpu.dot_dimension_numbers<[2], [2], [1], [1], [0, 0, 0, 1, 1, 1], [0], [0]>} : vector<4x8x16xf32>, vector<4x8x16xf32>, vector<4x8x8xf32> -> vector<4x8x8xf32>
    %cst_130 = arith.constant 2.500000e-01 : f32
    %271 = vector.broadcast %cst_130 : f32 to vector<4x8x8xf32>
    %272 = arith.mulf %270, %271 : vector<4x8x8xf32>
    %273 = vector.broadcast %34 : vector<1x8x8xf32> to vector<4x8x8xf32>
    %274 = arith.addf %272, %273 : vector<4x8x8xf32>
    %cst_131 = arith.constant dense<0xFF800000> : vector<4x8xf32>
    %275 = vector.multi_reduction <maximumf>, %274, %cst_131 [2] : vector<4x8x8xf32> to vector<4x8xf32>
    %276 = vector.shape_cast %275 : vector<4x8xf32> to vector<4x8x1xf32>
    %277 = vector.broadcast %276 : vector<4x8x1xf32> to vector<4x8x8xf32>
    %278 = arith.subf %274, %277 : vector<4x8x8xf32>
    %279 = math.exp %278 : vector<4x8x8xf32>
    %cst_132 = arith.constant dense<0.000000e+00> : vector<4x8xf32>
    %280 = vector.multi_reduction <add>, %279, %cst_132 [2] : vector<4x8x8xf32> to vector<4x8xf32>
    %281 = vector.shape_cast %280 : vector<4x8xf32> to vector<4x8x1xf32>
    %282 = tpu.reciprocal %281 {approx = true} : vector<4x8x1xf32> -> vector<4x8x1xf32>
    %283 = vector.broadcast %282 : vector<4x8x1xf32> to vector<4x8x8xf32>
    %284 = arith.mulf %279, %283 : vector<4x8x8xf32>
    %cst_133 = arith.constant dense<0.000000e+00> : vector<4x8x16xf32>
    %285 = tpu.matmul %284, %269, %cst_133 {dimension_numbers = #tpu.dot_dimension_numbers<[2], [1], [1], [2], [0, 0, 0, 1, 1, 2], [0], [0]>} : vector<4x8x8xf32>, vector<4x8x16xf32>, vector<4x8x16xf32> -> vector<4x8x16xf32>
    %286 = vector.shape_cast %285 : vector<4x8x16xf32> to vector<32x16xf32>
    %287 = vector.extract_strided_slice %262 {offsets = [0, 0], sizes = [16, 64], strides = [1, 1]} : vector<64x64xf32> to vector<16x64xf32>
    %cst_134 = arith.constant dense<0.000000e+00> : vector<32x64xf32>
    %288 = tpu.matmul %286, %287, %cst_134 {dimension_numbers = #tpu.dot_dimension_numbers<[1], [0], [0], [1], [0, 0, 1, 1], [], []>} : vector<32x16xf32>, vector<16x64xf32>, vector<32x64xf32> -> vector<32x64xf32>
    %289 = arith.addf %263, %288 : vector<32x64xf32>
    %290 = vector.extract_strided_slice %260 {offsets = [0, 16], sizes = [32, 16], strides = [1, 1]} : vector<32x192xf32> to vector<32x16xf32>
    %291 = vector.shape_cast %290 : vector<32x16xf32> to vector<4x8x16xf32>
    %292 = vector.extract_strided_slice %260 {offsets = [0, 80], sizes = [32, 16], strides = [1, 1]} : vector<32x192xf32> to vector<32x16xf32>
    %293 = vector.shape_cast %292 : vector<32x16xf32> to vector<4x8x16xf32>
    %294 = vector.extract_strided_slice %260 {offsets = [0, 144], sizes = [32, 16], strides = [1, 1]} : vector<32x192xf32> to vector<32x16xf32>
    %295 = vector.shape_cast %294 : vector<32x16xf32> to vector<4x8x16xf32>
    %cst_135 = arith.constant dense<0.000000e+00> : vector<4x8x8xf32>
    %296 = tpu.matmul %291, %293, %cst_135 {dimension_numbers = #tpu.dot_dimension_numbers<[2], [2], [1], [1], [0, 0, 0, 1, 1, 1], [0], [0]>} : vector<4x8x16xf32>, vector<4x8x16xf32>, vector<4x8x8xf32> -> vector<4x8x8xf32>
    %cst_136 = arith.constant 2.500000e-01 : f32
    %297 = vector.broadcast %cst_136 : f32 to vector<4x8x8xf32>
    %298 = arith.mulf %296, %297 : vector<4x8x8xf32>
    %299 = vector.broadcast %34 : vector<1x8x8xf32> to vector<4x8x8xf32>
    %300 = arith.addf %298, %299 : vector<4x8x8xf32>
    %cst_137 = arith.constant dense<0xFF800000> : vector<4x8xf32>
    %301 = vector.multi_reduction <maximumf>, %300, %cst_137 [2] : vector<4x8x8xf32> to vector<4x8xf32>
    %302 = vector.shape_cast %301 : vector<4x8xf32> to vector<4x8x1xf32>
    %303 = vector.broadcast %302 : vector<4x8x1xf32> to vector<4x8x8xf32>
    %304 = arith.subf %300, %303 : vector<4x8x8xf32>
    %305 = math.exp %304 : vector<4x8x8xf32>
    %cst_138 = arith.constant dense<0.000000e+00> : vector<4x8xf32>
    %306 = vector.multi_reduction <add>, %305, %cst_138 [2] : vector<4x8x8xf32> to vector<4x8xf32>
    %307 = vector.shape_cast %306 : vector<4x8xf32> to vector<4x8x1xf32>
    %308 = tpu.reciprocal %307 {approx = true} : vector<4x8x1xf32> -> vector<4x8x1xf32>
    %309 = vector.broadcast %308 : vector<4x8x1xf32> to vector<4x8x8xf32>
    %310 = arith.mulf %305, %309 : vector<4x8x8xf32>
    %cst_139 = arith.constant dense<0.000000e+00> : vector<4x8x16xf32>
    %311 = tpu.matmul %310, %295, %cst_139 {dimension_numbers = #tpu.dot_dimension_numbers<[2], [1], [1], [2], [0, 0, 0, 1, 1, 2], [0], [0]>} : vector<4x8x8xf32>, vector<4x8x16xf32>, vector<4x8x16xf32> -> vector<4x8x16xf32>
    %312 = vector.shape_cast %311 : vector<4x8x16xf32> to vector<32x16xf32>
    %313 = vector.extract_strided_slice %262 {offsets = [16, 0], sizes = [16, 64], strides = [1, 1]} : vector<64x64xf32> to vector<16x64xf32>
    %cst_140 = arith.constant dense<0.000000e+00> : vector<32x64xf32>
    %314 = tpu.matmul %312, %313, %cst_140 {dimension_numbers = #tpu.dot_dimension_numbers<[1], [0], [0], [1], [0, 0, 1, 1], [], []>} : vector<32x16xf32>, vector<16x64xf32>, vector<32x64xf32> -> vector<32x64xf32>
    %315 = arith.addf %289, %314 : vector<32x64xf32>
    %316 = vector.extract_strided_slice %260 {offsets = [0, 32], sizes = [32, 16], strides = [1, 1]} : vector<32x192xf32> to vector<32x16xf32>
    %317 = vector.shape_cast %316 : vector<32x16xf32> to vector<4x8x16xf32>
    %318 = vector.extract_strided_slice %260 {offsets = [0, 96], sizes = [32, 16], strides = [1, 1]} : vector<32x192xf32> to vector<32x16xf32>
    %319 = vector.shape_cast %318 : vector<32x16xf32> to vector<4x8x16xf32>
    %320 = vector.extract_strided_slice %260 {offsets = [0, 160], sizes = [32, 16], strides = [1, 1]} : vector<32x192xf32> to vector<32x16xf32>
    %321 = vector.shape_cast %320 : vector<32x16xf32> to vector<4x8x16xf32>
    %cst_141 = arith.constant dense<0.000000e+00> : vector<4x8x8xf32>
    %322 = tpu.matmul %317, %319, %cst_141 {dimension_numbers = #tpu.dot_dimension_numbers<[2], [2], [1], [1], [0, 0, 0, 1, 1, 1], [0], [0]>} : vector<4x8x16xf32>, vector<4x8x16xf32>, vector<4x8x8xf32> -> vector<4x8x8xf32>
    %cst_142 = arith.constant 2.500000e-01 : f32
    %323 = vector.broadcast %cst_142 : f32 to vector<4x8x8xf32>
    %324 = arith.mulf %322, %323 : vector<4x8x8xf32>
    %325 = vector.broadcast %34 : vector<1x8x8xf32> to vector<4x8x8xf32>
    %326 = arith.addf %324, %325 : vector<4x8x8xf32>
    %cst_143 = arith.constant dense<0xFF800000> : vector<4x8xf32>
    %327 = vector.multi_reduction <maximumf>, %326, %cst_143 [2] : vector<4x8x8xf32> to vector<4x8xf32>
    %328 = vector.shape_cast %327 : vector<4x8xf32> to vector<4x8x1xf32>
    %329 = vector.broadcast %328 : vector<4x8x1xf32> to vector<4x8x8xf32>
    %330 = arith.subf %326, %329 : vector<4x8x8xf32>
    %331 = math.exp %330 : vector<4x8x8xf32>
    %cst_144 = arith.constant dense<0.000000e+00> : vector<4x8xf32>
    %332 = vector.multi_reduction <add>, %331, %cst_144 [2] : vector<4x8x8xf32> to vector<4x8xf32>
    %333 = vector.shape_cast %332 : vector<4x8xf32> to vector<4x8x1xf32>
    %334 = tpu.reciprocal %333 {approx = true} : vector<4x8x1xf32> -> vector<4x8x1xf32>
    %335 = vector.broadcast %334 : vector<4x8x1xf32> to vector<4x8x8xf32>
    %336 = arith.mulf %331, %335 : vector<4x8x8xf32>
    %cst_145 = arith.constant dense<0.000000e+00> : vector<4x8x16xf32>
    %337 = tpu.matmul %336, %321, %cst_145 {dimension_numbers = #tpu.dot_dimension_numbers<[2], [1], [1], [2], [0, 0, 0, 1, 1, 2], [0], [0]>} : vector<4x8x8xf32>, vector<4x8x16xf32>, vector<4x8x16xf32> -> vector<4x8x16xf32>
    %338 = vector.shape_cast %337 : vector<4x8x16xf32> to vector<32x16xf32>
    %339 = vector.extract_strided_slice %262 {offsets = [32, 0], sizes = [16, 64], strides = [1, 1]} : vector<64x64xf32> to vector<16x64xf32>
    %cst_146 = arith.constant dense<0.000000e+00> : vector<32x64xf32>
    %340 = tpu.matmul %338, %339, %cst_146 {dimension_numbers = #tpu.dot_dimension_numbers<[1], [0], [0], [1], [0, 0, 1, 1], [], []>} : vector<32x16xf32>, vector<16x64xf32>, vector<32x64xf32> -> vector<32x64xf32>
    %341 = arith.addf %315, %340 : vector<32x64xf32>
    %342 = vector.extract_strided_slice %260 {offsets = [0, 48], sizes = [32, 16], strides = [1, 1]} : vector<32x192xf32> to vector<32x16xf32>
    %343 = vector.shape_cast %342 : vector<32x16xf32> to vector<4x8x16xf32>
    %344 = vector.extract_strided_slice %260 {offsets = [0, 112], sizes = [32, 16], strides = [1, 1]} : vector<32x192xf32> to vector<32x16xf32>
    %345 = vector.shape_cast %344 : vector<32x16xf32> to vector<4x8x16xf32>
    %346 = vector.extract_strided_slice %260 {offsets = [0, 176], sizes = [32, 16], strides = [1, 1]} : vector<32x192xf32> to vector<32x16xf32>
    %347 = vector.shape_cast %346 : vector<32x16xf32> to vector<4x8x16xf32>
    %cst_147 = arith.constant dense<0.000000e+00> : vector<4x8x8xf32>
    %348 = tpu.matmul %343, %345, %cst_147 {dimension_numbers = #tpu.dot_dimension_numbers<[2], [2], [1], [1], [0, 0, 0, 1, 1, 1], [0], [0]>} : vector<4x8x16xf32>, vector<4x8x16xf32>, vector<4x8x8xf32> -> vector<4x8x8xf32>
    %cst_148 = arith.constant 2.500000e-01 : f32
    %349 = vector.broadcast %cst_148 : f32 to vector<4x8x8xf32>
    %350 = arith.mulf %348, %349 : vector<4x8x8xf32>
    %351 = vector.broadcast %34 : vector<1x8x8xf32> to vector<4x8x8xf32>
    %352 = arith.addf %350, %351 : vector<4x8x8xf32>
    %cst_149 = arith.constant dense<0xFF800000> : vector<4x8xf32>
    %353 = vector.multi_reduction <maximumf>, %352, %cst_149 [2] : vector<4x8x8xf32> to vector<4x8xf32>
    %354 = vector.shape_cast %353 : vector<4x8xf32> to vector<4x8x1xf32>
    %355 = vector.broadcast %354 : vector<4x8x1xf32> to vector<4x8x8xf32>
    %356 = arith.subf %352, %355 : vector<4x8x8xf32>
    %357 = math.exp %356 : vector<4x8x8xf32>
    %cst_150 = arith.constant dense<0.000000e+00> : vector<4x8xf32>
    %358 = vector.multi_reduction <add>, %357, %cst_150 [2] : vector<4x8x8xf32> to vector<4x8xf32>
    %359 = vector.shape_cast %358 : vector<4x8xf32> to vector<4x8x1xf32>
    %360 = tpu.reciprocal %359 {approx = true} : vector<4x8x1xf32> -> vector<4x8x1xf32>
    %361 = vector.broadcast %360 : vector<4x8x1xf32> to vector<4x8x8xf32>
    %362 = arith.mulf %357, %361 : vector<4x8x8xf32>
    %cst_151 = arith.constant dense<0.000000e+00> : vector<4x8x16xf32>
    %363 = tpu.matmul %362, %347, %cst_151 {dimension_numbers = #tpu.dot_dimension_numbers<[2], [1], [1], [2], [0, 0, 0, 1, 1, 2], [0], [0]>} : vector<4x8x8xf32>, vector<4x8x16xf32>, vector<4x8x16xf32> -> vector<4x8x16xf32>
    %364 = vector.shape_cast %363 : vector<4x8x16xf32> to vector<32x16xf32>
    %365 = vector.extract_strided_slice %262 {offsets = [48, 0], sizes = [16, 64], strides = [1, 1]} : vector<64x64xf32> to vector<16x64xf32>
    %cst_152 = arith.constant dense<0.000000e+00> : vector<32x64xf32>
    %366 = tpu.matmul %364, %365, %cst_152 {dimension_numbers = #tpu.dot_dimension_numbers<[1], [0], [0], [1], [0, 0, 1, 1], [], []>} : vector<32x16xf32>, vector<16x64xf32>, vector<32x64xf32> -> vector<32x64xf32>
    %367 = arith.addf %341, %366 : vector<32x64xf32>
    %368 = arith.addf %229, %367 : vector<32x64xf32>
    %c1_153 = arith.constant 1 : index
    %c0_154 = arith.constant 0 : index
    %c0_155 = arith.constant 0 : index
    %369 = vector.load %arg12[%c1_153, %c0_154, %c0_155] : memref<2x1x64xf32, #tpu.memory_space<vmem>>, vector<1x1x64xf32>
    %370 = vector.shape_cast %369 : vector<1x1x64xf32> to vector<1x64xf32>
    %371 = vector.broadcast %370 : vector<1x64xf32> to vector<32x64xf32>
    %372 = arith.addf %368, %371 : vector<32x64xf32>
    %c1_156 = arith.constant 1 : index
    %c0_157 = arith.constant 0 : index
    %c0_158 = arith.constant 0 : index
    %373 = vector.load %arg13[%c1_156, %c0_157, %c0_158] : memref<2x1x64xf32, #tpu.memory_space<vmem>>, vector<1x1x64xf32>
    %374 = vector.shape_cast %373 : vector<1x1x64xf32> to vector<1x64xf32>
    %c1_159 = arith.constant 1 : index
    %c0_160 = arith.constant 0 : index
    %c0_161 = arith.constant 0 : index
    %375 = vector.load %arg14[%c1_159, %c0_160, %c0_161] : memref<2x1x64xf32, #tpu.memory_space<vmem>>, vector<1x1x64xf32>
    %376 = vector.shape_cast %375 : vector<1x1x64xf32> to vector<1x64xf32>
    %cst_162 = arith.constant dense<0.000000e+00> : vector<32xf32>
    %377 = vector.multi_reduction <add>, %372, %cst_162 [1] : vector<32x64xf32> to vector<32xf32>
    %378 = vector.shape_cast %377 : vector<32xf32> to vector<32x1xf32>
    %cst_163 = arith.constant 6.400000e+01 : f32
    %379 = vector.broadcast %cst_163 : f32 to vector<32x1xf32>
    %380 = arith.divf %378, %379 : vector<32x1xf32>
    %381 = vector.broadcast %380 : vector<32x1xf32> to vector<32x64xf32>
    %382 = arith.subf %372, %381 : vector<32x64xf32>
    %383 = arith.mulf %382, %382 : vector<32x64xf32>
    %cst_164 = arith.constant dense<0.000000e+00> : vector<32xf32>
    %384 = vector.multi_reduction <add>, %383, %cst_164 [1] : vector<32x64xf32> to vector<32xf32>
    %385 = vector.shape_cast %384 : vector<32xf32> to vector<32x1xf32>
    %cst_165 = arith.constant 6.400000e+01 : f32
    %386 = vector.broadcast %cst_165 : f32 to vector<32x1xf32>
    %387 = arith.divf %385, %386 : vector<32x1xf32>
    %cst_166 = arith.constant 9.99999997E-7 : f32
    %388 = vector.broadcast %cst_166 : f32 to vector<32x1xf32>
    %389 = arith.addf %387, %388 : vector<32x1xf32>
    %390 = math.rsqrt %389 : vector<32x1xf32>
    %391 = vector.broadcast %390 : vector<32x1xf32> to vector<32x64xf32>
    %392 = arith.mulf %382, %391 : vector<32x64xf32>
    %393 = vector.broadcast %374 : vector<1x64xf32> to vector<32x64xf32>
    %394 = arith.mulf %392, %393 : vector<32x64xf32>
    %395 = vector.broadcast %376 : vector<1x64xf32> to vector<32x64xf32>
    %396 = arith.addf %394, %395 : vector<32x64xf32>
    %c1_167 = arith.constant 1 : index
    %c0_168 = arith.constant 0 : index
    %c0_169 = arith.constant 0 : index
    %397 = vector.load %arg15[%c1_167, %c0_168, %c0_169] : memref<2x64x256xf32, #tpu.memory_space<vmem>>, vector<1x64x256xf32>
    %398 = vector.shape_cast %397 : vector<1x64x256xf32> to vector<64x256xf32>
    %cst_170 = arith.constant dense<0.000000e+00> : vector<32x256xf32>
    %399 = tpu.matmul %396, %398, %cst_170 {dimension_numbers = #tpu.dot_dimension_numbers<[1], [0], [0], [1], [0, 0, 1, 1], [], []>} : vector<32x64xf32>, vector<64x256xf32>, vector<32x256xf32> -> vector<32x256xf32>
    %c1_171 = arith.constant 1 : index
    %c0_172 = arith.constant 0 : index
    %c0_173 = arith.constant 0 : index
    %400 = vector.load %arg16[%c1_171, %c0_172, %c0_173] : memref<2x1x256xf32, #tpu.memory_space<vmem>>, vector<1x1x256xf32>
    %401 = vector.shape_cast %400 : vector<1x1x256xf32> to vector<1x256xf32>
    %402 = vector.broadcast %401 : vector<1x256xf32> to vector<32x256xf32>
    %403 = arith.addf %399, %402 : vector<32x256xf32>
    %404 = arith.mulf %403, %403 : vector<32x256xf32>
    %405 = arith.mulf %403, %404 : vector<32x256xf32>
    %cst_174 = arith.constant 4.471500e-02 : f32
    %406 = vector.broadcast %cst_174 : f32 to vector<32x256xf32>
    %407 = arith.mulf %406, %405 : vector<32x256xf32>
    %408 = arith.addf %403, %407 : vector<32x256xf32>
    %cst_175 = arith.constant 0.797884583 : f32
    %409 = vector.broadcast %cst_175 : f32 to vector<32x256xf32>
    %410 = arith.mulf %409, %408 : vector<32x256xf32>
    %411 = math.tanh %410 : vector<32x256xf32>
    %cst_176 = arith.constant 1.000000e+00 : f32
    %412 = vector.broadcast %cst_176 : f32 to vector<32x256xf32>
    %413 = arith.addf %412, %411 : vector<32x256xf32>
    %cst_177 = arith.constant 5.000000e-01 : f32
    %414 = vector.broadcast %cst_177 : f32 to vector<32x256xf32>
    %415 = arith.mulf %414, %413 : vector<32x256xf32>
    %416 = arith.mulf %403, %415 : vector<32x256xf32>
    %c1_178 = arith.constant 1 : index
    %c0_179 = arith.constant 0 : index
    %c0_180 = arith.constant 0 : index
    %417 = vector.load %arg17[%c1_178, %c0_179, %c0_180] : memref<2x256x64xf32, #tpu.memory_space<vmem>>, vector<1x256x64xf32>
    %418 = vector.shape_cast %417 : vector<1x256x64xf32> to vector<256x64xf32>
    %cst_181 = arith.constant dense<0.000000e+00> : vector<32x64xf32>
    %419 = tpu.matmul %416, %418, %cst_181 {dimension_numbers = #tpu.dot_dimension_numbers<[1], [0], [0], [1], [0, 0, 1, 1], [], []>} : vector<32x256xf32>, vector<256x64xf32>, vector<32x64xf32> -> vector<32x64xf32>
    %c1_182 = arith.constant 1 : index
    %c0_183 = arith.constant 0 : index
    %c0_184 = arith.constant 0 : index
    %420 = vector.load %arg18[%c1_182, %c0_183, %c0_184] : memref<2x1x64xf32, #tpu.memory_space<vmem>>, vector<1x1x64xf32>
    %421 = vector.shape_cast %420 : vector<1x1x64xf32> to vector<1x64xf32>
    %422 = vector.broadcast %421 : vector<1x64xf32> to vector<32x64xf32>
    %423 = arith.addf %419, %422 : vector<32x64xf32>
    %424 = arith.addf %372, %423 : vector<32x64xf32>
    %425 = vector.shape_cast %424 : vector<32x64xf32> to vector<4x8x64xf32>
    %426 = vector.extract_strided_slice %425 {offsets = [0, 5, 0], sizes = [4, 2, 64], strides = [1, 1, 1]} : vector<4x8x64xf32> to vector<4x2x64xf32>
    %c0_185 = arith.constant 0 : index
    %c0_186 = arith.constant 0 : index
    %427 = vector.load %arg19[%c0_185, %c0_186] : memref<1x64xf32, #tpu.memory_space<vmem>>, vector<1x64xf32>
    %c0_187 = arith.constant 0 : index
    %c0_188 = arith.constant 0 : index
    %428 = vector.load %arg20[%c0_187, %c0_188] : memref<1x64xf32, #tpu.memory_space<vmem>>, vector<1x64xf32>
    %cst_189 = arith.constant dense<0.000000e+00> : vector<4x2xf32>
    %429 = vector.multi_reduction <add>, %426, %cst_189 [2] : vector<4x2x64xf32> to vector<4x2xf32>
    %430 = vector.shape_cast %429 : vector<4x2xf32> to vector<4x2x1xf32>
    %cst_190 = arith.constant 6.400000e+01 : f32
    %431 = vector.broadcast %cst_190 : f32 to vector<4x2x1xf32>
    %432 = arith.divf %430, %431 : vector<4x2x1xf32>
    %433 = vector.broadcast %432 : vector<4x2x1xf32> to vector<4x2x64xf32>
    %434 = arith.subf %426, %433 : vector<4x2x64xf32>
    %435 = arith.mulf %434, %434 : vector<4x2x64xf32>
    %cst_191 = arith.constant dense<0.000000e+00> : vector<4x2xf32>
    %436 = vector.multi_reduction <add>, %435, %cst_191 [2] : vector<4x2x64xf32> to vector<4x2xf32>
    %437 = vector.shape_cast %436 : vector<4x2xf32> to vector<4x2x1xf32>
    %cst_192 = arith.constant 6.400000e+01 : f32
    %438 = vector.broadcast %cst_192 : f32 to vector<4x2x1xf32>
    %439 = arith.divf %437, %438 : vector<4x2x1xf32>
    %cst_193 = arith.constant 9.99999997E-7 : f32
    %440 = vector.broadcast %cst_193 : f32 to vector<4x2x1xf32>
    %441 = arith.addf %439, %440 : vector<4x2x1xf32>
    %442 = math.rsqrt %441 : vector<4x2x1xf32>
    %443 = vector.broadcast %442 : vector<4x2x1xf32> to vector<4x2x64xf32>
    %444 = arith.mulf %434, %443 : vector<4x2x64xf32>
    %445 = vector.shape_cast %427 : vector<1x64xf32> to vector<1x1x64xf32>
    %446 = vector.broadcast %445 : vector<1x1x64xf32> to vector<4x2x64xf32>
    %447 = arith.mulf %444, %446 : vector<4x2x64xf32>
    %448 = vector.shape_cast %428 : vector<1x64xf32> to vector<1x1x64xf32>
    %449 = vector.broadcast %448 : vector<1x1x64xf32> to vector<4x2x64xf32>
    %450 = arith.addf %447, %449 : vector<4x2x64xf32>
    %c0_194 = arith.constant 0 : index
    %c0_195 = arith.constant 0 : index
    %451 = vector.load %arg22[%c0_194, %c0_195] : memref<1x8xf32, #tpu.memory_space<vmem>>, vector<1x8xf32>
    %452 = vector.shape_cast %451 : vector<1x8xf32> to vector<1x8xf32>
    %453 = vector.broadcast %452 : vector<1x8xf32> to vector<4x8xf32>
    %454 = vector.extract_strided_slice %450 {offsets = [0, 0, 0], sizes = [4, 1, 64], strides = [1, 1, 1]} : vector<4x2x64xf32> to vector<4x1x64xf32>
    %455 = vector.shape_cast %454 : vector<4x1x64xf32> to vector<4x64xf32>
    %c0_196 = arith.constant 0 : index
    %c0_197 = arith.constant 0 : index
    %456 = vector.load %arg21[%c0_196, %c0_197] : memref<128x8xf32, #tpu.memory_space<vmem>>, vector<64x8xf32>
    %cst_198 = arith.constant dense<0.000000e+00> : vector<4x8xf32>
    %457 = tpu.matmul %455, %456, %cst_198 {dimension_numbers = #tpu.dot_dimension_numbers<[1], [0], [0], [1], [0, 0, 1, 1], [], []>} : vector<4x64xf32>, vector<64x8xf32>, vector<4x8xf32> -> vector<4x8xf32>
    %458 = arith.addf %453, %457 : vector<4x8xf32>
    %459 = vector.extract_strided_slice %450 {offsets = [0, 1, 0], sizes = [4, 1, 64], strides = [1, 1, 1]} : vector<4x2x64xf32> to vector<4x1x64xf32>
    %460 = vector.shape_cast %459 : vector<4x1x64xf32> to vector<4x64xf32>
    %c64 = arith.constant 64 : index
    %c0_199 = arith.constant 0 : index
    %461 = vector.load %arg21[%c64, %c0_199] : memref<128x8xf32, #tpu.memory_space<vmem>>, vector<64x8xf32>
    %cst_200 = arith.constant dense<0.000000e+00> : vector<4x8xf32>
    %462 = tpu.matmul %460, %461, %cst_200 {dimension_numbers = #tpu.dot_dimension_numbers<[1], [0], [0], [1], [0, 0, 1, 1], [], []>} : vector<4x64xf32>, vector<64x8xf32>, vector<4x8xf32> -> vector<4x8xf32>
    %463 = arith.addf %458, %462 : vector<4x8xf32>
    %c0_201 = arith.constant 0 : index
    %c0_202 = arith.constant 0 : index
    %464 = vector.load %arg24[%c0_201, %c0_202] : memref<1x4xf32, #tpu.memory_space<vmem>>, vector<1x4xf32>
    %465 = vector.extract_strided_slice %463 {offsets = [0, 0], sizes = [1, 8], strides = [1, 1]} : vector<4x8xf32> to vector<1x8xf32>
    %c0_203 = arith.constant 0 : index
    %c0_204 = arith.constant 0 : index
    %466 = vector.load %arg23[%c0_203, %c0_204] : memref<32x4xf32, #tpu.memory_space<vmem>>, vector<8x4xf32>
    %cst_205 = arith.constant dense<0.000000e+00> : vector<1x4xf32>
    %467 = tpu.matmul %465, %466, %cst_205 {dimension_numbers = #tpu.dot_dimension_numbers<[1], [0], [0], [1], [0, 0, 1, 1], [], []>} : vector<1x8xf32>, vector<8x4xf32>, vector<1x4xf32> -> vector<1x4xf32>
    %468 = arith.addf %464, %467 : vector<1x4xf32>
    %469 = vector.extract_strided_slice %463 {offsets = [1, 0], sizes = [1, 8], strides = [1, 1]} : vector<4x8xf32> to vector<1x8xf32>
    %c8 = arith.constant 8 : index
    %c0_206 = arith.constant 0 : index
    %470 = vector.load %arg23[%c8, %c0_206] : memref<32x4xf32, #tpu.memory_space<vmem>>, vector<8x4xf32>
    %cst_207 = arith.constant dense<0.000000e+00> : vector<1x4xf32>
    %471 = tpu.matmul %469, %470, %cst_207 {dimension_numbers = #tpu.dot_dimension_numbers<[1], [0], [0], [1], [0, 0, 1, 1], [], []>} : vector<1x8xf32>, vector<8x4xf32>, vector<1x4xf32> -> vector<1x4xf32>
    %472 = arith.addf %468, %471 : vector<1x4xf32>
    %473 = vector.extract_strided_slice %463 {offsets = [2, 0], sizes = [1, 8], strides = [1, 1]} : vector<4x8xf32> to vector<1x8xf32>
    %c16 = arith.constant 16 : index
    %c0_208 = arith.constant 0 : index
    %474 = vector.load %arg23[%c16, %c0_208] : memref<32x4xf32, #tpu.memory_space<vmem>>, vector<8x4xf32>
    %cst_209 = arith.constant dense<0.000000e+00> : vector<1x4xf32>
    %475 = tpu.matmul %473, %474, %cst_209 {dimension_numbers = #tpu.dot_dimension_numbers<[1], [0], [0], [1], [0, 0, 1, 1], [], []>} : vector<1x8xf32>, vector<8x4xf32>, vector<1x4xf32> -> vector<1x4xf32>
    %476 = arith.addf %472, %475 : vector<1x4xf32>
    %477 = vector.extract_strided_slice %463 {offsets = [3, 0], sizes = [1, 8], strides = [1, 1]} : vector<4x8xf32> to vector<1x8xf32>
    %c24 = arith.constant 24 : index
    %c0_210 = arith.constant 0 : index
    %478 = vector.load %arg23[%c24, %c0_210] : memref<32x4xf32, #tpu.memory_space<vmem>>, vector<8x4xf32>
    %cst_211 = arith.constant dense<0.000000e+00> : vector<1x4xf32>
    %479 = tpu.matmul %477, %478, %cst_211 {dimension_numbers = #tpu.dot_dimension_numbers<[1], [0], [0], [1], [0, 0, 1, 1], [], []>} : vector<1x8xf32>, vector<8x4xf32>, vector<1x4xf32> -> vector<1x4xf32>
    %480 = arith.addf %476, %479 : vector<1x4xf32>
    %c0_212 = arith.constant 0 : index
    %c0_213 = arith.constant 0 : index
    %c0_214 = arith.constant 0 : index
    %481 = vector.load %arg26[%c0_212, %c0_213, %c0_214] : memref<1x1x4xf32, #tpu.memory_space<vmem>>, vector<1x1x4xf32>
    %482 = vector.shape_cast %481 : vector<1x1x4xf32> to vector<1x4xf32>
    %483 = vector.shape_cast %480 : vector<1x4xf32> to vector<1x1x4xf32>
    tpu.vector_store %arg26[%c0_212, %c0_213, %c0_214], %483 {strides = array<i32>} : memref<1x1x4xf32, #tpu.memory_space<vmem>>, vector<1x1x4xf32>,
    return
  }
  func.func @transform_0(%arg0: i32) -> (i32, i32, i32) {
    %c0_i32 = arith.constant 0 : i32
    %c0_i32_0 = arith.constant 0 : i32
    %c0_i32_1 = arith.constant 0 : i32
    return %arg0, %c0_i32, %c0_i32_0 : i32, i32, i32
  }
  func.func @transform_1(%arg0: i32) -> (i32, i32) {
    %c0_i32 = arith.constant 0 : i32
    %c0_i32_0 = arith.constant 0 : i32
    %c0_i32_1 = arith.constant 0 : i32
    return %c0_i32, %c0_i32_0 : i32, i32
  }
  func.func @transform_2(%arg0: i32) -> (i32, i32) {
    %c0_i32 = arith.constant 0 : i32
    %c0_i32_0 = arith.constant 0 : i32
    %c0_i32_1 = arith.constant 0 : i32
    return %c0_i32, %c0_i32_0 : i32, i32
  }
  func.func @transform_3(%arg0: i32) -> (i32, i32, i32) {
    %c0_i32 = arith.constant 0 : i32
    %c0_i32_0 = arith.constant 0 : i32
    %c0_i32_1 = arith.constant 0 : i32
    %c0_i32_2 = arith.constant 0 : i32
    return %c0_i32, %c0_i32_0, %c0_i32_1 : i32, i32, i32
  }
  func.func @transform_4(%arg0: i32) -> (i32, i32) {
    %c0_i32 = arith.constant 0 : i32
    %c0_i32_0 = arith.constant 0 : i32
    %c0_i32_1 = arith.constant 0 : i32
    return %c0_i32, %c0_i32_0 : i32, i32
  }
  func.func @transform_5(%arg0: i32) -> (i32, i32) {
    %c0_i32 = arith.constant 0 : i32
    %c0_i32_0 = arith.constant 0 : i32
    %c0_i32_1 = arith.constant 0 : i32
    return %c0_i32, %c0_i32_0 : i32, i32
  }
  func.func @transform_6(%arg0: i32) -> (i32, i32, i32) {
    %c0_i32 = arith.constant 0 : i32
    %c0_i32_0 = arith.constant 0 : i32
    %c0_i32_1 = arith.constant 0 : i32
    %c0_i32_2 = arith.constant 0 : i32
    return %c0_i32, %c0_i32_0, %c0_i32_1 : i32, i32, i32
  }
  func.func @transform_7(%arg0: i32) -> (i32, i32, i32) {
    %c0_i32 = arith.constant 0 : i32
    %c0_i32_0 = arith.constant 0 : i32
    %c0_i32_1 = arith.constant 0 : i32
    %c0_i32_2 = arith.constant 0 : i32
    return %c0_i32, %c0_i32_0, %c0_i32_1 : i32, i32, i32
  }
  func.func @transform_8(%arg0: i32) -> (i32, i32, i32) {
    %c0_i32 = arith.constant 0 : i32
    %c0_i32_0 = arith.constant 0 : i32
    %c0_i32_1 = arith.constant 0 : i32
    %c0_i32_2 = arith.constant 0 : i32
    return %c0_i32, %c0_i32_0, %c0_i32_1 : i32, i32, i32
  }
  func.func @transform_9(%arg0: i32) -> (i32, i32, i32) {
    %c0_i32 = arith.constant 0 : i32
    %c0_i32_0 = arith.constant 0 : i32
    %c0_i32_1 = arith.constant 0 : i32
    %c0_i32_2 = arith.constant 0 : i32
    return %c0_i32, %c0_i32_0, %c0_i32_1 : i32, i32, i32
  }
  func.func @transform_10(%arg0: i32) -> (i32, i32, i32) {
    %c0_i32 = arith.constant 0 : i32
    %c0_i32_0 = arith.constant 0 : i32
    %c0_i32_1 = arith.constant 0 : i32
    %c0_i32_2 = arith.constant 0 : i32
    return %c0_i32, %c0_i32_0, %c0_i32_1 : i32, i32, i32
  }
  func.func @transform_11(%arg0: i32) -> (i32, i32, i32) {
    %c0_i32 = arith.constant 0 : i32
    %c0_i32_0 = arith.constant 0 : i32
    %c0_i32_1 = arith.constant 0 : i32
    %c0_i32_2 = arith.constant 0 : i32
    return %c0_i32, %c0_i32_0, %c0_i32_1 : i32, i32, i32
  }
  func.func @transform_12(%arg0: i32) -> (i32, i32, i32) {
    %c0_i32 = arith.constant 0 : i32
    %c0_i32_0 = arith.constant 0 : i32
    %c0_i32_1 = arith.constant 0 : i32
    %c0_i32_2 = arith.constant 0 : i32
    return %c0_i32, %c0_i32_0, %c0_i32_1 : i32, i32, i32
  }
  func.func @transform_13(%arg0: i32) -> (i32, i32, i32) {
    %c0_i32 = arith.constant 0 : i32
    %c0_i32_0 = arith.constant 0 : i32
    %c0_i32_1 = arith.constant 0 : i32
    %c0_i32_2 = arith.constant 0 : i32
    return %c0_i32, %c0_i32_0, %c0_i32_1 : i32, i32, i32
  }
  func.func @transform_14(%arg0: i32) -> (i32, i32, i32) {
    %c0_i32 = arith.constant 0 : i32
    %c0_i32_0 = arith.constant 0 : i32
    %c0_i32_1 = arith.constant 0 : i32
    %c0_i32_2 = arith.constant 0 : i32
    return %c0_i32, %c0_i32_0, %c0_i32_1 : i32, i32, i32
  }
  func.func @transform_15(%arg0: i32) -> (i32, i32, i32) {
    %c0_i32 = arith.constant 0 : i32
    %c0_i32_0 = arith.constant 0 : i32
    %c0_i32_1 = arith.constant 0 : i32
    %c0_i32_2 = arith.constant 0 : i32
    return %c0_i32, %c0_i32_0, %c0_i32_1 : i32, i32, i32
  }
  func.func @transform_16(%arg0: i32) -> (i32, i32, i32) {
    %c0_i32 = arith.constant 0 : i32
    %c0_i32_0 = arith.constant 0 : i32
    %c0_i32_1 = arith.constant 0 : i32
    %c0_i32_2 = arith.constant 0 : i32
    return %c0_i32, %c0_i32_0, %c0_i32_1 : i32, i32, i32
  }
  func.func @transform_17(%arg0: i32) -> (i32, i32, i32) {
    %c0_i32 = arith.constant 0 : i32
    %c0_i32_0 = arith.constant 0 : i32
    %c0_i32_1 = arith.constant 0 : i32
    %c0_i32_2 = arith.constant 0 : i32
    return %c0_i32, %c0_i32_0, %c0_i32_1 : i32, i32, i32
  }
  func.func @transform_18(%arg0: i32) -> (i32, i32) {
    %c0_i32 = arith.constant 0 : i32
    %c0_i32_0 = arith.constant 0 : i32
    %c0_i32_1 = arith.constant 0 : i32
    return %c0_i32, %c0_i32_0 : i32, i32
  }
  func.func @transform_19(%arg0: i32) -> (i32, i32) {
    %c0_i32 = arith.constant 0 : i32
    %c0_i32_0 = arith.constant 0 : i32
    %c0_i32_1 = arith.constant 0 : i32
    return %c0_i32, %c0_i32_0 : i32, i32
  }
  func.func @transform_20(%arg0: i32) -> (i32, i32) {
    %c0_i32 = arith.constant 0 : i32
    %c0_i32_0 = arith.constant 0 : i32
    %c0_i32_1 = arith.constant 0 : i32
    return %c0_i32, %c0_i32_0 : i32, i32
  }
  func.func @transform_21(%arg0: i32) -> (i32, i32) {
    %c0_i32 = arith.constant 0 : i32
    %c0_i32_0 = arith.constant 0 : i32
    %c0_i32_1 = arith.constant 0 : i32
    return %c0_i32, %c0_i32_0 : i32, i32
  }
  func.func @transform_22(%arg0: i32) -> (i32, i32) {
    %c0_i32 = arith.constant 0 : i32
    %c0_i32_0 = arith.constant 0 : i32
    %c0_i32_1 = arith.constant 0 : i32
    return %c0_i32, %c0_i32_0 : i32, i32
  }
  func.func @transform_23(%arg0: i32) -> (i32, i32) {
    %c0_i32 = arith.constant 0 : i32
    %c0_i32_0 = arith.constant 0 : i32
    %c0_i32_1 = arith.constant 0 : i32
    return %c0_i32, %c0_i32_0 : i32, i32
  }
  func.func @transform_24(%arg0: i32) -> (i32, i32, i32) {
    %c0_i32 = arith.constant 0 : i32
    %c0_i32_0 = arith.constant 0 : i32
    %c0_i32_1 = arith.constant 0 : i32
    return %arg0, %c0_i32, %c0_i32_0 : i32, i32, i32
  }
  func.func @transform_25(%arg0: i32) -> (i32, i32, i32) {
    %c0_i32 = arith.constant 0 : i32
    %c0_i32_0 = arith.constant 0 : i32
    %c0_i32_1 = arith.constant 0 : i32
    return %arg0, %c0_i32, %c0_i32_0 : i32, i32, i32
  }
}

</mosaic_0001>

<bundles_post_ra>
// kernel: eegpt_causal_forward.1
= control target key start
LH: loop header
LB: loop body
LE: loop exit
PB: predicated region body
PF: predicated region fallthrough
CT: control target
= control target key end

     0   :  { %s13163_s0 = inlined_call_operand.vmem [shape: f32[2,6,128], index: 0, kind: input, shape index: {}]   ;;  %s13164_s1 = inlined_call_operand.vmem [shape: f32[5,6], index: 1, kind: input, shape index: {}]   ;;  %s13165_s2 = inlined_call_operand.vmem [shape: f32[5,1], index: 2, kind: input, shape index: {}]   ;;  %s13166_s3 = inlined_call_operand.vmem [shape: f32[4,128,64], index: 3, kind: input, shape index: {}]   ;;  %s13167_s4 = inlined_call_operand.vmem [shape: f32[5,64], index: 4, kind: input, shape index: {}]   ;;  %s13168_s5 = inlined_call_operand.vmem [shape: f32[2,64], index: 5, kind: input, shape index: {}]   ;;  %s13169_s6 = inlined_call_operand.vmem [shape: f32[2,1,64], index: 6, kind: input, shape index: {}]   ;;  %s13170_s7 = inlined_call_operand.vmem [shape: f32[2,1,64], index: 7, kind: input, shape index: {}]   ;;  %s13171_s8 = inlined_call_operand.vmem [shape: f32[2,64,192], index: 8, kind: input, shape index: {}]   ;;  %s13172_s9 = inlined_call_operand.vmem [shape: f32[2,1,192], index: 9, kind: input, shape index: {}]   ;;  %s13173_s10 = inlined_call_operand.vmem [shape: f32[2,64,64], index: 10, kind: input, shape index: {}]   ;;  %s13174_s11 = inlined_call_operand.vmem [shape: f32[2,1,64], index: 11, kind: input, shape index: {}]   ;;  %s13175_s12 = inlined_call_operand.vmem [shape: f32[2,1,64], index: 12, kind: input, shape index: {}]   ;;  %s13176_s13 = inlined_call_operand.vmem [shape: f32[2,1,64], index: 13, kind: input, shape index: {}]   ;;  %s13177_s14 = inlined_call_operand.vmem [shape: f32[2,64,256], index: 14, kind: input, shape index: {}]   ;;  %s13178_s15 = inlined_call_operand.vmem [shape: f32[2,1,256], index: 15, kind: input, shape index: {}]   ;;  %s13179_s16 = inlined_call_operand.vmem [shape: f32[2,256,64], index: 16, kind: input, shape index: {}]   ;;  %s13180_s17 = inlined_call_operand.vmem [shape: f32[2,1,64], index: 17, kind: input, shape index: {}]   ;;  %s13181_s18 = inlined_call_operand.vmem [shape: f32[1,64], index: 18, kind: input, shape index: {}]   ;;  %s13182_s19 = inlined_call_operand.vmem [shape: f32[1,64], index: 19, kind: input, shape index: {}]   ;;  %s13183_s20 = inlined_call_operand.vmem [shape: f32[128,8], index: 20, kind: input, shape index: {}]   ;;  %s13184_s21 = inlined_call_operand.vmem [shape: f32[1,8], index: 21, kind: input, shape index: {}]   ;;  %s13185_s22 = inlined_call_operand.vmem [shape: f32[32,4], index: 22, kind: input, shape index: {}]   ;;  %s13186_s23 = inlined_call_operand.vmem [shape: f32[1,4], index: 23, kind: input, shape index: {}]   ;;  %s13187_s24 = inlined_call_operand.vmem [shape: f32[2,5,128], index: 24, kind: output, shape index: {0}]   ;;  %s13188_s25 = inlined_call_operand.hbm [shape: f32[2,1,4], index: 25, kind: output, shape index: {1}]  }
   0x1   :  { %13218 = sst [smem:[#allocation12_spill]] %s13163_s0 }
   0x2   :  { %13219 = sst [smem:[#allocation13_spill]] %s13164_s1 }
   0x3   :  { %13220 = sst [smem:[#allocation14_spill]] %s13165_s2 }
   0x4   :  { %13221 = sst [smem:[#allocation15_spill]] %s13166_s3 }
   0x5   :  { %13222 = sst [smem:[#allocation16_spill]] %s13167_s4 }
   0x6   :  { %13223 = sst [smem:[#allocation17_spill]] %s13168_s5 }
   0x7   :  { %13224 = sst [smem:[#allocation18_spill]] %s13169_s6 }
   0x8   :  { %13225 = sst [smem:[#allocation19_spill]] %s13170_s7 }
   0x9   :  { %13226 = sst [smem:[#allocation20_spill]] %s13171_s8 }
   0xa   :  { %13227 = sst [smem:[#allocation21_spill]] %s13172_s9 }
   0xb   :  { %13228 = sst [smem:[#allocation22_spill]] %s13173_s10 }
   0xc   :  { %13229 = sst [smem:[#allocation23_spill]] %s13186_s23 }
   0xd   :  { %13230 = sst [smem:[#allocation24_spill]] %s13188_s25 }
   0xe   :  { %31 = vsyncpa [#allocation4], 0 }
   0xf   :  { %33 = vsyncpa [#allocation4 + $0x1], 0  ;;  %s11273_s29 = smov 0   ;;  %s11275_s2 = smov 0  }
  0x10   :  { %s11277_s6 = smov 0   ;;  %s11279_s30 = smov 0  }
  0x11 LB: > { %13231 = sst [smem:[#allocation6_spill]] %s11117_s29  ;;  %s11294_s7 = sadd.s32 4294967295, %s11129_s30   ;;  %s11129_s30 = sphi %s11279_s30, %s13263_s30   ;;  %s11125_s6 = sphi %s11277_s6, %s13265_s6   ;;  %s11121_s2 = sphi %s11275_s2, %s13267_s2   ;;  %s11117_s29 = sphi %s11273_s29, %s13266_s29  }
  0x12   : > { %13232 = sst [smem:[#allocation7_spill]] %s11125_s6  ;;  %s9279_s3 = sadd.s32 4294967294, %s11129_s30  }
  0x13   : > { %13233 = sst [smem:[#allocation8_spill]] %s11129_s30  ;;  %s11298_s26 = sadd.s32 1, %s11129_s30  }
  0x14   : > { %13234 = sst [smem:[#allocation9_spill]] %s11298_s26  ;;  %s581_s1 = sadd.s32 1, %s11125_s6 }
  0x15   : > { %s578_s8 = ssub.s32 %s11129_s30, %s11298_s26  ;;  %p591_p0 = scmp.ne.s32.totalorder %s11125_s6, %s11121_s2 }
  0x16   : > { %p579_p1 = scmp.eq.s32.totalorder %s578_s8, 0  ;;  %p592_p2 = scmp.eq.s32.totalorder %s11294_s7, 1 }
  0x17   : > { %p597_p3 = scmp.ne.s32.totalorder %s11121_s2, %s11117_s29  ;;  %p598_p4 = scmp.eq.s32.totalorder %s9279_s3, 1 }
  0x18   : > { %s11309_s27 = scalar_select %p579_p1, %s11125_s6, %s581_s1  }
  0x19   : > { %p11311_p5 = por %p592_p2, %p591_p0  ;;  %p11315_p6 = por %p598_p4, %p597_p3 }
  0x1a   : > { %13235 = sst [smem:[#allocation10_spill]] %s11309_s27  ;;  %p9282_p7 = scmp.ge.s32.totalorder %s11129_s30, 1 }
  0x1b   : > { %s13237_s28 = scalar_select %p11315_p6, 1, 0 }
  0x1c   : > { %p692_p8 = scmp.lt.s32.totalorder %s11129_s30, 3 }
  0x1d   : > { %13238 = sst [smem:[#allocation11_spill]] %s13237_s28 }
  0x1e   : > { %p693_p9 = pnand %p9282_p7, %p692_p8 }
  0x1f   : > { %p762_p10 = scmp.lt.s32.totalorder (!%p693_p9), %s11294_s7, 1  ;;  %v11131_v0 = vmov (!%p693_p9), 0.0   ;;  %vm11132_vm0 = vmmov (!%p693_p9), 0   ;;  %s13239_s0 = sld [smem:[#allocation14_spill]] (!%p693_p9)  ;;  %v11133_v3 = vmov (!%p693_p9), 0   ;;  %v11134_v4 = vmov (!%p693_p9), 0.0|0.0  }
  0x20   : > { %696 = sbr.rel (%p693_p9) target bundleno = 9962 (0x26ea), region = 116  ;;  %9895 = vmatprep.subr.mxu0 (!%p693_p9), %v11131_v0  ;;  %9897 = vmatprep.mubr.msk.f32.mxu0 (!%p693_p9), %vm11132_vm0, %v11131_v0  ;;  %s13240_s8 = sld [smem:[#allocation15_spill]] (!%p693_p9)  ;;  %vm782_vm1 = vcmask (!%p693_p9), 1045504   ;;  %vm778_vm2 = vcmask (!%p693_p9), 48128   ;;  %vm1208_vm3 = vcmask (!%p693_p9), 517120   ;;  %vm1213_vm4 = vcmask (!%p693_p9), 516096  }
  0x21   : > { %10862 = vset.pattern.permute.xlu0 (!%p693_p9), %v11133_v3  ;;  %10498 = vmatprep.subr.bf16.mxu1 (!%p693_p9), %v11134_v4  ;;  %s13241_s9 = sld [smem:[#allocation12_spill]] (!%p693_p9)  ;;  %s13242_s23 = sld [smem:[#allocation13_spill]] (!%p693_p9)  ;;  %1214 = vst.msk [vmem:[#allocation2 + $0x7] sm:$0x1] (!%p693_p9), %vm1213_vm4, %v11131_v0  ;;  %1215 = vst.msk [vmem:[#allocation2 + $0xf] sm:$0x1] (!%p693_p9), %vm1213_vm4, %v11131_v0 }
  0x22   : > { %9932 = vmatprep.mubr.msk.f32.mxu1 (!%p693_p9), %vm11132_vm0, %v11131_v0  ;;  %s13243_s3 = sld [smem:[#allocation17_spill]] (!%p693_p9)  ;;  %1216 = vst.msk [vmem:[#allocation2 + $0x17] sm:$0x1] (!%p693_p9), %vm1213_vm4, %v11131_v0  ;;  %1217 = vst.msk [vmem:[#allocation2 + $0x1f] sm:$0x1] (!%p693_p9), %vm1213_vm4, %v11131_v0  ;;  %s13244_s26 = sld [smem:[#allocation16_spill]] (!%p693_p9) }
  0x23   : > { %vm1202_vm5 = vcmask (!%p693_p9), 520192   ;;  %vm1228_vm6 = vcmask (!%p693_p9), 523264   ;;  %s13246_s1 = sld [smem:[#allocation18_spill]] (!%p693_p9)  ;;  %s13207_s29 = smov (!%p693_p9), 64   ;;  %vm1442_vm7 = vcmask (!%p693_p9), 130048   ;;  %vm1756_vm9 = vcmask (!%p693_p9), 64512  }
  0x24   : > { %s13203_s30 = smov (!%p693_p9), 112   ;;  %s13249_s10 = sld [smem:[#allocation22_spill]] (!%p693_p9)  ;;  %vm8614_vm10 = vcmask (!%p693_p9), 522245   ;;  %vm8708_vm11 = vcmask (!%p693_p9), 1041409   ;;  %vm8711_vm12 = vcmask (!%p693_p9), 1042434   ;;  %vm8714_vm13 = vcmask (!%p693_p9), 1043459  }
  0x25   : > { %v772_v1 = vld [vmem:[%s13239_s0] sm:$0x1f] (!%p693_p9)  ;;  %s13248_s0 = sld [smem:[#allocation21_spill]] (!%p693_p9)  ;;  %s13253_s28 = smov (!%p693_p9), 32   ;;  %vm9178_vm14 = vcmask (!%p693_p9), 24576  }
  0x26   : > { %v857_v2 = vld [vmem:[%s13240_s8] sm:$0xff] (!%p693_p9)  ;;  %v858_v5 = vld [vmem:[%s13240_s8 + $0x8] sm:$0xff] (!%p693_p9)  ;;  %775 = vperm.xlu0 (!%p693_p9), %10862, %v772_v1   ;;  %v859_v9 = vld [vmem:[%s13240_s8 + $0x10] sm:$0xff] (!%p693_p9) }
  0x27   : > { %s11332_s27 = scalar_select %p762_p10, %s11294_s7, 1  ;;  %v873_v6 = vld [vmem:[%s13240_s8 + $0x80] sm:$0xff]  ;;  %v874_v7 = vld [vmem:[%s13240_s8 + $0x88] sm:$0xff]  ;;  %v10499_v8 = vpack.c.bf16 %v858_v5, %v857_v2  ;;  %v860_v10 = vld [vmem:[%s13240_s8 + $0x18] sm:$0xff] }
  0x28   : > { %v771_v11 = vld [vmem:[%s13242_s23] sm:$0x1f]  ;;  %v10523_v12 = vpack.c.bf16 %v874_v7, %v873_v6  ;;  %v10502_v13 = vpack.c.bf16 %v860_v10, %v859_v9  ;;  %v875_v14 = vld [vmem:[%s13240_s8 + $0x90] sm:$0xff]  ;;  %v876_v15 = vld [vmem:[%s13240_s8 + $0x98] sm:$0xff]  ;;  %s13247_s23 = sld [smem:[#allocation19_spill]] }
  0x29   : > { %s9283_s6 = sshll.u32 %s11332_s27, 3  ;;  %10500 = vmatpush3.bf16.msra.mxu1 %v10499_v8  ;;  %v861_v17 = vld [vmem:[%s13240_s8 + $0x20] sm:$0xff]  ;;  %v862_v18 = vld [vmem:[%s13240_s8 + $0x28] sm:$0xff]  ;;  %v10526_v19 = vpack.c.bf16 %v876_v15, %v875_v14  ;;  %v863_v23 = vld [vmem:[%s13240_s8 + $0x30] sm:$0xff]  ;;  %s13205_s27 = smov 48  }
  0x2a   : > { %s765_s5 = scalar_lea.vmem %s13241_s9, %s9283_s6  ;;  %10501 = vmatprep.subr.bf16.mxu1 %v11134_v4  ;;  %v10505_v20 = vpack.c.bf16 %v862_v18, %v861_v17  ;;  %v877_v21 = vld [vmem:[%s13240_s8 + $0xa0] sm:$0xff]  ;;  %v878_v22 = vld [vmem:[%s13240_s8 + $0xa8] sm:$0xff]  ;;  %v864_v24 = vld [vmem:[%s13240_s8 + $0x38] sm:$0xff]  ;;  %s769_s25 = scalar_lea.vmem %s13187_s24, %s9283_s6 }
  0x2b   : > { %v770_v16 = vld [vmem:[%s765_s5] sm:$0x3f]  ;;  %v10529_v25 = vpack.c.bf16 %v878_v22, %v877_v21  ;;  %v10508_v26 = vpack.c.bf16 %v864_v24, %v863_v23  ;;  %v879_v27 = vld [vmem:[%s13240_s8 + $0xb0] sm:$0xff]  ;;  %v880_v28 = vld [vmem:[%s13240_s8 + $0xb8] sm:$0xff]  ;;  %s13213_s6 = smov 96   ;;  %s13257_s9 = sld [smem:[#allocation23_spill]] }
  0x2c   : > { %9896 = vmatpush3.msk.msra.mxu0 %vm782_vm1, %v770_v16  ;;  %v865_v29 = vld [vmem:[%s13240_s8 + $0x40] sm:$0xff]  ;;  %v866_v30 = vld [vmem:[%s13240_s8 + $0x48] sm:$0xff]  ;;  %v10532_v31 = vpack.c.bf16 %v880_v28, %v879_v27  ;;  %v867_v35 = vld [vmem:[%s13240_s8 + $0x50] sm:$0xff]  ;;  %s9532_s5 = sshll.u32 %s11294_s7, 4  ;;  %s11142_s7 = smov [#allocation3]  }
  0x2d   : > { %9898 = vmatmul.mubr.msk.f32.vlgmr.msra.gmra.mrb[0].mxu0 %vm778_vm2, %v771_v11  ;;  %10522 = vmatprep.subr.bf16.mxu0 %v11134_v4  ;;  %v10511_v32 = vpack.c.bf16 %v866_v30, %v865_v29  ;;  %v881_v33 = vld [vmem:[%s13240_s8 + $0xc0] sm:$0xff]  ;;  %v882_v34 = vld [vmem:[%s13240_s8 + $0xc8] sm:$0xff]  ;;  %v868_v36 = vld [vmem:[%s13240_s8 + $0x58] sm:$0xff] }
  0x2e   : > { %10524 = vmatpush3.bf16.msra.mxu0 %v10523_v12  ;;  %10503 = vmatpush3.bf16.msra.mxu1 %v10502_v13  ;;  %v10535_v37 = vpack.c.bf16 %v882_v34, %v881_v33  ;;  %v10514_v38 = vpack.c.bf16 %v868_v36, %v867_v35  ;;  %v883_v39 = vld [vmem:[%s13240_s8 + $0xd0] sm:$0xff]  ;;  %v884_v40 = vld [vmem:[%s13240_s8 + $0xd8] sm:$0xff]  ;;  %v869_v41 = vld [vmem:[%s13240_s8 + $0x60] sm:$0xff] }
  0x2f   : > { %10525 = vmatprep.subr.bf16.mxu0 %v11134_v4  ;;  %10504 = vmatprep.subr.bf16.mxu1 %v11134_v4  ;;  %v870_v42 = vld [vmem:[%s13240_s8 + $0x68] sm:$0xff]  ;;  %v10538_v43 = vpack.c.bf16 %v884_v40, %v883_v39  ;;  %v885_v45 = vld [vmem:[%s13240_s8 + $0xe0] sm:$0xff]  ;;  %v871_v47 = vld [vmem:[%s13240_s8 + $0x70] sm:$0xff] }
  0x30   : > { %9967 = vmatprep.mubr.msk.f32.mxu0 %vm11132_vm0, %v11131_v0  ;;  %v10517_v44 = vpack.c.bf16 %v870_v42, %v869_v41  ;;  %v886_v46 = vld [vmem:[%s13240_s8 + $0xe8] sm:$0xff]  ;;  %v872_v48 = vld [vmem:[%s13240_s8 + $0x78] sm:$0xff]  ;;  %v887_v51 = vld [vmem:[%s13240_s8 + $0xf0] sm:$0xff] }
  0x31   : > { %v10541_v49 = vpack.c.bf16 %v886_v46, %v885_v45  ;;  %v10520_v50 = vpack.c.bf16 %v872_v48, %v871_v47  ;;  %v888_v52 = vld [vmem:[%s13240_s8 + $0xf8] sm:$0xff]  ;;  %v889_v54 = vld [vmem:[%s13240_s8 + $0x100] sm:$0xff]  ;;  %v890_v55 = vld [vmem:[%s13240_s8 + $0x108] sm:$0xff] }
  0x32   : > { %10527 = vmatpush3.bf16.msra.mxu0 %v10526_v19  ;;  %10506 = vmatpush3.bf16.msra.mxu1 %v10505_v20  ;;  %v10544_v53 = vpack.c.bf16 %v888_v52, %v887_v51  ;;  %v905_v56 = vld [vmem:[%s13240_s8 + $0x180] sm:$0xff]  ;;  %v906_v57 = vld [vmem:[%s13240_s8 + $0x188] sm:$0xff]  ;;  %v10547_v60 = vpack.c.bf16 %v890_v55, %v889_v54  ;;  %v891_v62 = vld [vmem:[%s13240_s8 + $0x110] sm:$0xff] }
  0x33   : > { %10528 = vmatprep.subr.bf16.mxu0 %v11134_v4  ;;  %10507 = vmatprep.subr.bf16.mxu1 %v11134_v4  ;;  %v10571_v61 = vpack.c.bf16 %v906_v57, %v905_v56  ;;  %v892_v2 = vld [vmem:[%s13240_s8 + $0x118] sm:$0xff]  ;;  %v907_v3 = vld [vmem:[%s13240_s8 + $0x190] sm:$0xff]  ;;  %v893_v8 = vld [vmem:[%s13240_s8 + $0x120] sm:$0xff] }
  0x34   : > { %v908_v5 = vld [vmem:[%s13240_s8 + $0x198] sm:$0xff]  ;;  %v10550_v6 = vpack.c.bf16 %v892_v2, %v891_v62  ;;  %v894_v9 = vld [vmem:[%s13240_s8 + $0x128] sm:$0xff]  ;;  %v909_v10 = vld [vmem:[%s13240_s8 + $0x1a0] sm:$0xff] }
  0x35   : > { %v10574_v7 = vpack.c.bf16 %v908_v5, %v907_v3  ;;  %v910_v11 = vld [vmem:[%s13240_s8 + $0x1a8] sm:$0xff]  ;;  %v10553_v12 = vpack.c.bf16 %v894_v9, %v893_v8  ;;  %v895_v14 = vld [vmem:[%s13240_s8 + $0x130] sm:$0xff]  ;;  %v896_v15 = vld [vmem:[%s13240_s8 + $0x138] sm:$0xff] }
  0x36   : > { %10530 = vmatpush3.bf16.msra.mxu0 %v10529_v25  ;;  %10509 = vmatpush3.bf16.msra.mxu1 %v10508_v26  ;;  %v10577_v13 = vpack.c.bf16 %v910_v11, %v909_v10  ;;  %v911_v16 = vld [vmem:[%s13240_s8 + $0x1b0] sm:$0xff]  ;;  %v912_v17 = vld [vmem:[%s13240_s8 + $0x1b8] sm:$0xff]  ;;  %v10556_v18 = vpack.c.bf16 %v896_v15, %v895_v14  ;;  %v897_v20 = vld [vmem:[%s13240_s8 + $0x140] sm:$0xff] }
  0x37   : > { %10531 = vmatprep.subr.bf16.mxu0 %v11134_v4  ;;  %10510 = vmatprep.subr.bf16.mxu1 %v11134_v4  ;;  %v10580_v19 = vpack.c.bf16 %v912_v17, %v911_v16  ;;  %v898_v21 = vld [vmem:[%s13240_s8 + $0x148] sm:$0xff]  ;;  %v913_v22 = vld [vmem:[%s13240_s8 + $0x1c0] sm:$0xff]  ;;  %v899_v26 = vld [vmem:[%s13240_s8 + $0x150] sm:$0xff] }
  0x38   : > { %v914_v23 = vld [vmem:[%s13240_s8 + $0x1c8] sm:$0xff]  ;;  %v10559_v24 = vpack.c.bf16 %v898_v21, %v897_v20  ;;  %v900_v27 = vld [vmem:[%s13240_s8 + $0x158] sm:$0xff]  ;;  %v915_v28 = vld [vmem:[%s13240_s8 + $0x1d0] sm:$0xff] }
  0x39   : > { %v10583_v25 = vpack.c.bf16 %v914_v23, %v913_v22  ;;  %v916_v29 = vld [vmem:[%s13240_s8 + $0x1d8] sm:$0xff]  ;;  %v10562_v30 = vpack.c.bf16 %v900_v27, %v899_v26  ;;  %v902_v33 = vld [vmem:[%s13240_s8 + $0x168] sm:$0xff]  ;;  %v917_v34 = vld [vmem:[%s13240_s8 + $0x1e0] sm:$0xff] }
  0x3a   : > { %10533 = vmatpush3.bf16.msra.mxu0 %v10532_v31  ;;  %10512 = vmatpush3.bf16.msra.mxu1 %v10511_v32  ;;  %v10586_v31 = vpack.c.bf16 %v916_v29, %v915_v28  ;;  %v901_v32 = vld [vmem:[%s13240_s8 + $0x160] sm:$0xff]  ;;  %v918_v35 = vld [vmem:[%s13240_s8 + $0x1e8] sm:$0xff]  ;;  %v904_v39 = vld [vmem:[%s13240_s8 + $0x178] sm:$0xff] }
  0x3b   : > { %10534 = vmatprep.subr.bf16.mxu0 %v11134_v4  ;;  %10513 = vmatprep.subr.bf16.mxu1 %v11134_v4  ;;  %v10565_v36 = vpack.c.bf16 %v902_v33, %v901_v32  ;;  %v919_v40 = vld [vmem:[%s13240_s8 + $0x1f0] sm:$0xff]  ;;  %v920_v41 = vld [vmem:[%s13240_s8 + $0x1f8] sm:$0xff]  ;;  %v921_v45 = vld [vmem:[%s13244_s26] sm:$0x1f]  ;;  %s13252_s26 = smov 112  }
  0x3e   : > { %10536 = vmatpush3.bf16.msra.mxu0 %v10535_v37  ;;  %10515 = vmatpush3.bf16.msra.mxu1 %v10514_v38  ;;  %v10589_v37 = vpack.c.bf16 %v918_v35, %v917_v34  ;;  %v903_v38 = vld [vmem:[%s13240_s8 + $0x170] sm:$0xff] }
  0x3f   : > { %10537 = vmatprep.subr.bf16.mxu0 %v11134_v4  ;;  %10516 = vmatprep.subr.bf16.mxu1 %v11134_v4  ;;  %v10568_v42 = vpack.c.bf16 %v904_v39, %v903_v38 }
  0x42   : > { %10539 = vmatpush3.bf16.msra.mxu0 %v10538_v43  ;;  %10518 = vmatpush3.bf16.msra.mxu1 %v10517_v44  ;;  %v10592_v43 = vpack.c.bf16 %v920_v41, %v919_v40  ;;  %v1207_v44 = vld [vmem:[%s13243_s3] sm:$0x3]  ;;  %s13201_s3 = smov 32  }
  0x43   : > { %10540 = vmatprep.subr.bf16.mxu0 %v11134_v4  ;;  %10519 = vmatprep.subr.bf16.mxu1 %v11134_v4  ;;  %1209 = vst.msk [vmem:[#allocation2 + $0x5] sm:$0x3] %vm1208_vm3, %v1207_v44  ;;  %1210 = vst.msk [vmem:[#allocation2 + $0xd] sm:$0x3] %vm1208_vm3, %v1207_v44 }
  0x44   : > { %1211 = vst.msk [vmem:[#allocation2 + $0x15] sm:$0x3] %vm1208_vm3, %v1207_v44  ;;  %1212 = vst.msk [vmem:[#allocation2 + $0x1d] sm:$0x3] %vm1208_vm3, %v1207_v44 }
  0x46   : > { %10542 = vmatpush3.bf16.msra.mxu0 %v10541_v49  ;;  %10521 = vmatpush3.bf16.msra.mxu1 %v10520_v50 }
  0x47   : > { %10543 = vmatprep.subr.bf16.mxu0 %v11134_v4  ;;  %10546 = vmatprep.subr.bf16.mxu1 %v11134_v4 }
  0x4a   : > { %10545 = vmatpush3.bf16.msra.mxu0 %v10544_v53 }
  0x4b   : > { %10570 = vmatprep.subr.bf16.mxu0 %v11134_v4 }
  0xa5   : > { %v776_v58 = vpop.permute.xlu0 %775 }
 0x100   : > { %v852_v59 = vpop.f32.mrb[0].mxu0 }
 0x101   : > { %v11478_v63 = vadd.f32 %v852_v59, %v776_v58  ;;  %v9899_v1 = vpop.f32.mrb[1].mxu0 }
 0x103   : > { %856 = vst [vmem:[%s769_s25] sm:$0x1f] %v11478_v63  ;;  %9933 = vmatmul.mubr.f32.vlgmr.msra.gmra.mrb[0].mxu1 %v11478_v63  ;;  %9968 = vmatmul.mubr.f32.vlgmr.msra.gmra.mrb[2].mxu0 %v11478_v63  ;;  %s13245_s25 = sld [smem:[#allocation20_spill]] }
 0x104   : > { %10548 = vmatpush3.bf16.msra.mxu1 %v10547_v60  ;;  %10572 = vmatpush3.bf16.msra.mxu0 %v10571_v61 }
 0x105   : > { %10549 = vmatprep.subr.bf16.mxu1 %v11134_v4  ;;  %10573 = vmatprep.subr.bf16.mxu0 %v11134_v4 }
 0x106   : > { %10002 = vmatprep.mubr.msk.f32.mxu1 %vm11132_vm0, %v11131_v0  ;;  %10037 = vmatprep.mubr.msk.f32.mxu0 %vm11132_vm0, %v11131_v0 }
 0x108   : > { %10551 = vmatpush3.bf16.msra.mxu1 %v10550_v6  ;;  %10575 = vmatpush3.bf16.msra.mxu0 %v10574_v7 }
 0x109   : > { %10552 = vmatprep.subr.bf16.mxu1 %v11134_v4  ;;  %10576 = vmatprep.subr.bf16.mxu0 %v11134_v4  ;;  %v1303_v14 = vld [vmem:[%s13245_s25 + $0x8] sm:$0xff]  ;;  %v1305_v15 = vld [vmem:[%s13245_s25 + $0x18] sm:$0xff]  ;;  %v1302_v17 = vld [vmem:[%s13245_s25] sm:$0xff] }
 0x10a   : > { %v10594_v16 = vpack.c.bf16 %v1305_v15, %v1303_v14  ;;  %v1307_v20 = vld [vmem:[%s13245_s25 + $0x28] sm:$0xff]  ;;  %v1309_v21 = vld [vmem:[%s13245_s25 + $0x38] sm:$0xff]  ;;  %v1306_v23 = vld [vmem:[%s13245_s25 + $0x20] sm:$0xff] }
 0x10b   : > { %v10598_v22 = vpack.c.bf16 %v1309_v21, %v1307_v20  ;;  %v1311_v28 = vld [vmem:[%s13245_s25 + $0x48] sm:$0xff]  ;;  %v1313_v29 = vld [vmem:[%s13245_s25 + $0x58] sm:$0xff]  ;;  %v1312_v32 = vld [vmem:[%s13245_s25 + $0x50] sm:$0xff] }
 0x10c   : > { %10554 = vmatpush3.bf16.msra.mxu1 %v10553_v12  ;;  %10578 = vmatpush3.bf16.msra.mxu0 %v10577_v13  ;;  %v1315_v38 = vld [vmem:[%s13245_s25 + $0x68] sm:$0xff]  ;;  %v1317_v39 = vld [vmem:[%s13245_s25 + $0x78] sm:$0xff]  ;;  %v1314_v40 = vld [vmem:[%s13245_s25 + $0x60] sm:$0xff] }
 0x10d   : > { %10555 = vmatprep.subr.bf16.mxu1 %v11134_v4  ;;  %10579 = vmatprep.subr.bf16.mxu0 %v11134_v4  ;;  %v10606_v41 = vpack.c.bf16 %v1317_v39, %v1315_v38 }
 0x110   : > { %10557 = vmatpush3.bf16.msra.mxu1 %v10556_v18  ;;  %10581 = vmatpush3.bf16.msra.mxu0 %v10580_v19  ;;  %v1304_v18 = vld [vmem:[%s13245_s25 + $0x10] sm:$0xff] }
 0x111   : > { %10558 = vmatprep.subr.bf16.mxu1 %v11134_v4  ;;  %10582 = vmatprep.subr.bf16.mxu0 %v11134_v4  ;;  %v10596_v19 = vpack.c.bf16 %v1304_v18, %v1302_v17 }
 0x114   : > { %10560 = vmatpush3.bf16.msra.mxu1 %v10559_v24  ;;  %10584 = vmatpush3.bf16.msra.mxu0 %v10583_v25  ;;  %v1308_v24 = vld [vmem:[%s13245_s25 + $0x30] sm:$0xff] }
 0x115   : > { %10561 = vmatprep.subr.bf16.mxu1 %v11134_v4  ;;  %10585 = vmatprep.subr.bf16.mxu0 %v11134_v4  ;;  %v10600_v25 = vpack.c.bf16 %v1308_v24, %v1306_v23 }
 0x118   : > { %10563 = vmatpush3.bf16.msra.mxu1 %v10562_v30  ;;  %10587 = vmatpush3.bf16.msra.mxu0 %v10586_v31  ;;  %v10602_v30 = vpack.c.bf16 %v1313_v29, %v1311_v28  ;;  %v1310_v31 = vld [vmem:[%s13245_s25 + $0x40] sm:$0xff] }
 0x119   : > { %10564 = vmatprep.subr.bf16.mxu1 %v11134_v4  ;;  %10588 = vmatprep.subr.bf16.mxu0 %v11134_v4  ;;  %v10604_v34 = vpack.c.bf16 %v1312_v32, %v1310_v31 }
 0x11c   : > { %10566 = vmatpush3.bf16.msra.mxu1 %v10565_v36  ;;  %10590 = vmatpush3.bf16.msra.mxu0 %v10589_v37 }
 0x11d   : > { %10567 = vmatprep.subr.bf16.mxu1 %v11134_v4  ;;  %10591 = vmatprep.subr.bf16.mxu0 %v11134_v4 }
 0x120   : > { %10569 = vmatpush3.bf16.msra.mxu1 %v10568_v42  ;;  %10593 = vmatpush3.bf16.msra.mxu0 %v10592_v43  ;;  %v1316_v42 = vld [vmem:[%s13245_s25 + $0x70] sm:$0xff] }
 0x121   : > { %10040 = vmatprep.subr.mxu0 %v11131_v0  ;;  %10595 = vmatprep.subr.bf16.mxu1 %v10594_v16  ;;  %v1222_v16 = vlaneseq }
 0x123   : > { %10003 = vmatmul.mubr.f32.vlgmr.msra.gmra.mrb[2].mxu1 %v11478_v63  ;;  %10038 = vmatmul.mubr.f32.vlgmr.msra.gmra.mrb[4].mxu0 %v11478_v63  ;;  %v1321_v17 = vshrl.u32 %v1222_v16, 7 }
 0x124   : > { %1406 = vmatprep.mubr.f32.mxu1 %v11131_v0  ;;  %10042 = vmatprep.mubr.msk.f32.mxu0 %vm11132_vm0, %v11131_v0 }
 0x125   : > { %10597 = vmatpush1.bf16.msra.mxu1 %v10596_v19  ;;  %v11684_v18 = vsub.s32 0, %v1321_v17  ;;  %v1318_v19 = vld [vmem:[%s13248_s0] sm:$0x3]  ;;  %v11689_v20 = vsub.s32 1, %v1321_v17 }
 0x126   : > { %10599 = vmatprep.subr.bf16.mxu1 %v10598_v22 }
 0x127   : > { %v1323_v21 = vrot.slane %v1318_v19, %v11684_v18  ;;  %v1327_v22 = vrot.slane %v1318_v19, %v11689_v20 }
 0x129   : > { %10601 = vmatpush1.bf16.msra.mxu1 %v10600_v25 }
 0x12a   : > { %10603 = vmatprep.subr.bf16.mxu1 %v10602_v30 }
 0x12d   : > { %10605 = vmatpush1.bf16.msra.mxu1 %v10604_v34 }
 0x12e   : > { %10607 = vmatprep.subr.bf16.mxu1 %v10606_v41 }
 0x1d6   : > { %v988_v46 = vpop.f32.mrb[0].mxu1  ;;  %v1058_v47 = vpop.f32.mrb[2].mxu0 }
 0x1d7   : > { %v989_v48 = vadd.f32 %v988_v46, %v921_v45  ;;  %v1059_v49 = vadd.f32 %v1058_v47, %v921_v45  ;;  %v9934_v50 = vpop.f32.mrb[1].mxu1  ;;  %v9969_v51 = vpop.f32.mrb[3].mxu0 }
 0x1d9   : > { %1203 = vst.msk [vmem:[#allocation2] sm:$0x1f] %vm1202_vm5, %v989_v48  ;;  %1204 = vst.msk [vmem:[#allocation2 + $0x8] sm:$0x1f] %vm1202_vm5, %v1059_v49 }
 0x1e0   : > { %v1218_v52 = vld [vmem:[#allocation2] sm:$0xff]  ;;  %v1219_v53 = vld [vmem:[#allocation2 + $0x8] sm:$0xff] }
 0x1e1   : > { %v1229_v54 = vsel %vm1228_vm6, %v1218_v52, 0.0  ;;  %v1232_v55 = vsel %vm1228_vm6, %v1219_v53, 0.0 }
 0x1e2   : > { %1230 = vadd.xlane.f32.xlu0 %v1229_v54  ;;  %1233 = vadd.xlane.f32.xlu1 %v1232_v55  ;;  %v9287_v55 = vld [vmem:[%s13246_s1] ss:$0 sm:$0xff] }
 0x1f6   : > { %v1128_v56 = vpop.f32.mrb[2].mxu1  ;;  %v1198_v57 = vpop.f32.mrb[4].mxu0 }
 0x1f7   : > { %v1129_v58 = vadd.f32 %v1128_v56, %v921_v45  ;;  %v1199_v59 = vadd.f32 %v1198_v57, %v921_v45  ;;  %v10004_v60 = vpop.f32.mrb[3].mxu1  ;;  %v10039_v61 = vpop.f32.mrb[5].mxu0  ;;  %v10608_v45 = vpack.c.bf16 %v1316_v42, %v1314_v40  ;;  %v9288_v57 = vld [vmem:[%s13247_s23] ss:$0 sm:$0xff] }
 0x1f9   : > { %1205 = vst.msk [vmem:[#allocation2 + $0x10] sm:$0x1f] %vm1202_vm5, %v1129_v58  ;;  %1206 = vst.msk [vmem:[#allocation2 + $0x18] sm:$0x1f] %vm1202_vm5, %v1199_v59  ;;  %10609 = vmatpush1.bf16.msra.mxu1 %v10608_v45 }
 0x1fa   : > { %10075 = vmatprep.subr.mxu1 %v11131_v0 }
 0x200   : > { %v1220_v62 = vld [vmem:[#allocation2 + $0x10] sm:$0xff]  ;;  %v1221_v1 = vld [vmem:[#allocation2 + $0x18] sm:$0xff] }
 0x201   : > { %v1235_v63 = vsel %vm1228_vm6, %v1220_v62, 0.0  ;;  %v1238_v2 = vsel %vm1228_vm6, %v1221_v1, 0.0 }
 0x202   : > { %1236 = vadd.xlane.f32.xlu1 %v1235_v63 }
 0x206   : > { %1239 = vadd.xlane.f32.xlu1 %v1238_v2 }
 0x26f   : > { %v1231_v3 = vpop.xlane.xlu0 %1230  ;;  %v1234_v5 = vpop.xlane.xlu1 %1233 }
 0x270   : > { %v1242_v6 = vmul.f32 0.015625, %v1231_v3  ;;  %v1243_v7 = vmul.f32 0.015625, %v1234_v5 }
 0x272   : > { %v11606_v8 = vsub.f32 %v1218_v52, %v1242_v6  ;;  %v11608_v9 = vsub.f32 %v1219_v53, %v1243_v7 }
 0x274   : > { %v1250_v10 = vmul.f32 %v11606_v8, %v11606_v8  ;;  %v1251_v12 = vmul.f32 %v11608_v9, %v11608_v9 }
 0x276   : > { %v1254_v11 = vsel %vm1228_vm6, %v1250_v10, 0.0  ;;  %v1257_v13 = vsel %vm1228_vm6, %v1251_v12, 0.0 }
 0x277   : > { %1255 = vadd.xlane.f32.xlu1 %v1254_v11 }
 0x27b   : > { %1258 = vadd.xlane.f32.xlu1 %v1257_v13 }
 0x28f   : > { %v1237_v26 = vpop.xlane.xlu1 %1236 }
 0x290   : > { %v1244_v27 = vmul.f32 0.015625, %v1237_v26 }
 0x292   : > { %v1248_v33 = vsub.f32 %v1220_v62, %v1244_v27 }
 0x293   : > { %v1240_v35 = vpop.xlane.xlu1 %1239 }
 0x294   : > { %v1245_v36 = vmul.f32 0.015625, %v1240_v35  ;;  %v1252_v37 = vmul.f32 %v1248_v33, %v1248_v33 }
 0x296   : > { %v1249_v43 = vsub.f32 %v1221_v1, %v1245_v36  ;;  %v1260_v44 = vsel %vm1228_vm6, %v1252_v37, 0.0 }
 0x297   : > { %1261 = vadd.xlane.f32.xlu1 %v1260_v44 }
 0x298   : > { %v1253_v46 = vmul.f32 %v1249_v43, %v1249_v43 }
 0x29a   : > { %v1263_v47 = vsel %vm1228_vm6, %v1253_v46, 0.0 }
 0x29b   : > { %1264 = vadd.xlane.f32.xlu1 %v1263_v47  ;;  %v1223_v47 = vand.u32 127, %v1222_v16 }
 0x29d   : > { %vm1224_vm8 = vcmp.ge.s32.totalorder %v1223_v47, 7 }
 0x304   : > { %v1256_v48 = vpop.xlane.xlu1 %1255 }
 0x305   : > { %v1266_v49 = vmul.f32 0.015625, %v1256_v48 }
 0x307   : > { %v1270_v50 = vadd.f32 1e-06, %v1266_v49 }
 0x308   : > { %v1259_v51 = vpop.xlane.xlu1 %1258 }
 0x309   : > { %10863 = vrsqrt.f32 %v1270_v50  ;;  %v1267_v52 = vmul.f32 0.015625, %v1259_v51 }
 0x30b   : > { %v1271_v53 = vadd.f32 1e-06, %v1267_v52 }
 0x30d   : > { %10865 = vrsqrt.f32 %v1271_v53  ;;  %v11746_v53 = vsel %vm1224_vm8, -1e+30, %v11131_v0 }
 0x313   : > { %v10864_v54 = vpop.eup %10863 }
 0x314   : > { %v1278_v56 = vmul.f32 %v10864_v54, %v11606_v8 }
 0x316   : > { %v1288_v58 = vmul.f32 %v9287_v55, %v1278_v56 }
 0x317   : > { %v10866_v59 = vpop.eup %10865 }
 0x318   : > { %v1298_v60 = vadd.f32 %v9288_v57, %v1288_v58  ;;  %v1279_v61 = vmul.f32 %v10866_v59, %v11608_v9 }
 0x31a   : > { %9289 = vmatmul.mubr.msk.f32.vlgmr.msra.gmra.mrb[4].mxu1 %vm1228_vm6, %v1298_v60  ;;  %v1289_v62 = vmul.f32 %v9287_v55, %v1279_v61 }
 0x31b   : > { %1412 = vmatprep.mubr.f32.mxu1 %v11131_v0 }
 0x31c   : > { %v1299_v63 = vadd.f32 %v9288_v57, %v1289_v62 }
 0x31e   : > { %9290 = vmatmul.mubr.msk.f32.gmra.mrb[6].mxu1 %vm1228_vm6, %v1299_v63 }
 0x31f   : > { %1418 = vmatprep.mubr.f32.mxu1 %v11131_v0 }
 0x324   : > { %v1262_v1 = vpop.xlane.xlu1 %1261 }
 0x325   : > { %v1268_v2 = vmul.f32 0.015625, %v1262_v1 }
 0x327   : > { %v1272_v3 = vadd.f32 1e-06, %v1268_v2 }
 0x328   : > { %v1265_v5 = vpop.xlane.xlu1 %1264 }
 0x329   : > { %10867 = vrsqrt.f32 %v1272_v3  ;;  %v1269_v6 = vmul.f32 0.015625, %v1265_v5 }
 0x32b   : > { %v1273_v7 = vadd.f32 1e-06, %v1269_v6 }
 0x32d   : > { %10869 = vrsqrt.f32 %v1273_v7 }
 0x333   : > { %v10868_v8 = vpop.eup %10867 }
 0x334   : > { %v1280_v9 = vmul.f32 %v10868_v8, %v1248_v33 }
 0x336   : > { %v1290_v10 = vmul.f32 %v9287_v55, %v1280_v9 }
 0x337   : > { %v10870_v11 = vpop.eup %10869 }
 0x338   : > { %v1300_v12 = vadd.f32 %v9288_v57, %v1290_v10  ;;  %v1281_v13 = vmul.f32 %v10870_v11, %v1249_v43 }
 0x33a   : > { %9291 = vmatmul.mubr.msk.f32.gmra.mrb[8].mxu1 %vm1228_vm6, %v1300_v12  ;;  %v1291_v14 = vmul.f32 %v9287_v55, %v1281_v13 }
 0x33b   : > { %1424 = vmatprep.mubr.f32.mxu1 %v11131_v0 }
 0x33c   : > { %v1301_v15 = vadd.f32 %v9288_v57, %v1291_v14 }
 0x33e   : > { %9292 = vmatmul.mubr.msk.f32.gmra.mrb[10].mxu1 %vm1228_vm6, %v1301_v15 }
 0x33f   : > { %10077 = vmatprep.mubr.msk.f32.mxu1 %vm11132_vm0, %v11131_v0 }
 0x3ed   : > { %v1408_v23 = vpop.f32.mrb[4].mxu1 }
 0x3ee   : > { %v11693_v24 = vadd.f32 %v1408_v23, %v1323_v21  ;;  %v1410_v25 = vpop.f32.mrb[5].mxu1 }
 0x3ef   : > { %v11695_v26 = vadd.f32 %v1410_v25, %v1327_v22 }
 0x3f0   : > { %1440 = vrot.lane.b32.xlu1 %v11693_v24, %s13207_s29 }
 0x3f1   : > { %v1414_v27 = vpop.f32.mrb[6].mxu1 }
 0x3f2   : > { %v11699_v28 = vadd.f32 %v1414_v27, %v1323_v21  ;;  %v1416_v29 = vpop.f32.mrb[7].mxu1 }
 0x3f3   : > { %v11701_v30 = vadd.f32 %v1416_v29, %v1327_v22 }
 0x3f4   : > { %1518 = vrot.lane.b32.xlu0 %v11699_v28, %s13207_s29 }
 0x40d   : > { %v1420_v31 = vpop.f32.mrb[8].mxu1 }
 0x40e   : > { %v11705_v32 = vadd.f32 %v1420_v31, %v1323_v21  ;;  %v1422_v33 = vpop.f32.mrb[9].mxu1 }
 0x40f   : > { %v11707_v34 = vadd.f32 %v1422_v33, %v1327_v22 }
 0x410   : > { %1595 = vrot.lane.b32.xlu1 %v11705_v32, %s13207_s29 }
 0x411   : > { %v1426_v35 = vpop.f32.mrb[10].mxu1 }
 0x412   : > { %v11711_v36 = vadd.f32 %v1426_v35, %v1323_v21  ;;  %v1428_v37 = vpop.f32.mrb[11].mxu1 }
 0x413   : > { %v11713_v38 = vadd.f32 %v1428_v37, %v1327_v22 }
 0x414   : > { %1672 = vrot.lane.b32.xlu1 %v11711_v36, %s13207_s29  ;;  %s13211_s29 = smov 16  }
 0x415   : > { %10076 = vmatpush3.msra.mxu1 %v11713_v38 }
 0x416   : > { %10085 = vmatprep.subr.mxu1 %v11131_v0 }
 0x462   : > { %v1441_v39 = vpop.permute.xlu1 %1440 }
 0x463   : > { %10041 = vmatpush3.xpose.msk.msra.mxu0 %vm1442_vm7, %v1441_v39 }
 0x464   : > { %10045 = vmatprep.subr.mxu0 %v11131_v0 }
 0x466   : > { %v1519_v40 = vpop.permute.xlu0 %1518  ;;  %10043 = vmatmul.mubr.msk.f32.vlgmr.msra.gmra.mrb[6].mxu0 %vm1442_vm7, %v11693_v24 }
 0x467   : > { %10046 = vmatpush3.xpose.msk.msra.mxu0 %vm1442_vm7, %v1519_v40  ;;  %10047 = vmatprep.mubr.msk.f32.mxu0 %vm11132_vm0, %v11131_v0 }
 0x468   : > { %10050 = vmatprep.subr.mxu0 %v11131_v0 }
 0x46a   : > { %10048 = vmatmul.mubr.msk.f32.vlgmr.msra.gmra.mrb[8].mxu0 %vm1442_vm7, %v11699_v28 }
 0x46b   : > { %10052 = vmatprep.mubr.msk.f32.mxu0 %vm11132_vm0, %v11131_v0 }
 0x482   : > { %v1596_v41 = vpop.permute.xlu1 %1595 }
 0x483   : > { %10051 = vmatpush3.xpose.msk.msra.mxu0 %vm1442_vm7, %v1596_v41 }
 0x484   : > { %10055 = vmatprep.subr.mxu0 %v11131_v0 }
 0x486   : > { %10053 = vmatmul.mubr.msk.f32.vlgmr.msra.gmra.mrb[10].mxu0 %vm1442_vm7, %v11705_v32  ;;  %v1673_v42 = vpop.permute.xlu1 %1672 }
 0x487   : > { %10056 = vmatpush3.xpose.msk.msra.mxu0 %vm1442_vm7, %v1673_v42  ;;  %10057 = vmatprep.mubr.msk.f32.mxu0 %vm11132_vm0, %v11131_v0 }
 0x488   : > { %10060 = vmatprep.subr.mxu0 %v11131_v0 }
 0x48a   : > { %10058 = vmatmul.mubr.msk.f32.vlgmr.msra.gmra.mrb[12].mxu0 %vm1442_vm7, %v11711_v36 }
 0x48b   : > { %10061 = vmatpush3.msra.mxu0 %v11695_v26  ;;  %10062 = vmatprep.mubr.msk.f32.mxu0 %vm11132_vm0, %v11131_v0 }
 0x48c   : > { %10065 = vmatprep.subr.mxu0 %v11131_v0 }
 0x539   : > { %v1513_v43 = vpop.f32.mrb[6].mxu0 }
 0x53a   : > { %v10044_v44 = vpop.f32.mrb[7].mxu0  ;;  %v1748_v56 = vmul.f32 0.25, %v1513_v43 }
 0x53c   : > { %v1752_v57 = vadd.f32 %v1748_v56, %v11746_v53 }
 0x53d   : > { %v1590_v45 = vpop.f32.mrb[8].mxu0 }
 0x53e   : > { %v10049_v46 = vpop.f32.mrb[9].mxu0  ;;  %v1757_v58 = vsel %vm1756_vm9, %v1752_v57, -inf  ;;  %v1749_v7 = vmul.f32 0.25, %v1590_v45 }
 0x540   : > { %v1753_v9 = vadd.f32 %v1749_v7, %v11746_v53 }
 0x542   : > { %v1760_v11 = vsel %vm1756_vm9, %v1753_v9, -inf }
 0x559   : > { %v1667_v48 = vpop.f32.mrb[10].mxu0 }
 0x55a   : > { %v10054_v49 = vpop.f32.mrb[11].mxu0  ;;  %v1750_v8 = vmul.f32 0.25, %v1667_v48 }
 0x55c   : > { %v1754_v13 = vadd.f32 %v1750_v8, %v11746_v53 }
 0x55d   : > { %v1744_v50 = vpop.f32.mrb[12].mxu0 }
 0x55e   : > { %v1751_v51 = vmul.f32 0.25, %v1744_v50  ;;  %v10059_v52 = vpop.f32.mrb[13].mxu0  ;;  %v1763_v14 = vsel %vm1756_vm9, %v1754_v13, -inf }
 0x560   : > { %v1755_v54 = vadd.f32 %v1751_v51, %v11746_v53 }
 0x562   : > { %v1766_v55 = vsel %vm1756_vm9, %v1755_v54, -inf }
 0x563   : > { %1767 = vmax.xlane.f32.xlu1 %v1766_v55 }
 0x574   : > { %2171 = vrot.lane.b32.xlu1 %v11699_v28, %s13203_s30 }
 0x578   : > { %2329 = vrot.lane.b32.xlu1 %v11711_v36, %s13205_s27 }
 0x59c   : > { %1758 = vmax.xlane.f32.xlu1 %v1757_v58 }
 0x5f0   : > { %v1768_v59 = vpop.xlane.xlu1 %1767 }
 0x5f1   : > { %v1772_v60 = vsub.f32 %v1755_v54, %v1768_v59 }
 0x5f3   : > { %v1779_v61 = vmul.f32 1.442695, %v1772_v60 }
 0x5f4   : > { %v2172_v1 = vpop.permute.xlu1 %2171 }
 0x5f5   : > { %10871 = vpow2.f32 %v1779_v61 }
 0x5f8   : > { %v2330_v2 = vpop.permute.xlu1 %2329 }
 0x5ff   : > { %v10872_v62 = vpop.eup %10871 }
 0x600   : > { %v1790_v63 = vsel %vm1756_vm9, %v10872_v62, 0.0 }
 0x601   : > { %1791 = vadd.xlane.f32.xlu0 %v1790_v63 }
 0x617   : > { %2173 = vrot.lane.b32.xlu0 %v11699_v28, %s13205_s27 }
 0x61b   : > { %2327 = vrot.lane.b32.xlu0 %v11711_v36, %s13203_s30 }
 0x629   : > { %v1759_v3 = vpop.xlane.xlu1 %1758 }
 0x62a   : > { %v1769_v5 = vsub.f32 %v1752_v57, %v1759_v3 }
 0x62c   : > { %v1773_v6 = vmul.f32 1.442695, %v1769_v5 }
 0x62e   : > { %10873 = vpow2.f32 %v1773_v6 }
 0x638   : > { %v10874_v10 = vpop.eup %10873 }
 0x639   : > { %v1781_v12 = vsel %vm1756_vm9, %v10874_v10, 0.0 }
 0x63a   : > { %1761 = vmax.xlane.f32.xlu0 %v1760_v11  ;;  %1782 = vadd.xlane.f32.xlu1 %v1781_v12 }
 0x63e   : > { %1764 = vmax.xlane.f32.xlu0 %v1763_v14 }
 0x68e   : > { %v1792_v15 = vpop.xlane.xlu0 %1791 }
 0x68f   : > { %10875 = vrcp.f32 %v1792_v15 }
 0x692   : > { %v2174_v19 = vpop.permute.xlu0 %2173 }
 0x696   : > { %v2328_v21 = vpop.permute.xlu0 %2327 }
 0x699   : > { %v10876_v16 = vpop.eup %10875 }
 0x69a   : > { %v1800_v17 = vmul.f32 %v10876_v16, %v10872_v62 }
 0x69c   : > { %10078 = vmatmul.mubr.msk.f32.vlgmr.msra.gmra.mrb[12].mxu1 %vm1756_vm9, %v1800_v17 }
 0x69d   : > { %10086 = vmatpush3.xpose.msk.msra.mxu1 %vm1442_vm7, %v2174_v19  ;;  %10087 = vmatprep.mubr.msk.f32.mxu1 %vm11132_vm0, %v11131_v0 }
 0x69e   : > { %10095 = vmatprep.subr.mxu1 %v11131_v0 }
 0x6a0   : > { %10088 = vmatmul.mubr.msk.f32.vlgmr.msra.gmra.mrb[14].mxu1 %vm1442_vm7, %v2172_v1 }
 0x6a1   : > { %10096 = vmatpush3.xpose.msk.msra.mxu1 %vm1442_vm7, %v2330_v2  ;;  %10097 = vmatprep.mubr.msk.f32.mxu1 %vm11132_vm0, %v11131_v0 }
 0x6a2   : > { %10105 = vmatprep.subr.mxu1 %v11131_v0 }
 0x6a4   : > { %10098 = vmatmul.mubr.msk.f32.vlgmr.msra.gmra.mrb[16].mxu1 %vm1442_vm7, %v2328_v21 }
 0x6a5   : > { %10107 = vmatprep.mubr.msk.f32.mxu1 %vm11132_vm0, %v11131_v0 }
 0x6c7   : > { %v1762_v22 = vpop.xlane.xlu0 %1761  ;;  %v1783_v23 = vpop.xlane.xlu1 %1782 }
 0x6c8   : > { %v1770_v25 = vsub.f32 %v1753_v9, %v1762_v22  ;;  %10877 = vrcp.f32 %v1783_v23 }
 0x6ca   : > { %v1775_v27 = vmul.f32 1.442695, %v1770_v25 }
 0x6cb   : > { %v1765_v29 = vpop.xlane.xlu0 %1764 }
 0x6cc   : > { %10879 = vpow2.f32 %v1775_v27  ;;  %v1771_v31 = vsub.f32 %v1754_v13, %v1765_v29 }
 0x6ce   : > { %v1777_v33 = vmul.f32 1.442695, %v1771_v31 }
 0x6d0   : > { %10881 = vpow2.f32 %v1777_v33 }
 0x6d2   : > { %v10878_v35 = vpop.eup %10877 }
 0x6d3   : > { %v1797_v37 = vmul.f32 %v10878_v35, %v10874_v10 }
 0x6d5   : > { %10063 = vmatmul.mubr.msk.f32.vlgmr.msra.gmra.mrb[14].mxu0 %vm1756_vm9, %v1797_v37 }
 0x6d6   : > { %v10880_v39 = vpop.eup %10879  ;;  %10066 = vmatpush3.msra.mxu0 %v11701_v30  ;;  %10067 = vmatprep.mubr.msk.f32.mxu0 %vm11132_vm0, %v11131_v0 }
 0x6d7   : > { %v1784_v40 = vsel %vm1756_vm9, %v10880_v39, 0.0  ;;  %10070 = vmatprep.subr.mxu0 %v11131_v0 }
 0x6d8   : > { %1785 = vadd.xlane.f32.xlu0 %v1784_v40 }
 0x6da   : > { %v10882_v41 = vpop.eup %10881 }
 0x6db   : > { %v1787_v42 = vsel %vm1756_vm9, %v10882_v41, 0.0 }
 0x6dc   : > { %1788 = vadd.xlane.f32.xlu1 %v1787_v42 }
 0x6ed   : > { %2093 = vrot.lane.b32.xlu1 %v11693_v24, %s13203_s30 }
 0x6ee   : > { %2095 = vrot.lane.b32.xlu0 %v11693_v24, %s13205_s27 }
 0x6f1   : > { %2251 = vrot.lane.b32.xlu1 %v11705_v32, %s13205_s27  ;;  %s13250_s27 = smov 64  }
 0x6f2   : > { %2249 = vrot.lane.b32.xlu0 %v11705_v32, %s13203_s30 }
 0x765   : > { %v1786_v43 = vpop.xlane.xlu0 %1785 }
 0x766   : > { %10883 = vrcp.f32 %v1786_v43 }
 0x769   : > { %v1789_v44 = vpop.xlane.xlu1 %1788  ;;  %v2096_v61 = vpop.permute.xlu0 %2095 }
 0x76a   : > { %10885 = vrcp.f32 %v1789_v44 }
 0x76d   : > { %v2094_v57 = vpop.permute.xlu1 %2093  ;;  %v2250_v2 = vpop.permute.xlu0 %2249 }
 0x76f   : > { %v11794_v45 = vpop.f32.mrb[12].mxu1 }
 0x770   : > { %v10884_v46 = vpop.eup %10883  ;;  %v10079_v47 = vpop.f32.mrb[13].mxu1 }
 0x771   : > { %v1798_v48 = vmul.f32 %v10884_v46, %v10880_v39  ;;  %v2252_v1 = vpop.permute.xlu1 %2251 }
 0x773   : > { %10068 = vmatmul.mubr.msk.f32.vlgmr.msra.gmra.mrb[16].mxu0 %vm1756_vm9, %v1798_v48  ;;  %v2245_v49 = vpop.f32.mrb[14].mxu1 }
 0x774   : > { %v10886_v50 = vpop.eup %10885  ;;  %10071 = vmatpush3.msra.mxu0 %v11707_v34  ;;  %v2406_v51 = vmul.f32 0.25, %v2245_v49  ;;  %v10089_v52 = vpop.f32.mrb[15].mxu1  ;;  %10072 = vmatprep.mubr.msk.f32.mxu0 %vm11132_vm0, %v11131_v0 }
 0x775   : > { %v1799_v54 = vmul.f32 %v10886_v50, %v10882_v41  ;;  %10080 = vmatprep.subr.mxu0 %v11131_v0 }
 0x776   : > { %v2410_v55 = vadd.f32 %v2406_v51, %v11746_v53 }
 0x777   : > { %10073 = vmatmul.mubr.msk.f32.vlgmr.msra.gmra.mrb[18].mxu0 %vm1756_vm9, %v1799_v54  ;;  %v2401_v56 = vpop.f32.mrb[16].mxu1 }
 0x778   : > { %v2408_v58 = vmul.f32 0.25, %v2401_v56  ;;  %v10099_v59 = vpop.f32.mrb[17].mxu1  ;;  %v2416_v60 = vsel %vm1756_vm9, %v2410_v55, -inf  ;;  %10082 = vmatprep.mubr.msk.f32.mxu0 %vm11132_vm0, %v11131_v0 }
 0x779   : > { %2417 = vmax.xlane.f32.xlu1 %v2416_v60 }
 0x77a   : > { %v2412_v62 = vadd.f32 %v2408_v58, %v11746_v53 }
 0x77b   : > { %10081 = vmatpush3.xpose.msk.msra.mxu0 %vm1442_vm7, %v2096_v61 }
 0x77c   : > { %v2422_v63 = vsel %vm1756_vm9, %v2412_v62, -inf  ;;  %10090 = vmatprep.subr.mxu0 %v11131_v0 }
 0x77d   : > { %2423 = vmax.xlane.f32.xlu0 %v2422_v63 }
 0x77e   : > { %10083 = vmatmul.mubr.msk.f32.vlgmr.msra.gmra.mrb[20].mxu0 %vm1442_vm7, %v2094_v57 }
 0x77f   : > { %10091 = vmatpush3.xpose.msk.msra.mxu0 %vm1442_vm7, %v2252_v1  ;;  %10092 = vmatprep.mubr.msk.f32.mxu0 %vm11132_vm0, %v11131_v0 }
 0x780   : > { %10100 = vmatprep.subr.mxu0 %v11131_v0 }
 0x782   : > { %10093 = vmatmul.mubr.msk.f32.vlgmr.msra.gmra.mrb[22].mxu0 %vm1442_vm7, %v2250_v2 }
 0x783   : > { %10102 = vmatprep.mubr.msk.f32.mxu0 %vm11132_vm0, %v11131_v0 }
 0x78a   : > { %2689 = vrot.lane.b32.xlu1 %v11713_v38, %s13203_s30 }
 0x78e   : > { %2961 = vrot.lane.b32.xlu1 %v11693_v24, %s13201_s3 }
 0x792   : > { %3039 = vrot.lane.b32.xlu1 %v11699_v28, %s13201_s3 }
 0x7a8   : > { %v11824_v3 = vpop.f32.mrb[14].mxu0 }
 0x7a9   : > { %v10064_v5 = vpop.f32.mrb[15].mxu0 }
 0x806   : > { %v2418_v6 = vpop.xlane.xlu1 %2417 }
 0x807   : > { %v2426_v7 = vsub.f32 %v2410_v55, %v2418_v6 }
 0x809   : > { %v2431_v8 = vmul.f32 1.442695, %v2426_v7 }
 0x80a   : > { %v2424_v9 = vpop.xlane.xlu0 %2423  ;;  %v2690_v40 = vpop.permute.xlu1 %2689 }
 0x80b   : > { %10887 = vpow2.f32 %v2431_v8  ;;  %v2428_v10 = vsub.f32 %v2412_v62, %v2424_v9 }
 0x80d   : > { %v2435_v11 = vmul.f32 1.442695, %v2428_v10 }
 0x80e   : > { %v2962_v41 = vpop.permute.xlu1 %2961 }
 0x80f   : > { %10889 = vpow2.f32 %v2435_v11 }
 0x812   : > { %v3040_v42 = vpop.permute.xlu1 %3039 }
 0x815   : > { %v10888_v12 = vpop.eup %10887 }
 0x816   : > { %v2440_v13 = vsel %vm1756_vm9, %v10888_v12, 0.0 }
 0x817   : > { %2441 = vadd.xlane.f32.xlu0 %v2440_v13 }
 0x819   : > { %v10890_v14 = vpop.eup %10889 }
 0x81a   : > { %v2446_v15 = vsel %vm1756_vm9, %v10890_v14, 0.0 }
 0x81b   : > { %2447 = vadd.xlane.f32.xlu1 %v2446_v15 }
 0x82c   : > { %3117 = vrot.lane.b32.xlu1 %v11705_v32, %s13201_s3 }
 0x82d   : > { %2535 = vrot.lane.b32.xlu0 %v11701_v30, %s13203_s30 }
 0x830   : > { %3195 = vrot.lane.b32.xlu1 %v11711_v36, %s13201_s3  ;;  %s13251_s3 = smov 48  }
 0x831   : > { %2959 = vrot.lane.b32.xlu0 %v11693_v24, %s13213_s6 }
 0x835   : > { %3037 = vrot.lane.b32.xlu0 %v11699_v28, %s13213_s6 }
 0x839   : > { %3115 = vrot.lane.b32.xlu0 %v11705_v32, %s13213_s6 }
 0x83d   : > { %3193 = vrot.lane.b32.xlu0 %v11711_v36, %s13213_s6 }
 0x846   : > { %v11842_v16 = vpop.f32.mrb[16].mxu0 }
 0x847   : > { %v10069_v17 = vpop.f32.mrb[17].mxu0 }
 0x84a   : > { %v11844_v19 = vpop.f32.mrb[18].mxu0 }
 0x84b   : > { %v10074_v21 = vpop.f32.mrb[19].mxu0 }
 0x851   : > { %v2167_v22 = vpop.f32.mrb[20].mxu0 }
 0x852   : > { %v2405_v23 = vmul.f32 0.25, %v2167_v22  ;;  %v10084_v25 = vpop.f32.mrb[21].mxu0 }
 0x854   : > { %v2409_v27 = vadd.f32 %v2405_v23, %v11746_v53 }
 0x855   : > { %v2323_v29 = vpop.f32.mrb[22].mxu0 }
 0x856   : > { %v2407_v31 = vmul.f32 0.25, %v2323_v29  ;;  %v10094_v33 = vpop.f32.mrb[23].mxu0  ;;  %v2413_v35 = vsel %vm1756_vm9, %v2409_v27, -inf }
 0x857   : > { %2414 = vmax.xlane.f32.xlu1 %v2413_v35 }
 0x858   : > { %v2411_v37 = vadd.f32 %v2407_v31, %v11746_v53 }
 0x85a   : > { %v2419_v39 = vsel %vm1756_vm9, %v2411_v37, -inf }
 0x85c   : > { %2420 = vmax.xlane.f32.xlu0 %v2419_v39 }
 0x8a4   : > { %v2442_v43 = vpop.xlane.xlu0 %2441 }
 0x8a5   : > { %10891 = vrcp.f32 %v2442_v43 }
 0x8a8   : > { %v2536_v44 = vpop.permute.xlu0 %2535  ;;  %v2448_v46 = vpop.xlane.xlu1 %2447 }
 0x8a9   : > { %10893 = vrcp.f32 %v2448_v46  ;;  %10106 = vmatpush3.msra.mxu1 %v2536_v44 }
 0x8aa   : > { %10115 = vmatprep.subr.mxu1 %v11131_v0 }
 0x8ac   : > { %v2960_v51 = vpop.permute.xlu0 %2959  ;;  %v3118_v54 = vpop.permute.xlu1 %3117 }
 0x8af   : > { %v10892_v47 = vpop.eup %10891 }
 0x8b0   : > { %v2454_v48 = vmul.f32 %v10892_v47, %v10888_v12  ;;  %v3038_v52 = vpop.permute.xlu0 %3037  ;;  %v3196_v56 = vpop.permute.xlu1 %3195 }
 0x8b2   : > { %10108 = vmatmul.mubr.msk.f32.vlgmr.msra.gmra.mrb[18].mxu1 %vm1756_vm9, %v2454_v48 }
 0x8b3   : > { %v10894_v49 = vpop.eup %10893  ;;  %10116 = vmatpush3.msra.mxu1 %v2690_v40  ;;  %10117 = vmatprep.mubr.msk.f32.mxu1 %vm11132_vm0, %v11131_v0 }
 0x8b4   : > { %v2456_v50 = vmul.f32 %v10894_v49, %v10890_v14  ;;  %10140 = vmatprep.subr.mxu1 %v11131_v0  ;;  %v3116_v55 = vpop.permute.xlu0 %3115 }
 0x8b6   : > { %10118 = vmatmul.mubr.msk.f32.vlgmr.msra.gmra.mrb[20].mxu1 %vm1756_vm9, %v2456_v50 }
 0x8b7   : > { %10142 = vmatprep.mubr.msk.f32.mxu1 %vm11132_vm0, %v11131_v0 }
 0x8b8   : > { %v3194_v57 = vpop.permute.xlu0 %3193 }
 0x8ba   : > { %10141 = vmatpush3.xpose.msk.msra.mxu1 %vm1442_vm7, %v2962_v41 }
 0x8bb   : > { %10145 = vmatprep.subr.mxu1 %v11131_v0 }
 0x8bd   : > { %10143 = vmatmul.mubr.msk.f32.vlgmr.msra.gmra.mrb[22].mxu1 %vm1442_vm7, %v2960_v51 }
 0x8be   : > { %10146 = vmatpush3.xpose.msk.msra.mxu1 %vm1442_vm7, %v3040_v42  ;;  %10147 = vmatprep.mubr.msk.f32.mxu1 %vm11132_vm0, %v11131_v0 }
 0x8bf   : > { %10150 = vmatprep.subr.mxu1 %v11131_v0 }
 0x8c1   : > { %10148 = vmatmul.mubr.msk.f32.vlgmr.msra.gmra.mrb[24].mxu1 %vm1442_vm7, %v3038_v52  ;;  %v1433_v52 = vld [vmem:[%s13249_s10 + $0x10] sm:$0xff] }
 0x8c2   : > { %10151 = vmatpush3.xpose.msk.msra.mxu1 %vm1442_vm7, %v3118_v54  ;;  %10152 = vmatprep.mubr.msk.f32.mxu1 %vm11132_vm0, %v11131_v0  ;;  %v1434_v54 = vld [vmem:[%s13249_s10 + $0x18] sm:$0xff] }
 0x8c3   : > { %10155 = vmatprep.subr.mxu1 %v11131_v0 }
 0x8c5   : > { %10153 = vmatmul.mubr.msk.f32.vlgmr.msra.gmra.mrb[26].mxu1 %vm1442_vm7, %v3116_v55  ;;  %v10610_v55 = vpack.c.bf16 %v1434_v54, %v1433_v52 }
 0x8c6   : > { %10156 = vmatpush3.xpose.msk.msra.mxu1 %vm1442_vm7, %v3196_v56  ;;  %10157 = vmatprep.mubr.msk.f32.mxu1 %vm11132_vm0, %v11131_v0  ;;  %v1431_v56 = vld [vmem:[%s13249_s10] sm:$0xff] }
 0x8c7   : > { %10165 = vmatprep.subr.mxu1 %v11131_v0 }
 0x8c9   : > { %10158 = vmatmul.mubr.msk.f32.vlgmr.msra.gmra.mrb[28].mxu1 %vm1442_vm7, %v3194_v57  ;;  %v1432_v57 = vld [vmem:[%s13249_s10 + $0x8] sm:$0xff] }
 0x8ca   : > { %10167 = vmatprep.mubr.msk.f32.mxu1 %vm11132_vm0, %v11131_v0 }
 0x8e4   : > { %v2415_v58 = vpop.xlane.xlu1 %2414 }
 0x8e5   : > { %v2425_v59 = vsub.f32 %v2409_v27, %v2415_v58  ;;  %v10614_v58 = vpack.c.bf16 %v1432_v57, %v1431_v56 }
 0x8e7   : > { %v2429_v60 = vmul.f32 1.442695, %v2425_v59 }
 0x8e9   : > { %10895 = vpow2.f32 %v2429_v60  ;;  %v2421_v61 = vpop.xlane.xlu0 %2420 }
 0x8ea   : > { %v2427_v62 = vsub.f32 %v2411_v37, %v2421_v61 }
 0x8ec   : > { %v2433_v63 = vmul.f32 1.442695, %v2427_v62 }
 0x8ee   : > { %10897 = vpow2.f32 %v2433_v63 }
 0x8f3   : > { %v10896_v1 = vpop.eup %10895 }
 0x8f4   : > { %v2437_v2 = vsel %vm1756_vm9, %v10896_v1, 0.0 }
 0x8f5   : > { %2438 = vadd.xlane.f32.xlu0 %v2437_v2 }
 0x8f8   : > { %v10898_v5 = vpop.eup %10897 }
 0x8f9   : > { %v2443_v6 = vsel %vm1756_vm9, %v10898_v5, 0.0 }
 0x8fa   : > { %2444 = vadd.xlane.f32.xlu1 %v2443_v6 }
 0x90b   : > { %2458 = vrot.lane.b32.xlu0 %v11695_v26, %s13203_s30  ;;  %2612 = vrot.lane.b32.xlu1 %v11707_v34, %s13203_s30  ;;  %s13209_s30 = smov 80  }
 0x982   : > { %v2439_v7 = vpop.xlane.xlu0 %2438 }
 0x983   : > { %10899 = vrcp.f32 %v2439_v7 }
 0x985   : > { %v11884_v8 = vpop.f32.mrb[18].mxu1 }
 0x986   : > { %v2459_v9 = vpop.permute.xlu0 %2458  ;;  %v10109_v10 = vpop.f32.mrb[19].mxu1 }
 0x987   : > { %10101 = vmatpush3.msra.mxu0 %v2459_v9  ;;  %v2445_v11 = vpop.xlane.xlu1 %2444 }
 0x988   : > { %10901 = vrcp.f32 %v2445_v11  ;;  %10110 = vmatprep.subr.mxu0 %v11131_v0 }
 0x989   : > { %v11887_v12 = vpop.f32.mrb[20].mxu1 }
 0x98a   : > { %v10119_v13 = vpop.f32.mrb[21].mxu1 }
 0x98b   : > { %v2613_v17 = vpop.permute.xlu1 %2612 }
 0x98d   : > { %v10900_v14 = vpop.eup %10899 }
 0x98e   : > { %v2453_v15 = vmul.f32 %v10900_v14, %v10896_v1 }
 0x990   : > { %10103 = vmatmul.mubr.msk.f32.vlgmr.msra.gmra.mrb[24].mxu0 %vm1756_vm9, %v2453_v15  ;;  %v3033_v21 = vpop.f32.mrb[22].mxu1 }
 0x991   : > { %10111 = vmatpush3.msra.mxu0 %v2613_v17  ;;  %v3271_v22 = vmul.f32 0.25, %v3033_v21  ;;  %v10144_v23 = vpop.f32.mrb[23].mxu1  ;;  %10112 = vmatprep.mubr.msk.f32.mxu0 %vm11132_vm0, %v11131_v0 }
 0x992   : > { %v10902_v25 = vpop.eup %10901  ;;  %10611 = vmatprep.subr.bf16.mxu0 %v10610_v55 }
 0x993   : > { %v3275_v27 = vadd.f32 %v3271_v22, %v11746_v53  ;;  %v2455_v29 = vmul.f32 %v10902_v25, %v10898_v5 }
 0x994   : > { %v3111_v31 = vpop.f32.mrb[24].mxu1 }
 0x995   : > { %v3272_v33 = vmul.f32 0.25, %v3111_v31  ;;  %v10149_v35 = vpop.f32.mrb[25].mxu1  ;;  %v3279_v37 = vsel %vm1756_vm9, %v3275_v27, -inf  ;;  %10113 = vmatmul.mubr.msk.f32.vlgmr.msra.gmra.mrb[26].mxu0 %vm1756_vm9, %v2455_v29 }
 0x996   : > { %3280 = vmax.xlane.f32.xlu1 %v3279_v37  ;;  %10613 = vmatpush3.bf16.msra.mxu0 %v10610_v55 }
 0x997   : > { %v3276_v39 = vadd.f32 %v3272_v33, %v11746_v53  ;;  %10615 = vmatprep.subr.bf16.mxu0 %v10614_v58 }
 0x998   : > { %v3189_v40 = vpop.f32.mrb[26].mxu1 }
 0x999   : > { %v3273_v41 = vmul.f32 0.25, %v3189_v40  ;;  %v10154_v42 = vpop.f32.mrb[27].mxu1  ;;  %v3282_v43 = vsel %vm1756_vm9, %v3276_v39, -inf }
 0x99a   : > { %3283 = vmax.xlane.f32.xlu0 %v3282_v43 }
 0x99b   : > { %v3277_v44 = vadd.f32 %v3273_v41, %v11746_v53 }
 0x99c   : > { %v3267_v46 = vpop.f32.mrb[28].mxu1 }
 0x99d   : > { %v3274_v47 = vmul.f32 0.25, %v3267_v46  ;;  %v10159_v48 = vpop.f32.mrb[29].mxu1  ;;  %v3285_v49 = vsel %vm1756_vm9, %v3277_v44, -inf }
 0x99e   : > { %3286 = vmax.xlane.f32.xlu0 %v3285_v49 }
 0x99f   : > { %v3278_v50 = vadd.f32 %v3274_v47, %v11746_v53 }
 0x9a1   : > { %v3288_v51 = vsel %vm1756_vm9, %v3278_v50, -inf }
 0x9a2   : > { %3289 = vmax.xlane.f32.xlu1 %v3288_v51 }
 0x9b3   : > { %3399 = vrot.lane.b32.xlu1 %v11701_v30, %s13213_s6 }
 0x9b4   : > { %3323 = vrot.lane.b32.xlu0 %v11695_v26, %s13213_s6 }
 0xa23   : > { %v3281_v59 = vpop.xlane.xlu1 %3280 }
 0xa24   : > { %v3291_v60 = vsub.f32 %v3275_v27, %v3281_v59 }
 0xa26   : > { %v3295_v61 = vmul.f32 1.442695, %v3291_v60 }
 0xa27   : > { %v3284_v62 = vpop.xlane.xlu0 %3283 }
 0xa28   : > { %10903 = vpow2.f32 %v3295_v61  ;;  %v3292_v63 = vsub.f32 %v3276_v39, %v3284_v62 }
 0xa2a   : > { %v3297_v1 = vmul.f32 1.442695, %v3292_v63 }
 0xa2b   : > { %v3287_v2 = vpop.xlane.xlu0 %3286 }
 0xa2c   : > { %10905 = vpow2.f32 %v3297_v1  ;;  %v3293_v5 = vsub.f32 %v3277_v44, %v3287_v2 }
 0xa2e   : > { %v3299_v6 = vmul.f32 1.442695, %v3293_v5 }
 0xa2f   : > { %v3290_v7 = vpop.xlane.xlu1 %3289 }
 0xa30   : > { %10907 = vpow2.f32 %v3299_v6  ;;  %v3294_v9 = vsub.f32 %v3278_v50, %v3290_v7 }
 0xa32   : > { %v10904_v10 = vpop.eup %10903  ;;  %v3301_v11 = vmul.f32 1.442695, %v3294_v9 }
 0xa33   : > { %v3400_v13 = vpop.permute.xlu1 %3399  ;;  %v3303_v14 = vsel %vm1756_vm9, %v10904_v10, 0.0 }
 0xa34   : > { %10909 = vpow2.f32 %v3301_v11  ;;  %3304 = vadd.xlane.f32.xlu0 %v3303_v14  ;;  %10166 = vmatpush3.msra.mxu1 %v3400_v13 }
 0xa35   : > { %10175 = vmatprep.subr.mxu1 %v11131_v0 }
 0xa36   : > { %v10906_v15 = vpop.eup %10905 }
 0xa37   : > { %v3306_v17 = vsel %vm1756_vm9, %v10906_v15, 0.0 }
 0xa38   : > { %3307 = vadd.xlane.f32.xlu1 %v3306_v17 }
 0xa3a   : > { %v10908_v21 = vpop.eup %10907 }
 0xa3b   : > { %v3309_v22 = vsel %vm1756_vm9, %v10908_v21, 0.0 }
 0xa3c   : > { %3310 = vadd.xlane.f32.xlu0 %v3309_v22 }
 0xa3e   : > { %v11921_v23 = vpop.eup %10909 }
 0xa3f   : > { %v3312_v25 = vsel %vm1756_vm9, %v11921_v23, 0.0 }
 0xa40   : > { %3313 = vadd.xlane.f32.xlu1 %v3312_v25 }
 0xa51   : > { %3475 = vrot.lane.b32.xlu1 %v11707_v34, %s13213_s6 }
 0xa52   : > { %3551 = vrot.lane.b32.xlu0 %v11713_v38, %s13213_s6 }
 0xa55   : > { %3730 = vrot.lane.b32.xlu1 %v11693_v24, %s13211_s29 }
 0xa56   : > { %3728 = vrot.lane.b32.xlu0 %v11693_v24, %s13209_s30 }
 0xa59   : > { %3808 = vrot.lane.b32.xlu1 %v11699_v28, %s13211_s29 }
 0xa5a   : > { %3806 = vrot.lane.b32.xlu0 %v11699_v28, %s13209_s30 }
 0xa5d   : > { %3886 = vrot.lane.b32.xlu1 %v11705_v32, %s13211_s29 }
 0xa5e   : > { %3964 = vrot.lane.b32.xlu0 %v11711_v36, %s13211_s29  ;;  %s13254_s29 = smov 96  }
 0xa61   : > { %3884 = vrot.lane.b32.xlu1 %v11705_v32, %s13209_s30  ;;  %v3324_v32 = vpop.permute.xlu0 %3323 }
 0xa62   : > { %3962 = vrot.lane.b32.xlu0 %v11711_v36, %s13209_s30 }
 0xa63   : > { %v2530_v27 = vpop.f32.mrb[24].mxu0 }
 0xa64   : > { %v10104_v24 = vpop.f32.mrb[25].mxu0  ;;  %10124 = vmatprep.mubr.msk.f32.mxu0 %vm1442_vm7, %v2530_v27 }
 0xa65   : > { %10125 = vmatmul.mubr.msk.f32.vlgmr.msra.gmra.mrb[28].mxu0 %vm1442_vm7, %v11884_v8 }
 0xa66   : > { %10617 = vmatpush3.bf16.msra.mxu0 %v10614_v58 }
 0xa67   : > { %10160 = vmatprep.subr.mxu0 %v11131_v0 }
 0xa68   : > { %v2684_v28 = vpop.f32.mrb[26].mxu0 }
 0xa69   : > { %v10114_v29 = vpop.f32.mrb[27].mxu0  ;;  %10127 = vmatprep.mubr.msk.f32.mxu0 %vm1442_vm7, %v2684_v28 }
 0xa6a   : > { %10128 = vmatmul.mubr.msk.f32.gmra.mrb[30].mxu0 %vm1442_vm7, %v11887_v12 }
 0xa6b   : > { %10134 = vmatprep.mubr.msk.f32.mxu0 %vm1442_vm7, %v11824_v3 }
 0xa6e   : > { %10135 = vmatmul.mubr.msk.f32.vlgmr.msra.gmra.mrb[28].mxu0 %vm1442_vm7, %v11842_v16  ;;  %v1435_v16 = vld [vmem:[%s13249_s10 + $0x20] sm:$0xff] }
 0xa6f   : > { %10161 = vmatpush3.msra.mxu0 %v3324_v32  ;;  %10137 = vmatprep.mubr.msk.f32.mxu0 %vm1442_vm7, %v11844_v19  ;;  %v1436_v19 = vld [vmem:[%s13249_s10 + $0x28] sm:$0xff] }
 0xa70   : > { %10170 = vmatprep.subr.mxu0 %v11131_v0  ;;  %v10618_v35 = vpack.c.bf16 %v1436_v19, %v1435_v16 }
 0xa72   : > { %10138 = vmatmul.mubr.msk.f32.gmra.mrb[30].mxu0 %vm1442_vm7, %v11794_v45 }
 0xa73   : > { %10162 = vmatprep.mubr.msk.f32.mxu0 %vm11132_vm0, %v11131_v0 }
 0xac1   : > { %v3305_v36 = vpop.xlane.xlu0 %3304 }
 0xac2   : > { %10911 = vrcp.f32 %v3305_v36 }
 0xac5   : > { %v3308_v8 = vpop.xlane.xlu1 %3307 }
 0xac6   : > { %10913 = vrcp.f32 %v3308_v8 }
 0xac9   : > { %v3311_v3 = vpop.xlane.xlu0 %3310 }
 0xaca   : > { %10915 = vrcp.f32 %v3311_v3 }
 0xacc   : > { %v10912_v12 = vpop.eup %10911 }
 0xacd   : > { %v3319_v31 = vmul.f32 %v10912_v12, %v10904_v10  ;;  %v3314_v45 = vpop.xlane.xlu1 %3313  ;;  %v3552_v33 = vpop.permute.xlu0 %3551 }
 0xace   : > { %10917 = vrcp.f32 %v3314_v45 }
 0xacf   : > { %10163 = vmatmul.mubr.msk.f32.vlgmr.msra.gmra.mrb[32].mxu0 %vm1756_vm9, %v3319_v31 }
 0xad0   : > { %v10914_v37 = vpop.eup %10913  ;;  %10172 = vmatprep.mubr.msk.f32.mxu0 %vm11132_vm0, %v11131_v0 }
 0xad1   : > { %v3476_v39 = vpop.permute.xlu1 %3475  ;;  %v3320_v40 = vmul.f32 %v10914_v37, %v10906_v15  ;;  %v3729_v42 = vpop.permute.xlu0 %3728 }
 0xad2   : > { %10171 = vmatpush3.msra.mxu0 %v3476_v39 }
 0xad3   : > { %10168 = vmatmul.mubr.msk.f32.vlgmr.msra.gmra.mrb[30].mxu1 %vm1756_vm9, %v3320_v40  ;;  %10619 = vmatprep.subr.bf16.mxu0 %v10618_v35 }
 0xad4   : > { %v10916_v41 = vpop.eup %10915  ;;  %10176 = vmatpush3.msra.mxu1 %v3552_v33  ;;  %10177 = vmatprep.mubr.msk.f32.mxu1 %vm11132_vm0, %v11131_v0 }
 0xad5   : > { %v3321_v43 = vmul.f32 %v10916_v41, %v10908_v21  ;;  %10190 = vmatprep.subr.mxu1 %v11131_v0  ;;  %v3731_v46 = vpop.permute.xlu1 %3730  ;;  %v3807_v48 = vpop.permute.xlu0 %3806 }
 0xad7   : > { %10173 = vmatmul.mubr.msk.f32.vlgmr.msra.gmra.mrb[34].mxu0 %vm1756_vm9, %v3321_v43 }
 0xad8   : > { %v10918_v44 = vpop.eup %10917  ;;  %10621 = vmatpush3.bf16.msra.mxu0 %v10618_v35 }
 0xad9   : > { %v3322_v47 = vmul.f32 %v10918_v44, %v11921_v23  ;;  %10200 = vmatprep.subr.mxu0 %v11131_v0  ;;  %v3809_v49 = vpop.permute.xlu1 %3808  ;;  %v3965_v50 = vpop.permute.xlu0 %3964 }
 0xadb   : > { %10178 = vmatmul.mubr.msk.f32.vlgmr.msra.gmra.mrb[32].mxu1 %vm1756_vm9, %v3322_v47 }
 0xadc   : > { %10191 = vmatpush3.xpose.msk.msra.mxu1 %vm1442_vm7, %v3731_v46  ;;  %10192 = vmatprep.mubr.msk.f32.mxu1 %vm11132_vm0, %v11131_v0 }
 0xadd   : > { %10195 = vmatprep.subr.mxu1 %v11131_v0  ;;  %v3963_v51 = vpop.permute.xlu0 %3962  ;;  %v3887_v56 = vpop.permute.xlu1 %3886 }
 0xadf   : > { %10193 = vmatmul.mubr.msk.f32.vlgmr.msra.gmra.mrb[34].mxu1 %vm1442_vm7, %v3729_v42 }
 0xae0   : > { %10196 = vmatpush3.xpose.msk.msra.mxu1 %vm1442_vm7, %v3809_v49  ;;  %10197 = vmatprep.mubr.msk.f32.mxu1 %vm11132_vm0, %v11131_v0 }
 0xae1   : > { %10205 = vmatprep.subr.mxu1 %v11131_v0  ;;  %v3885_v62 = vpop.permute.xlu1 %3884 }
 0xae3   : > { %10198 = vmatmul.mubr.msk.f32.vlgmr.msra.gmra.mrb[36].mxu1 %vm1442_vm7, %v3807_v48 }
 0xae4   : > { %10206 = vmatpush3.xpose.msk.msra.mxu1 %vm1442_vm7, %v3965_v50  ;;  %10207 = vmatprep.mubr.msk.f32.mxu1 %vm11132_vm0, %v11131_v0 }
 0xae5   : > { %10215 = vmatprep.subr.mxu1 %v11131_v0 }
 0xae7   : > { %10208 = vmatmul.mubr.msk.f32.vlgmr.msra.gmra.mrb[38].mxu1 %vm1442_vm7, %v3963_v51 }
 0xae8   : > { %10217 = vmatprep.mubr.msk.f32.mxu1 %vm11132_vm0, %v11131_v0 }
 0xba2   : > { %v3395_v52 = vpop.f32.mrb[32].mxu0 }
 0xba3   : > { %v10164_v54 = vpop.f32.mrb[33].mxu0  ;;  %10184 = vmatprep.mubr.msk.f32.mxu0 %vm1442_vm7, %v3395_v52 }
 0xba6   : > { %v3471_v55 = vpop.f32.mrb[30].mxu1 }
 0xba7   : > { %v10169_v57 = vpop.f32.mrb[31].mxu1  ;;  %10185 = vmatmul.mubr.msk.f32.vlgmr.msra.gmra.mrb[28].mxu0 %vm1442_vm7, %v3471_v55  ;;  %v1437_v55 = vld [vmem:[%s13249_s10 + $0x30] sm:$0xff] }
 0xba8   : > { %10201 = vmatpush3.xpose.msk.msra.mxu0 %vm1442_vm7, %v3887_v56  ;;  %v1438_v56 = vld [vmem:[%s13249_s10 + $0x38] sm:$0xff] }
 0xba9   : > { %10210 = vmatprep.subr.mxu0 %v11131_v0  ;;  %v10622_v57 = vpack.c.bf16 %v1438_v56, %v1437_v55  ;;  %v4595_v56 = vld [vmem:[%s13177_s14 + $0x48] sm:$0xff] }
 0xbaa   : > { %v3547_v58 = vpop.f32.mrb[34].mxu0 }
 0xbab   : > { %v10174_v59 = vpop.f32.mrb[35].mxu0  ;;  %10187 = vmatprep.mubr.msk.f32.mxu0 %vm1442_vm7, %v3547_v58 }
 0xbae   : > { %v3623_v60 = vpop.f32.mrb[32].mxu1 }
 0xbaf   : > { %v10179_v61 = vpop.f32.mrb[33].mxu1  ;;  %10188 = vmatmul.mubr.msk.f32.gmra.mrb[30].mxu0 %vm1442_vm7, %v3623_v60 }
 0xbb0   : > { %10202 = vmatprep.mubr.msk.f32.mxu0 %vm11132_vm0, %v11131_v0 }
 0xbb2   : > { %v3802_v63 = vpop.f32.mrb[34].mxu1 }
 0xbb3   : > { %v4040_v1 = vmul.f32 0.25, %v3802_v63  ;;  %v10194_v2 = vpop.f32.mrb[35].mxu1  ;;  %10203 = vmatmul.mubr.msk.f32.vlgmr.msra.gmra.mrb[36].mxu0 %vm1442_vm7, %v3885_v62 }
 0xbb4   : > { %10212 = vmatprep.mubr.msk.f32.mxu0 %vm11132_vm0, %v11131_v0 }
 0xbb5   : > { %v4044_v5 = vadd.f32 %v4040_v1, %v11746_v53 }
 0xbb6   : > { %v3880_v6 = vpop.f32.mrb[36].mxu1 }
 0xbb7   : > { %v4041_v7 = vmul.f32 0.25, %v3880_v6  ;;  %v10199_v9 = vpop.f32.mrb[37].mxu1  ;;  %v4048_v10 = vsel %vm1756_vm9, %v4044_v5, -inf }
 0xbb8   : > { %4049 = vmax.xlane.f32.xlu1 %v4048_v10 }
 0xbb9   : > { %v4045_v11 = vadd.f32 %v4041_v7, %v11746_v53 }
 0xbba   : > { %v4036_v13 = vpop.f32.mrb[38].mxu1 }
 0xbbb   : > { %v4043_v14 = vmul.f32 0.25, %v4036_v13  ;;  %v10209_v15 = vpop.f32.mrb[39].mxu1  ;;  %v4051_v17 = vsel %vm1756_vm9, %v4045_v11, -inf  ;;  %v9357_v13 = vld [vmem:[%s13174_s11] ss:$0 sm:$0xff] }
 0xbbc   : > { %4052 = vmax.xlane.f32.xlu0 %v4051_v17 }
 0xbbd   : > { %v4047_v21 = vadd.f32 %v4043_v14, %v11746_v53  ;;  %v11063_v14 = vld [vmem:[#allocation2 + $0x8] sm:$0xff] }
 0xbbf   : > { %v4057_v22 = vsel %vm1756_vm9, %v4047_v21, -inf }
 0xbc0   : > { %4058 = vmax.xlane.f32.xlu1 %v4057_v22 }
 0xc45   : > { %v4050_v23 = vpop.xlane.xlu1 %4049 }
 0xc46   : > { %v4060_v16 = vsub.f32 %v4044_v5, %v4050_v23 }
 0xc48   : > { %v4064_v19 = vmul.f32 1.442695, %v4060_v16 }
 0xc49   : > { %v4053_v25 = vpop.xlane.xlu0 %4052 }
 0xc4a   : > { %v4061_v27 = vsub.f32 %v4045_v11, %v4053_v25 }
 0xc4c   : > { %v4066_v24 = vmul.f32 1.442695, %v4061_v27 }
 0xc4d   : > { %v4059_v28 = vpop.xlane.xlu1 %4058 }
 0xc4e   : > { %10919 = vpow2.f32 %v4066_v24  ;;  %v4063_v29 = vsub.f32 %v4047_v21, %v4059_v28  ;;  %v11064_v21 = vld [vmem:[#allocation2] sm:$0xff] }
 0xc50   : > { %v4070_v32 = vmul.f32 1.442695, %v4063_v29 }
 0xc52   : > { %10921 = vpow2.f32 %v4070_v32 }
 0xc53   : > { %10923 = vpow2.f32 %v4064_v19 }
 0xc58   : > { %v10920_v36 = vpop.eup %10919 }
 0xc59   : > { %v4075_v8 = vsel %vm1756_vm9, %v10920_v36, 0.0 }
 0xc5a   : > { %4076 = vadd.xlane.f32.xlu1 %v4075_v8 }
 0xc5c   : > { %v10922_v3 = vpop.eup %10921 }
 0xc5d   : > { %v4081_v12 = vsel %vm1756_vm9, %v10922_v3, 0.0  ;;  %v10924_v39 = vpop.eup %10923 }
 0xc5e   : > { %4082 = vadd.xlane.f32.xlu1 %v4081_v12  ;;  %v4072_v40 = vsel %vm1756_vm9, %v10924_v39, 0.0  ;;  %v11065_v12 = vld [vmem:[#allocation2 + $0x18] sm:$0xff] }
 0xc6f   : > { %4168 = vrot.lane.b32.xlu1 %v11701_v30, %s13209_s30 }
 0xc73   : > { %4244 = vrot.lane.b32.xlu1 %v11707_v34, %s13209_s30 }
 0xc86   : > { %v3958_v31 = vpop.f32.mrb[36].mxu0 }
 0xc87   : > { %v4042_v45 = vmul.f32 0.25, %v3958_v31  ;;  %v10204_v33 = vpop.f32.mrb[37].mxu0 }
 0xc89   : > { %v4046_v35 = vadd.f32 %v4042_v45, %v11746_v53  ;;  %v11066_v45 = vld [vmem:[#allocation2 + $0x10] sm:$0xff] }
 0xc8b   : > { %v4054_v37 = vsel %vm1756_vm9, %v4046_v35, -inf }
 0xc8c   : > { %4055 = vmax.xlane.f32.xlu0 %v4054_v37 }
 0xc90   : > { %4073 = vadd.xlane.f32.xlu0 %v4072_v40 }
 0xca6   : > { %4092 = vrot.lane.b32.xlu0 %v11695_v26, %s13209_s30 }
 0xce7   : > { %v4077_v30 = vpop.xlane.xlu1 %4076 }
 0xce8   : > { %10925 = vrcp.f32 %v4077_v30 }
 0xceb   : > { %v4083_v34 = vpop.xlane.xlu1 %4082 }
 0xcef   : > { %v4169_v41 = vpop.permute.xlu1 %4168 }
 0xcf0   : > { %10216 = vmatpush3.msra.mxu1 %v4169_v41 }
 0xcf1   : > { %10225 = vmatprep.subr.mxu1 %v11131_v0 }
 0xcf2   : > { %v10926_v42 = vpop.eup %10925 }
 0xcf3   : > { %v4089_v43 = vmul.f32 %v10926_v42, %v10920_v36  ;;  %v4245_v54 = vpop.permute.xlu1 %4244 }
 0xcf5   : > { %10218 = vmatmul.mubr.msk.f32.vlgmr.msra.gmra.mrb[40].mxu1 %vm1756_vm9, %v4089_v43  ;;  %v4587_v43 = vld [vmem:[%s13177_s14 + $0x8] sm:$0xff] }
 0xcf6   : > { %10227 = vmatprep.mubr.msk.f32.mxu1 %vm11132_vm0, %v11131_v0 }
 0xd19   : > { %v4056_v44 = vpop.xlane.xlu0 %4055 }
 0xd1a   : > { %v4062_v46 = vsub.f32 %v4046_v35, %v4056_v44  ;;  %v4589_v44 = vld [vmem:[%s13177_s14 + $0x18] sm:$0xff] }
 0xd1c   : > { %v4068_v47 = vmul.f32 1.442695, %v4062_v46  ;;  %v10626_v46 = vpack.c.bf16 %v4589_v44, %v4587_v43  ;;  %v4805_v44 = vld [vmem:[%s13179_s16 + $0x90] sm:$0xff] }
 0xd1d   : > { %v4074_v48 = vpop.xlane.xlu0 %4073 }
 0xd1e   : > { %10927 = vpow2.f32 %v4068_v47  ;;  %v4586_v47 = vld [vmem:[%s13177_s14] sm:$0xff] }
 0xd1f   : > { %10929 = vrcp.f32 %v4074_v48  ;;  %v4588_v48 = vld [vmem:[%s13177_s14 + $0x10] sm:$0xff] }
 0xd20   : > { %10931 = vrcp.f32 %v4083_v34 }
 0xd21   : > { %v4093_v26 = vpop.permute.xlu0 %4092 }
 0xd22   : > { %10211 = vmatpush3.msra.mxu0 %v4093_v26  ;;  %v10628_v26 = vpack.c.bf16 %v4588_v48, %v4586_v47  ;;  %v4789_v48 = vld [vmem:[%s13179_s16 + $0x10] sm:$0xff] }
 0xd23   : > { %10220 = vmatprep.subr.mxu0 %v11131_v0 }
 0xd28   : > { %v10928_v49 = vpop.eup %10927 }
 0xd29   : > { %v10930_v50 = vpop.eup %10929  ;;  %v4078_v51 = vsel %vm1756_vm9, %v10928_v49, 0.0 }
 0xd2a   : > { %4079 = vadd.xlane.f32.xlu0 %v4078_v51  ;;  %v4088_v52 = vmul.f32 %v10930_v50, %v10924_v39  ;;  %v10932_v59 = vpop.eup %10931  ;;  %v4593_v50 = vld [vmem:[%s13177_s14 + $0x38] sm:$0xff] }
 0xd2b   : > { %v4091_v61 = vmul.f32 %v10932_v59, %v10922_v3  ;;  %v4594_v59 = vld [vmem:[%s13177_s14 + $0x40] sm:$0xff] }
 0xd2c   : > { %10213 = vmatmul.mubr.msk.f32.vlgmr.msra.gmra.mrb[38].mxu0 %vm1756_vm9, %v4088_v52  ;;  %v4590_v52 = vld [vmem:[%s13177_s14 + $0x20] sm:$0xff] }
 0xd2d   : > { %10221 = vmatpush3.msra.mxu0 %v4245_v54  ;;  %10222 = vmatprep.mubr.msk.f32.mxu0 %vm11132_vm0, %v11131_v0  ;;  %v4592_v54 = vld [vmem:[%s13177_s14 + $0x30] sm:$0xff] }
 0xd2e   : > { %10623 = vmatprep.subr.bf16.mxu0 %v10622_v57  ;;  %v10632_v55 = vpack.c.bf16 %v4592_v54, %v4590_v52  ;;  %v4791_v54 = vld [vmem:[%s13179_s16 + $0x20] sm:$0xff] }
 0xd40   : > { %4320 = vrot.lane.b32.xlu0 %v11713_v38, %s13209_s30  ;;  %s13256_s30 = smov 80  }
 0xdb7   : > { %v4080_v58 = vpop.xlane.xlu0 %4079 }
 0xdb8   : > { %10933 = vrcp.f32 %v4080_v58 }
 0xdbb   : > { %v4321_v60 = vpop.permute.xlu0 %4320 }
 0xdbc   : > { %10226 = vmatpush3.msra.mxu1 %v4321_v60  ;;  %v4596_v60 = vld [vmem:[%s13177_s14 + $0x50] sm:$0xff] }
 0xdbd   : > { %10228 = vmatmul.mubr.msk.f32.vlgmr.msra.gmra.mrb[42].mxu1 %vm1756_vm9, %v4091_v61  ;;  %10627 = vmatprep.subr.bf16.mxu1 %v10626_v46  ;;  %v10636_v61 = vpack.c.bf16 %v4596_v60, %v4594_v59  ;;  %v4806_v46 = vld [vmem:[%s13179_s16 + $0x98] sm:$0xff]  ;;  %v4793_v60 = vld [vmem:[%s13179_s16 + $0x30] sm:$0xff] }
 0xdbe   : > { %4690 = vmatprep.mubr.f32.mxu1 %v11131_v0  ;;  %10629 = vmatpush1.bf16.msra.mxu1 %v10628_v26  ;;  %v10646_v47 = vpack.c.bf16 %v4806_v46, %v4805_v44  ;;  %v4790_v26 = vld [vmem:[%s13179_s16 + $0x18] sm:$0xff] }
 0xdc2   : > { %v10934_v38 = vpop.eup %10933 }
 0xdc3   : > { %v4090_v62 = vmul.f32 %v10934_v38, %v10928_v49  ;;  %v4591_v49 = vld [vmem:[%s13177_s14 + $0x28] sm:$0xff] }
 0xdc4   : > { %v10630_v51 = vpack.c.bf16 %v4593_v50, %v4591_v49  ;;  %v4599_v38 = vld [vmem:[%s13177_s14 + $0x68] sm:$0xff]  ;;  %v10648_v49 = vpack.c.bf16 %v4790_v26, %v4789_v48  ;;  %v4807_v50 = vld [vmem:[%s13179_s16 + $0xa0] sm:$0xff] }
 0xdc5   : > { %10223 = vmatmul.mubr.msk.f32.vlgmr.msra.gmra.mrb[40].mxu0 %vm1756_vm9, %v4090_v62  ;;  %v4601_v62 = vld [vmem:[%s13177_s14 + $0x78] sm:$0xff] }
 0xdc6   : > { %10625 = vmatpush3.bf16.msra.mxu0 %v10622_v57  ;;  %10631 = vmatprep.subr.bf16.mxu1 %v10630_v51  ;;  %v4597_v57 = vld [vmem:[%s13177_s14 + $0x58] sm:$0xff]  ;;  %v4808_v51 = vld [vmem:[%s13179_s16 + $0xa8] sm:$0xff] }
 0xdc7   : > { %10633 = vmatpush1.bf16.msra.mxu1 %v10632_v55  ;;  %v10634_v58 = vpack.c.bf16 %v4597_v57, %v4595_v56  ;;  %v10650_v52 = vpack.c.bf16 %v4808_v51, %v4807_v50  ;;  %v4792_v55 = vld [vmem:[%s13179_s16 + $0x28] sm:$0xff]  ;;  %v4809_v57 = vld [vmem:[%s13179_s16 + $0xb0] sm:$0xff] }
 0xdc8   : > { %v4240_v63 = vpop.f32.mrb[40].mxu1  ;;  %v10652_v56 = vpack.c.bf16 %v4792_v55, %v4791_v54 }
 0xdc9   : > { %v10219_v1 = vpop.f32.mrb[41].mxu1  ;;  %10635 = vmatprep.subr.bf16.mxu1 %v10634_v58  ;;  %v4810_v58 = vld [vmem:[%s13179_s16 + $0xb8] sm:$0xff] }
 0xdca   : > { %v10638_v1 = vpack.c.bf16 %v4601_v62, %v4599_v38  ;;  %v10654_v59 = vpack.c.bf16 %v4810_v58, %v4809_v57  ;;  %v4811_v62 = vld [vmem:[%s13179_s16 + $0xc0] sm:$0xff] }
 0xdcb   : > { %10637 = vmatpush1.bf16.msra.mxu1 %v10636_v61  ;;  %v4794_v61 = vld [vmem:[%s13179_s16 + $0x38] sm:$0xff] }
 0xdcc   : > { %10639 = vmatprep.subr.bf16.mxu1 %v10638_v1  ;;  %v10656_v38 = vpack.c.bf16 %v4794_v61, %v4793_v60 }
 0xdff   : > { %v4164_v2 = vpop.f32.mrb[38].mxu0 }
 0xe00   : > { %v10214_v5 = vpop.f32.mrb[39].mxu0  ;;  %10234 = vmatprep.mubr.msk.f32.mxu0 %vm1442_vm7, %v4164_v2  ;;  %v4600_v2 = vld [vmem:[%s13177_s14 + $0x70] sm:$0xff] }
 0xe01   : > { %10235 = vmatmul.mubr.msk.f32.vlgmr.msra.gmra.mrb[28].mxu0 %vm1442_vm7, %v4240_v63  ;;  %v4598_v63 = vld [vmem:[%s13177_s14 + $0x60] sm:$0xff] }
 0xe02   : > { %v10640_v5 = vpack.c.bf16 %v4600_v2, %v4598_v63  ;;  %v4812_v63 = vld [vmem:[%s13179_s16 + $0xc8] sm:$0xff]  ;;  %v4795_v2 = vld [vmem:[%s13179_s16 + $0x40] sm:$0xff] }
 0xe03   : > { %v10658_v1 = vpack.c.bf16 %v4812_v63, %v4811_v62 }
 0xe04   : > { %10641 = vmatpush1.bf16.msra.mxu1 %v10640_v5  ;;  %v4796_v5 = vld [vmem:[%s13179_s16 + $0x48] sm:$0xff] }
 0xe90   : > { %v4392_v6 = vpop.f32.mrb[42].mxu1 }
 0xe91   : > { %v10229_v7 = vpop.f32.mrb[43].mxu1 }
 0xe98   : > { %v4316_v9 = vpop.f32.mrb[40].mxu0 }
 0xe99   : > { %v10224_v10 = vpop.f32.mrb[41].mxu0  ;;  %10237 = vmatprep.mubr.msk.f32.mxu0 %vm1442_vm7, %v4316_v9 }
 0xe9a   : > { %10238 = vmatmul.mubr.msk.f32.gmra.mrb[30].mxu0 %vm1442_vm7, %v4392_v6 }
 0xed4   : > { %v10236_v11 = vpop.f32.mrb[28].mxu0 }
 0xed5   : > { %v4498_v15 = vadd.f32 %v11063_v14, %v10236_v11  ;;  %v4474_v17 = vpop.f32.mrb[29].mxu0 }
 0xed6   : > { %v4497_v22 = vadd.f32 %v11064_v21, %v4474_v17 }
 0xed7   : > { %v12052_v23 = vadd.f32 %v9357_v13, %v4498_v15 }
 0xed8   : > { %v12054_v25 = vadd.f32 %v9357_v13, %v4497_v22 }
 0xed9   : > { %v4517_v27 = vsel %vm1228_vm6, %v12052_v23, 0.0 }
 0xeda   : > { %4518 = vadd.xlane.f32.xlu0 %v4517_v27  ;;  %v4514_v24 = vsel %vm1228_vm6, %v12054_v25, 0.0 }
 0xedb   : > { %4515 = vadd.xlane.f32.xlu1 %v4514_v24 }
 0xf67   : > { %v4519_v28 = vpop.xlane.xlu0 %4518 }
 0xf68   : > { %v4516_v29 = vpop.xlane.xlu1 %4515  ;;  %v4527_v32 = vmul.f32 0.015625, %v4519_v28 }
 0xf69   : > { %v4526_v36 = vmul.f32 0.015625, %v4516_v29 }
 0xf6a   : > { %v12061_v3 = vsub.f32 %v12052_v23, %v4527_v32 }
 0xf6b   : > { %v12064_v31 = vsub.f32 %v12054_v25, %v4526_v36 }
 0xf6c   : > { %v4535_v40 = vmul.f32 %v12061_v3, %v12061_v3 }
 0xf6d   : > { %v10239_v8 = vpop.f32.mrb[30].mxu0  ;;  %v4534_v34 = vmul.f32 %v12064_v31, %v12064_v31 }
 0xf6e   : > { %v4500_v16 = vadd.f32 %v11065_v12, %v10239_v8  ;;  %v4484_v19 = vpop.f32.mrb[31].mxu0  ;;  %v4541_v41 = vsel %vm1228_vm6, %v4535_v40, 0.0  ;;  %v12143_v12 = vld [vmem:[%s13175_s12] ss:$0 sm:$0xff] }
 0xf6f   : > { %v4499_v33 = vadd.f32 %v11066_v45, %v4484_v19  ;;  %v4538_v42 = vsel %vm1228_vm6, %v4534_v34, 0.0  ;;  %v12150_v45 = vld [vmem:[%s13176_s13] ss:$0 sm:$0xff] }
 0xf70   : > { %v12066_v35 = vadd.f32 %v9357_v13, %v4500_v16 }
 0xf71   : > { %v12068_v37 = vadd.f32 %v9357_v13, %v4499_v33 }
 0xf72   : > { %v4523_v39 = vsel %vm1228_vm6, %v12066_v35, 0.0 }
 0xf73   : > { %4524 = vadd.xlane.f32.xlu1 %v4523_v39  ;;  %v4520_v30 = vsel %vm1228_vm6, %v12068_v37, 0.0 }
 0xf74   : > { %4521 = vadd.xlane.f32.xlu0 %v4520_v30 }
 0xf77   : > { %4542 = vadd.xlane.f32.xlu1 %v4541_v41  ;;  %v4787_v41 = vld [vmem:[%s13179_s16] sm:$0xff] }
 0xf78   : > { %4539 = vadd.xlane.f32.xlu0 %v4538_v42  ;;  %v4788_v42 = vld [vmem:[%s13179_s16 + $0x8] sm:$0xff] }
 0xf79   : > { %v10644_v43 = vpack.c.bf16 %v4788_v42, %v4787_v41 }
0x1000   : > { %v4525_v6 = vpop.xlane.xlu1 %4524 }
0x1001   : > { %v4529_v7 = vmul.f32 0.015625, %v4525_v6  ;;  %v4522_v9 = vpop.xlane.xlu0 %4521  ;;  %v10660_v6 = vpack.c.bf16 %v4796_v5, %v4795_v2 }
0x1002   : > { %v4528_v10 = vmul.f32 0.015625, %v4522_v9  ;;  %v4814_v9 = vld [vmem:[%s13179_s16 + $0xd8] sm:$0xff] }
0x1003   : > { %v12129_v11 = vsub.f32 %v12066_v35, %v4529_v7  ;;  %v4813_v7 = vld [vmem:[%s13179_s16 + $0xd0] sm:$0xff] }
0x1004   : > { %v12132_v13 = vsub.f32 %v12068_v37, %v4528_v10  ;;  %v4543_v14 = vpop.xlane.xlu1 %4542  ;;  %v10662_v10 = vpack.c.bf16 %v4814_v9, %v4813_v7 }
0x1005   : > { %v4551_v15 = vmul.f32 0.015625, %v4543_v14  ;;  %v4540_v17 = vpop.xlane.xlu0 %4539  ;;  %v4537_v21 = vmul.f32 %v12129_v11, %v12129_v11  ;;  %v4797_v14 = vld [vmem:[%s13179_s16 + $0x50] sm:$0xff] }
0x1006   : > { %v4550_v22 = vmul.f32 0.015625, %v4540_v17  ;;  %v4536_v27 = vmul.f32 %v12132_v13, %v12132_v13 }
0x1007   : > { %v4555_v24 = vadd.f32 1e-06, %v4551_v15  ;;  %v4547_v28 = vsel %vm1228_vm6, %v4537_v21, 0.0  ;;  %v4798_v15 = vld [vmem:[%s13179_s16 + $0x58] sm:$0xff]  ;;  %v4815_v21 = vld [vmem:[%s13179_s16 + $0xe0] sm:$0xff] }
0x1008   : > { %v4554_v29 = vadd.f32 1e-06, %v4550_v22  ;;  %4548 = vadd.xlane.f32.xlu1 %v4547_v28  ;;  %v4544_v32 = vsel %vm1228_vm6, %v4536_v27, 0.0  ;;  %v10664_v17 = vpack.c.bf16 %v4798_v15, %v4797_v14  ;;  %v4816_v22 = vld [vmem:[%s13179_s16 + $0xe8] sm:$0xff] }
0x1009   : > { %10935 = vrsqrt.f32 %v4555_v24  ;;  %4545 = vadd.xlane.f32.xlu0 %v4544_v32  ;;  %v10666_v27 = vpack.c.bf16 %v4816_v22, %v4815_v21  ;;  %v4799_v24 = vld [vmem:[%s13179_s16 + $0x60] sm:$0xff]  ;;  %v4800_v28 = vld [vmem:[%s13179_s16 + $0x68] sm:$0xff]  ;;  %v4817_v32 = vld [vmem:[%s13179_s16 + $0xf0] sm:$0xff] }
0x100a   : > { %10937 = vrsqrt.f32 %v4554_v29  ;;  %v10668_v29 = vpack.c.bf16 %v4800_v28, %v4799_v24 }
0x1013   : > { %v10936_v36 = vpop.eup %10935 }
0x1014   : > { %v10938_v8 = vpop.eup %10937  ;;  %v4563_v19 = vmul.f32 %v10936_v36, %v12061_v3  ;;  %v4803_v3 = vld [vmem:[%s13179_s16 + $0x80] sm:$0xff]  ;;  %v4818_v36 = vld [vmem:[%s13179_s16 + $0xf8] sm:$0xff] }
0x1015   : > { %v4562_v16 = vmul.f32 %v10938_v8, %v12064_v31  ;;  %v4804_v31 = vld [vmem:[%s13179_s16 + $0x88] sm:$0xff]  ;;  %v10670_v8 = vpack.c.bf16 %v4818_v36, %v4817_v32 }
0x1016   : > { %v4573_v40 = vmul.f32 %v12143_v12, %v4563_v19  ;;  %v10642_v34 = vpack.c.bf16 %v4804_v31, %v4803_v3  ;;  %v4802_v19 = vld [vmem:[%s13179_s16 + $0x78] sm:$0xff] }
0x1017   : > { %v4572_v33 = vmul.f32 %v12143_v12, %v4562_v16  ;;  %v4801_v16 = vld [vmem:[%s13179_s16 + $0x70] sm:$0xff] }
0x1018   : > { %v4583_v30 = vadd.f32 %v12150_v45, %v4573_v40  ;;  %10643 = vmatprep.subr.bf16.mxu0 %v10642_v34 }
0x1019   : > { %v4582_v39 = vadd.f32 %v12150_v45, %v4572_v33  ;;  %10645 = vmatpush3.bf16.msra.mxu0 %v10644_v43  ;;  %v10672_v33 = vpack.c.bf16 %v4802_v19, %v4801_v16 }
0x101a   : > { %10647 = vmatprep.subr.bf16.mxu0 %v10646_v47 }
0x101b   : > { %9360 = vmatmul.mubr.msk.f32.vlgmr.msra.gmra.mrb[44].mxu1 %vm1228_vm6, %v4582_v39 }
0x101c   : > { %4696 = vmatprep.mubr.f32.mxu1 %v11131_v0 }
0x101d   : > { %10649 = vmatpush3.bf16.msra.mxu0 %v10648_v49 }
0x101e   : > { %10651 = vmatprep.subr.bf16.mxu0 %v10650_v52 }
0x101f   : > { %9361 = vmatmul.mubr.msk.f32.gmra.mrb[46].mxu1 %vm1228_vm6, %v4583_v30 }
0x1020   : > { %4702 = vmatprep.mubr.f32.mxu1 %v11131_v0 }
0x1021   : > { %10653 = vmatpush3.bf16.msra.mxu0 %v10652_v56 }
0x1022   : > { %10655 = vmatprep.subr.bf16.mxu0 %v10654_v59 }
0x1025   : > { %10657 = vmatpush3.bf16.msra.mxu0 %v10656_v38 }
0x1026   : > { %10659 = vmatprep.subr.bf16.mxu0 %v10658_v1 }
0x1029   : > { %10661 = vmatpush3.bf16.msra.mxu0 %v10660_v6 }
0x102a   : > { %10663 = vmatprep.subr.bf16.mxu0 %v10662_v10 }
0x102d   : > { %10665 = vmatpush3.bf16.msra.mxu0 %v10664_v17 }
0x102e   : > { %10667 = vmatprep.subr.bf16.mxu0 %v10666_v27 }
0x1031   : > { %10669 = vmatpush3.bf16.msra.mxu0 %v10668_v29 }
0x1032   : > { %10671 = vmatprep.subr.bf16.mxu0 %v10670_v8 }
0x1035   : > { %10673 = vmatpush3.bf16.msra.mxu0 %v10672_v33 }
0x1036   : > { %10245 = vmatprep.subr.mxu0 %v11131_v0 }
0x1095   : > { %v4549_v39 = vpop.xlane.xlu1 %4548 }
0x1096   : > { %v4553_v40 = vmul.f32 0.015625, %v4549_v39  ;;  %v4546_v30 = vpop.xlane.xlu0 %4545 }
0x1097   : > { %v4552_v3 = vmul.f32 0.015625, %v4546_v30 }
0x1098   : > { %v4557_v31 = vadd.f32 1e-06, %v4553_v40 }
0x1099   : > { %v4556_v34 = vadd.f32 1e-06, %v4552_v3 }
0x109a   : > { %10939 = vrsqrt.f32 %v4557_v31 }
0x109b   : > { %10941 = vrsqrt.f32 %v4556_v34 }
0x10a4   : > { %v10940_v41 = vpop.eup %10939 }
0x10a5   : > { %v10942_v42 = vpop.eup %10941  ;;  %v4565_v44 = vmul.f32 %v10940_v41, %v12129_v11  ;;  %v4602_v11 = vld [vmem:[%s13178_s15] sm:$0x3] }
0x10a6   : > { %v4564_v43 = vmul.f32 %v10942_v42, %v12132_v13  ;;  %v4607_v13 = vrot.slane %v4602_v11, %v11684_v18  ;;  %v12272_v49 = vrot.slane %v4602_v11, %v11689_v20 }
0x10a7   : > { %v4575_v48 = vmul.f32 %v12143_v12, %v4565_v44 }
0x10a8   : > { %v4574_v46 = vmul.f32 %v12143_v12, %v4564_v43 }
0x10a9   : > { %v4585_v26 = vadd.f32 %v12150_v45, %v4575_v48 }
0x10aa   : > { %v4584_v47 = vadd.f32 %v12150_v45, %v4574_v46 }
0x10ac   : > { %9362 = vmatmul.mubr.msk.f32.gmra.mrb[48].mxu1 %vm1228_vm6, %v4584_v47 }
0x10ad   : > { %4708 = vmatprep.mubr.f32.mxu1 %v11131_v0 }
0x10b0   : > { %9363 = vmatmul.mubr.msk.f32.gmra.mrb[50].mxu1 %vm1228_vm6, %v4585_v26 }
0x10b1   : > { %5097 = vmatprep.mubr.f32.mxu1 %v11131_v0 }
0x10ee   : > { %v4692_v12 = vpop.f32.mrb[44].mxu1 }
0x10ef   : > { %v4693_v50 = vadd.f32 %v4692_v12, %v4607_v13  ;;  %v4694_v51 = vpop.f32.mrb[45].mxu1 }
0x10f0   : > { %v4695_v52 = vadd.f32 %v4694_v51, %v12272_v49 }
0x10f1   : > { %v4715_v54 = vmul.f32 %v4693_v50, %v4693_v50 }
0x10f2   : > { %v4716_v45 = vmul.f32 %v4695_v52, %v4695_v52  ;;  %v4698_v55 = vpop.f32.mrb[46].mxu1 }
0x10f3   : > { %v4723_v56 = vmul.f32 %v4715_v54, %v4693_v50  ;;  %v4699_v57 = vadd.f32 %v4698_v55, %v4607_v13  ;;  %v4700_v58 = vpop.f32.mrb[47].mxu1 }
0x10f4   : > { %v4724_v59 = vmul.f32 %v4716_v45, %v4695_v52  ;;  %v4701_v60 = vadd.f32 %v4700_v58, %v12272_v49 }
0x10f5   : > { %v4731_v61 = vmul.f32 0.044715, %v4723_v56  ;;  %v4717_v38 = vmul.f32 %v4699_v57, %v4699_v57 }
0x10f6   : > { %v4732_v62 = vmul.f32 0.044715, %v4724_v59  ;;  %v4718_v63 = vmul.f32 %v4701_v60, %v4701_v60 }
0x10f7   : > { %v4739_v1 = vadd.f32 %v4731_v61, %v4693_v50  ;;  %v4725_v2 = vmul.f32 %v4717_v38, %v4699_v57 }
0x10f8   : > { %v4740_v5 = vadd.f32 %v4732_v62, %v4695_v52  ;;  %v4726_v6 = vmul.f32 %v4718_v63, %v4701_v60 }
0x10f9   : > { %v4747_v7 = vmul.f32 0.7978846, %v4739_v1  ;;  %v4733_v9 = vmul.f32 0.044715, %v4725_v2 }
0x10fa   : > { %v4748_v10 = vmul.f32 0.7978846, %v4740_v5  ;;  %v4734_v14 = vmul.f32 0.044715, %v4726_v6 }
0x10fb   : > { %10943 = vtanh.f32 %v4747_v7  ;;  %v4741_v15 = vadd.f32 %v4733_v9, %v4699_v57 }
0x10fc   : > { %v4742_v17 = vadd.f32 %v4734_v14, %v4701_v60  ;;  %10945 = vtanh.f32 %v4748_v10 }
0x10fd   : > { %v4749_v21 = vmul.f32 0.7978846, %v4741_v15 }
0x10fe   : > { %v4750_v22 = vmul.f32 0.7978846, %v4742_v17 }
0x10ff   : > { %10947 = vtanh.f32 %v4749_v21 }
0x1100   : > { %10949 = vtanh.f32 %v4750_v22 }
0x1105   : > { %v10944_v27 = vpop.eup %10943 }
0x1106   : > { %v10946_v24 = vpop.eup %10945  ;;  %v4763_v28 = vadd.f32 1.0, %v10944_v27 }
0x1107   : > { %v4764_v29 = vadd.f32 1.0, %v10946_v24 }
0x1108   : > { %v4771_v32 = vmul.f32 0.5, %v4763_v28 }
0x1109   : > { %v10948_v36 = vpop.eup %10947  ;;  %v4772_v8 = vmul.f32 0.5, %v4764_v29 }
0x110a   : > { %v10950_v16 = vpop.eup %10949  ;;  %v4765_v19 = vadd.f32 1.0, %v10948_v36  ;;  %v4779_v40 = vmul.f32 %v4771_v32, %v4693_v50 }
0x110b   : > { %v4780_v33 = vmul.f32 %v4772_v8, %v4695_v52  ;;  %v4766_v39 = vadd.f32 1.0, %v10950_v16  ;;  %v9364_v8 = vld [vmem:[%s13180_s17] ss:$0 sm:$0xff] }
0x110c   : > { %v4773_v30 = vmul.f32 0.5, %v4765_v19 }
0x110d   : > { %4890 = vmatprep.mubr.f32.mxu0 %v4780_v33  ;;  %v4774_v3 = vmul.f32 0.5, %v4766_v39 }
0x110e   : > { %4891 = vmatmul.mubr.f32.vlgmr.msra.gmra.mrb[42].mxu0 %v4779_v40  ;;  %v4781_v34 = vmul.f32 %v4773_v30, %v4699_v57 }
0x110f   : > { %v4782_v31 = vmul.f32 %v4774_v3, %v4701_v60 }
0x1111   : > { %4895 = vmatprep.mubr.f32.mxu0 %v4782_v31 }
0x1112   : > { %4896 = vmatmul.mubr.f32.gmra.mrb[44].mxu0 %v4781_v34 }
0x117f   : > { %v4704_v41 = vpop.f32.mrb[48].mxu1 }
0x1180   : > { %v4705_v42 = vadd.f32 %v4704_v41, %v4607_v13  ;;  %v4706_v43 = vpop.f32.mrb[49].mxu1 }
0x1181   : > { %v4707_v44 = vadd.f32 %v4706_v43, %v12272_v49 }
0x1182   : > { %v4719_v46 = vmul.f32 %v4705_v42, %v4705_v42 }
0x1183   : > { %v4720_v47 = vmul.f32 %v4707_v44, %v4707_v44  ;;  %v4710_v48 = vpop.f32.mrb[50].mxu1 }
0x1184   : > { %v4727_v26 = vmul.f32 %v4719_v46, %v4705_v42  ;;  %v4711_v11 = vadd.f32 %v4710_v48, %v4607_v13  ;;  %v4712_v12 = vpop.f32.mrb[51].mxu1 }
0x1185   : > { %v4728_v50 = vmul.f32 %v4720_v47, %v4707_v44  ;;  %v4713_v51 = vadd.f32 %v4712_v12, %v12272_v49 }
0x1186   : > { %v4735_v52 = vmul.f32 0.044715, %v4727_v26  ;;  %v4721_v54 = vmul.f32 %v4711_v11, %v4711_v11 }
0x1187   : > { %v4736_v45 = vmul.f32 0.044715, %v4728_v50  ;;  %v4722_v55 = vmul.f32 %v4713_v51, %v4713_v51 }
0x1188   : > { %v4743_v56 = vadd.f32 %v4735_v52, %v4705_v42  ;;  %v4729_v57 = vmul.f32 %v4721_v54, %v4711_v11 }
0x1189   : > { %v4744_v58 = vadd.f32 %v4736_v45, %v4707_v44  ;;  %v4730_v59 = vmul.f32 %v4722_v55, %v4713_v51 }
0x118a   : > { %v4751_v60 = vmul.f32 0.7978846, %v4743_v56  ;;  %v4737_v61 = vmul.f32 0.044715, %v4729_v57 }
0x118b   : > { %v4752_v38 = vmul.f32 0.7978846, %v4744_v58  ;;  %v4738_v62 = vmul.f32 0.044715, %v4730_v59 }
0x118c   : > { %v4745_v63 = vadd.f32 %v4737_v61, %v4711_v11  ;;  %10951 = vtanh.f32 %v4751_v60  ;;  %v9370_v60 = vld [vmem:[%s13245_s25 + $0x88] sm:$0xff]  ;;  %v9372_v61 = vld [vmem:[%s13245_s25 + $0x98] sm:$0xff] }
0x118d   : > { %v4746_v1 = vadd.f32 %v4738_v62, %v4713_v51  ;;  %10953 = vtanh.f32 %v4752_v38  ;;  %v10674_v38 = vpack.c.bf16 %v9372_v61, %v9370_v60  ;;  %v9369_v62 = vld [vmem:[%s13245_s25 + $0x80] sm:$0xff] }
0x118e   : > { %v4753_v13 = vmul.f32 0.7978846, %v4745_v63  ;;  %v9371_v63 = vld [vmem:[%s13245_s25 + $0x90] sm:$0xff] }
0x118f   : > { %v4754_v2 = vmul.f32 0.7978846, %v4746_v1  ;;  %v10676_v1 = vpack.c.bf16 %v9371_v63, %v9369_v62  ;;  %10675 = vmatprep.subr.bf16.mxu1 %v10674_v38 }
0x1190   : > { %10955 = vtanh.f32 %v4753_v13  ;;  %v9374_v13 = vld [vmem:[%s13245_s25 + $0xa8] sm:$0xff] }
0x1191   : > { %10957 = vtanh.f32 %v4754_v2  ;;  %10677 = vmatpush1.bf16.msra.mxu1 %v10676_v1  ;;  %v9376_v2 = vld [vmem:[%s13245_s25 + $0xb8] sm:$0xff] }
0x1196   : > { %v10952_v49 = vpop.eup %10951 }
0x1197   : > { %v10954_v5 = vpop.eup %10953  ;;  %v4767_v6 = vadd.f32 1.0, %v10952_v49  ;;  %v10678_v49 = vpack.c.bf16 %v9376_v2, %v9374_v13 }
0x1198   : > { %v4768_v7 = vadd.f32 1.0, %v10954_v5  ;;  %v9373_v5 = vld [vmem:[%s13245_s25 + $0xa0] sm:$0xff] }
0x1199   : > { %v4775_v9 = vmul.f32 0.5, %v4767_v6  ;;  %v9375_v6 = vld [vmem:[%s13245_s25 + $0xb0] sm:$0xff]  ;;  %10679 = vmatprep.subr.bf16.mxu1 %v10678_v49 }
0x119a   : > { %v10956_v10 = vpop.eup %10955  ;;  %v4776_v14 = vmul.f32 0.5, %v4768_v7  ;;  %v10680_v7 = vpack.c.bf16 %v9375_v6, %v9373_v5  ;;  %v9385_v5 = vld [vmem:[%s13248_s0 + $0x2] sm:$0x3] }
0x119b   : > { %v10958_v15 = vpop.eup %10957  ;;  %v4769_v17 = vadd.f32 1.0, %v10956_v10  ;;  %v4783_v27 = vmul.f32 %v4775_v9, %v4705_v42  ;;  %v9378_v9 = vld [vmem:[%s13245_s25 + $0xc8] sm:$0xff]  ;;  %v9380_v10 = vld [vmem:[%s13245_s25 + $0xd8] sm:$0xff]  ;;  %v5014_v6 = vrot.slane %v9385_v5, %v11684_v18 }
0x119c   : > { %v4784_v21 = vmul.f32 %v4776_v14, %v4707_v44  ;;  %v4770_v22 = vadd.f32 1.0, %v10958_v15  ;;  %10681 = vmatpush1.bf16.msra.mxu1 %v10680_v7  ;;  %v10682_v14 = vpack.c.bf16 %v9380_v10, %v9378_v9  ;;  %v9377_v15 = vld [vmem:[%s13245_s25 + $0xc0] sm:$0xff] }
0x119d   : > { %v4777_v24 = vmul.f32 0.5, %v4769_v17  ;;  %v9379_v17 = vld [vmem:[%s13245_s25 + $0xd0] sm:$0xff] }
0x119e   : > { %4900 = vmatprep.mubr.f32.mxu0 %v4784_v21  ;;  %v4778_v28 = vmul.f32 0.5, %v4770_v22  ;;  %v10684_v21 = vpack.c.bf16 %v9379_v17, %v9377_v15  ;;  %10683 = vmatprep.subr.bf16.mxu1 %v10682_v14  ;;  %v9382_v22 = vld [vmem:[%s13245_s25 + $0xe8] sm:$0xff] }
0x119f   : > { %4901 = vmatmul.mubr.f32.gmra.mrb[46].mxu0 %v4783_v27  ;;  %v4785_v32 = vmul.f32 %v4777_v24, %v4711_v11  ;;  %v9384_v27 = vld [vmem:[%s13245_s25 + $0xf8] sm:$0xff] }
0x11a0   : > { %v4786_v29 = vmul.f32 %v4778_v28, %v4713_v51  ;;  %10685 = vmatpush1.bf16.msra.mxu1 %v10684_v21  ;;  %v10686_v24 = vpack.c.bf16 %v9384_v27, %v9382_v22  ;;  %v9381_v28 = vld [vmem:[%s13245_s25 + $0xe0] sm:$0xff] }
0x11a2   : > { %4905 = vmatprep.mubr.f32.mxu0 %v4786_v29  ;;  %v9383_v29 = vld [vmem:[%s13245_s25 + $0xf0] sm:$0xff]  ;;  %10687 = vmatprep.subr.bf16.mxu1 %v10686_v24 }
0x11a3   : > { %4906 = vmatmul.mubr.f32.gmra.mrb[48].mxu0 %v4785_v32  ;;  %v10688_v32 = vpack.c.bf16 %v9383_v29, %v9381_v28 }
0x11a4   : > { %10247 = vmatprep.mubr.msk.f32.mxu0 %vm11132_vm0, %v11131_v0 }
0x11a5   : > { %10689 = vmatpush1.bf16.msra.mxu1 %v10688_v32 }
0x11a6   : > { %10240 = vmatprep.subr.mxu1 %v11131_v0 }
0x11e1   : > { %v9725_v36 = vpop.f32.mrb[42].mxu0 }
0x11e2   : > { %v9726_v16 = vpop.f32.mrb[43].mxu0 }
0x11e3   : > { %v9727_v19 = vadd.f32 %v9726_v16, %v9725_v36 }
0x11e5   : > { %v4893_v33 = vadd.f32 %v9727_v19, %v9364_v8  ;;  %v9728_v39 = vpop.f32.mrb[44].mxu0 }
0x11e6   : > { %v9729_v40 = vpop.f32.mrb[45].mxu0 }
0x11e7   : > { %v12284_v30 = vadd.f32 %v4893_v33, %v12054_v25  ;;  %v9730_v3 = vadd.f32 %v9729_v40, %v9728_v39 }
0x11e9   : > { %v4898_v31 = vadd.f32 %v9730_v3, %v9364_v8  ;;  %v4919_v34 = vsel %vm1228_vm6, %v12284_v30, 0.0 }
0x11ea   : > { %4920 = vadd.xlane.f32.xlu0 %v4919_v34 }
0x11eb   : > { %v12289_v41 = vadd.f32 %v4898_v31, %v12052_v23 }
0x11ed   : > { %v4922_v42 = vsel %vm1228_vm6, %v12289_v41, 0.0 }
0x11ee   : > { %4923 = vadd.xlane.f32.xlu1 %v4922_v42 }
0x1272   : > { %v9731_v43 = vpop.f32.mrb[46].mxu0 }
0x1273   : > { %v9732_v44 = vpop.f32.mrb[47].mxu0 }
0x1274   : > { %v9733_v46 = vadd.f32 %v9732_v44, %v9731_v43 }
0x1276   : > { %v4903_v47 = vadd.f32 %v9733_v46, %v9364_v8  ;;  %v9734_v48 = vpop.f32.mrb[48].mxu0 }
0x1277   : > { %v9735_v25 = vpop.f32.mrb[49].mxu0  ;;  %v4921_v26 = vpop.xlane.xlu0 %4920 }
0x1278   : > { %v12294_v11 = vadd.f32 %v4903_v47, %v12068_v37  ;;  %v9736_v12 = vadd.f32 %v9735_v25, %v9734_v48  ;;  %v4931_v50 = vmul.f32 0.015625, %v4921_v26  ;;  %v9367_v26 = vld [vmem:[%s13246_s1 + $0x1] ss:$0 sm:$0xff] }
0x127a   : > { %v4908_v51 = vadd.f32 %v9736_v12, %v9364_v8  ;;  %v12297_v23 = vsub.f32 %v12284_v30, %v4931_v50  ;;  %v4925_v52 = vsel %vm1228_vm6, %v12294_v11, 0.0  ;;  %v9368_v50 = vld [vmem:[%s13247_s23 + $0x1] ss:$0 sm:$0xff] }
0x127b   : > { %v4924_v54 = vpop.xlane.xlu1 %4923  ;;  %4926 = vadd.xlane.f32.xlu0 %v4925_v52 }
0x127c   : > { %v12302_v45 = vadd.f32 %v4908_v51, %v12066_v35  ;;  %v4932_v55 = vmul.f32 0.015625, %v4924_v54  ;;  %v4939_v56 = vmul.f32 %v12297_v23, %v12297_v23 }
0x127e   : > { %v12307_v37 = vsub.f32 %v12289_v41, %v4932_v55  ;;  %v4928_v57 = vsel %vm1228_vm6, %v12302_v45, 0.0  ;;  %v4943_v58 = vsel %vm1228_vm6, %v4939_v56, 0.0 }
0x127f   : > { %4929 = vadd.xlane.f32.xlu1 %v4928_v57  ;;  %4944 = vadd.xlane.f32.xlu0 %v4943_v58 }
0x1280   : > { %v4940_v59 = vmul.f32 %v12307_v37, %v12307_v37 }
0x1282   : > { %v4946_v35 = vsel %vm1228_vm6, %v4940_v59, 0.0 }
0x1283   : > { %4947 = vadd.xlane.f32.xlu1 %v4946_v35 }
0x1308   : > { %v4927_v36 = vpop.xlane.xlu0 %4926 }
0x1309   : > { %v4933_v8 = vmul.f32 0.015625, %v4927_v36 }
0x130b   : > { %v4937_v16 = vsub.f32 %v12294_v11, %v4933_v8  ;;  %v12422_v8 = vrot.slane %v9385_v5, %v11689_v20 }
0x130c   : > { %v4930_v19 = vpop.xlane.xlu1 %4929  ;;  %v4945_v33 = vpop.xlane.xlu0 %4944 }
0x130d   : > { %v4934_v39 = vmul.f32 0.015625, %v4930_v19  ;;  %v4955_v40 = vmul.f32 0.015625, %v4945_v33  ;;  %v4941_v3 = vmul.f32 %v4937_v16, %v4937_v16 }
0x130f   : > { %v4938_v31 = vsub.f32 %v12302_v45, %v4934_v39  ;;  %v4959_v34 = vadd.f32 1e-06, %v4955_v40  ;;  %v4949_v42 = vsel %vm1228_vm6, %v4941_v3, 0.0 }
0x1310   : > { %v4948_v43 = vpop.xlane.xlu1 %4947  ;;  %4950 = vadd.xlane.f32.xlu0 %v4949_v42 }
0x1311   : > { %10959 = vrsqrt.f32 %v4959_v34  ;;  %v4956_v44 = vmul.f32 0.015625, %v4948_v43  ;;  %v4942_v46 = vmul.f32 %v4938_v31, %v4938_v31 }
0x1313   : > { %v4960_v47 = vadd.f32 1e-06, %v4956_v44  ;;  %v4952_v48 = vsel %vm1228_vm6, %v4942_v46, 0.0 }
0x1314   : > { %4953 = vadd.xlane.f32.xlu1 %v4952_v48 }
0x1315   : > { %10961 = vrsqrt.f32 %v4960_v47 }
0x131b   : > { %v10960_v25 = vpop.eup %10959 }
0x131c   : > { %v4967_v12 = vmul.f32 %v10960_v25, %v12297_v23 }
0x131e   : > { %v4977_v51 = vmul.f32 %v9367_v26, %v4967_v12 }
0x131f   : > { %v10962_v52 = vpop.eup %10961 }
0x1320   : > { %v4987_v54 = vadd.f32 %v9368_v50, %v4977_v51  ;;  %v4968_v55 = vmul.f32 %v10962_v52, %v12307_v37 }
0x1322   : > { %9386 = vmatmul.mubr.msk.f32.vlgmr.msra.gmra.mrb[52].mxu1 %vm1228_vm6, %v4987_v54  ;;  %v4978_v56 = vmul.f32 %v9367_v26, %v4968_v55 }
0x1323   : > { %5103 = vmatprep.mubr.f32.mxu1 %v11131_v0 }
0x1324   : > { %v4988_v57 = vadd.f32 %v9368_v50, %v4978_v56 }
0x1326   : > { %9387 = vmatmul.mubr.msk.f32.gmra.mrb[54].mxu1 %vm1228_vm6, %v4988_v57 }
0x1327   : > { %5109 = vmatprep.mubr.f32.mxu1 %v11131_v0 }
0x139d   : > { %v4951_v23 = vpop.xlane.xlu0 %4950 }
0x139e   : > { %v4957_v58 = vmul.f32 0.015625, %v4951_v23 }
0x13a0   : > { %v4961_v59 = vadd.f32 1e-06, %v4957_v58 }
0x13a1   : > { %v4954_v35 = vpop.xlane.xlu1 %4953 }
0x13a2   : > { %10963 = vrsqrt.f32 %v4961_v59  ;;  %v4958_v60 = vmul.f32 0.015625, %v4954_v35 }
0x13a4   : > { %v4962_v61 = vadd.f32 1e-06, %v4958_v60 }
0x13a6   : > { %10965 = vrsqrt.f32 %v4962_v61 }
0x13ac   : > { %v10964_v38 = vpop.eup %10963 }
0x13ad   : > { %v4969_v37 = vmul.f32 %v10964_v38, %v4937_v16 }
0x13af   : > { %v4979_v62 = vmul.f32 %v9367_v26, %v4969_v37 }
0x13b0   : > { %v10966_v63 = vpop.eup %10965 }
0x13b1   : > { %v4989_v1 = vadd.f32 %v9368_v50, %v4979_v62  ;;  %v4970_v13 = vmul.f32 %v10966_v63, %v4938_v31 }
0x13b3   : > { %9388 = vmatmul.mubr.msk.f32.gmra.mrb[56].mxu1 %vm1228_vm6, %v4989_v1  ;;  %v4980_v2 = vmul.f32 %v9367_v26, %v4970_v13 }
0x13b4   : > { %5115 = vmatprep.mubr.f32.mxu1 %v11131_v0 }
0x13b5   : > { %v4990_v49 = vadd.f32 %v9368_v50, %v4980_v2 }
0x13b7   : > { %9389 = vmatmul.mubr.msk.f32.gmra.mrb[58].mxu1 %vm1228_vm6, %v4990_v49 }
0x13b8   : > { %10242 = vmatprep.mubr.msk.f32.mxu1 %vm11132_vm0, %v11131_v0 }
0x13f5   : > { %v5099_v7 = vpop.f32.mrb[52].mxu1 }
0x13f6   : > { %v12389_v9 = vadd.f32 %v5099_v7, %v5014_v6  ;;  %v5101_v10 = vpop.f32.mrb[53].mxu1 }
0x13f7   : > { %v12427_v19 = vadd.f32 %v5101_v10, %v12422_v8 }
0x13f8   : > { %5132 = vrot.lane.b32.xlu0 %v12389_v9, %s13250_s27 }
0x13f9   : > { %v5105_v14 = vpop.f32.mrb[54].mxu1 }
0x13fa   : > { %v12393_v15 = vadd.f32 %v5105_v14, %v5014_v6  ;;  %v5107_v17 = vpop.f32.mrb[55].mxu1 }
0x13fb   : > { %v12437_v39 = vadd.f32 %v5107_v17, %v12422_v8 }
0x13fc   : > { %5209 = vrot.lane.b32.xlu1 %v12393_v15, %s13250_s27 }
0x146a   : > { %v5133_v21 = vpop.permute.xlu0 %5132 }
0x146b   : > { %10241 = vmatpush3.xpose.msk.msra.mxu1 %vm1442_vm7, %v5133_v21 }
0x146c   : > { %10250 = vmatprep.subr.mxu1 %v11131_v0 }
0x146e   : > { %v5210_v22 = vpop.permute.xlu1 %5209  ;;  %10243 = vmatmul.mubr.msk.f32.vlgmr.msra.gmra.mrb[60].mxu1 %vm1442_vm7, %v12389_v9 }
0x146f   : > { %10246 = vmatpush3.xpose.msk.msra.mxu0 %vm1442_vm7, %v5210_v22  ;;  %10252 = vmatprep.mubr.msk.f32.mxu1 %vm11132_vm0, %v11131_v0 }
0x1470   : > { %10255 = vmatprep.subr.mxu0 %v11131_v0 }
0x1472   : > { %10248 = vmatmul.mubr.msk.f32.vlgmr.msra.gmra.mrb[50].mxu0 %vm1442_vm7, %v12393_v15 }
0x1473   : > { %10257 = vmatprep.mubr.msk.f32.mxu0 %vm11132_vm0, %v11131_v0 }
0x1486   : > { %v5111_v27 = vpop.f32.mrb[56].mxu1 }
0x1487   : > { %v12409_v24 = vadd.f32 %v5111_v27, %v5014_v6  ;;  %v12411_v28 = vpop.f32.mrb[57].mxu1 }
0x1489   : > { %5286 = vrot.lane.b32.xlu1 %v12409_v24, %s13250_s27 }
0x148a   : > { %v5117_v29 = vpop.f32.mrb[58].mxu1 }
0x148b   : > { %v12415_v32 = vadd.f32 %v5117_v29, %v5014_v6  ;;  %v12417_v36 = vpop.f32.mrb[59].mxu1 }
0x148d   : > { %5363 = vrot.lane.b32.xlu0 %v12415_v32, %s13250_s27 }
0x14fb   : > { %v5287_v16 = vpop.permute.xlu1 %5286 }
0x14fc   : > { %10251 = vmatpush3.xpose.msk.msra.mxu1 %vm1442_vm7, %v5287_v16  ;;  %v12468_v16 = vadd.f32 %v12411_v28, %v12422_v8 }
0x14fd   : > { %10260 = vmatprep.subr.mxu1 %v11131_v0 }
0x14ff   : > { %10253 = vmatmul.mubr.msk.f32.vlgmr.msra.gmra.mrb[62].mxu1 %vm1442_vm7, %v12409_v24  ;;  %v5364_v33 = vpop.permute.xlu0 %5363 }
0x1500   : > { %10256 = vmatpush3.xpose.msk.msra.mxu0 %vm1442_vm7, %v5364_v33  ;;  %10261 = vmatpush3.msra.mxu1 %v12427_v19 }
0x1501   : > { %10265 = vmatprep.subr.mxu0 %v11131_v0  ;;  %10262 = vmatprep.mubr.msk.f32.mxu1 %vm11132_vm0, %v11131_v0 }
0x1502   : > { %10270 = vmatprep.subr.mxu1 %v11131_v0 }
0x1503   : > { %10258 = vmatmul.mubr.msk.f32.vlgmr.msra.gmra.mrb[52].mxu0 %vm1442_vm7, %v12415_v32 }
0x1504   : > { %10266 = vmatpush3.msra.mxu0 %v12437_v39  ;;  %10267 = vmatprep.mubr.msk.f32.mxu0 %vm11132_vm0, %v11131_v0 }
0x1505   : > { %10275 = vmatprep.subr.mxu0 %v11131_v0 }
0x1541   : > { %v5204_v40 = vpop.f32.mrb[60].mxu1 }
0x1542   : > { %v5439_v3 = vmul.f32 0.25, %v5204_v40  ;;  %v10244_v31 = vpop.f32.mrb[61].mxu1 }
0x1544   : > { %v5443_v34 = vadd.f32 %v5439_v3, %v11746_v53  ;;  %v12477_v3 = vadd.f32 %v12417_v36, %v12422_v8 }
0x1545   : > { %v5281_v42 = vpop.f32.mrb[50].mxu0 }
0x1546   : > { %v5440_v43 = vmul.f32 0.25, %v5281_v42  ;;  %v10249_v44 = vpop.f32.mrb[51].mxu0  ;;  %v5447_v46 = vsel %vm1756_vm9, %v5443_v34, -inf }
0x1547   : > { %5448 = vmax.xlane.f32.xlu1 %v5447_v46 }
0x1548   : > { %v5444_v47 = vadd.f32 %v5440_v43, %v11746_v53 }
0x154a   : > { %v5450_v48 = vsel %vm1756_vm9, %v5444_v47, -inf }
0x154b   : > { %5451 = vmax.xlane.f32.xlu0 %v5450_v48 }
0x15d2   : > { %v5358_v25 = vpop.f32.mrb[62].mxu1 }
0x15d3   : > { %v5441_v26 = vmul.f32 0.25, %v5358_v25  ;;  %v10254_v12 = vpop.f32.mrb[63].mxu1 }
0x15d4   : > { %v5449_v50 = vpop.xlane.xlu1 %5448 }
0x15d5   : > { %v5459_v51 = vsub.f32 %v5443_v34, %v5449_v50  ;;  %v5445_v52 = vadd.f32 %v5441_v26, %v11746_v53 }
0x15d6   : > { %v5435_v54 = vpop.f32.mrb[52].mxu0 }
0x15d7   : > { %v5463_v55 = vmul.f32 1.442695, %v5459_v51  ;;  %v5442_v56 = vmul.f32 0.25, %v5435_v54  ;;  %v10259_v57 = vpop.f32.mrb[53].mxu0  ;;  %v5453_v23 = vsel %vm1756_vm9, %v5445_v52, -inf }
0x15d8   : > { %5454 = vmax.xlane.f32.xlu0 %v5453_v23  ;;  %v5452_v58 = vpop.xlane.xlu0 %5451 }
0x15d9   : > { %10967 = vpow2.f32 %v5463_v55  ;;  %v5446_v59 = vadd.f32 %v5442_v56, %v11746_v53  ;;  %v5460_v35 = vsub.f32 %v5444_v47, %v5452_v58 }
0x15db   : > { %v5465_v60 = vmul.f32 1.442695, %v5460_v35  ;;  %v5456_v61 = vsel %vm1756_vm9, %v5446_v59, -inf }
0x15dc   : > { %5457 = vmax.xlane.f32.xlu1 %v5456_v61 }
0x15dd   : > { %10969 = vpow2.f32 %v5465_v60 }
0x15e3   : > { %v10968_v38 = vpop.eup %10967 }
0x15e4   : > { %v5471_v37 = vsel %vm1756_vm9, %v10968_v38, 0.0 }
0x15e5   : > { %5472 = vadd.xlane.f32.xlu0 %v5471_v37 }
0x15e7   : > { %v10970_v62 = vpop.eup %10969 }
0x15e8   : > { %v5474_v63 = vsel %vm1756_vm9, %v10970_v62, 0.0 }
0x15e9   : > { %5475 = vadd.xlane.f32.xlu1 %v5474_v63 }
0x15fa   : > { %5863 = vrot.lane.b32.xlu1 %v12393_v15, %s13251_s3 }
0x15fb   : > { %5785 = vrot.lane.b32.xlu0 %v12389_v9, %s13251_s3 }
0x15fe   : > { %5783 = vrot.lane.b32.xlu1 %v12389_v9, %s13252_s26 }
0x1602   : > { %5941 = vrot.lane.b32.xlu1 %v12409_v24, %s13251_s3 }
0x1665   : > { %v5455_v1 = vpop.xlane.xlu0 %5454 }
0x1666   : > { %v5461_v13 = vsub.f32 %v5445_v52, %v5455_v1 }
0x1668   : > { %v5467_v2 = vmul.f32 1.442695, %v5461_v13 }
0x1669   : > { %v5458_v49 = vpop.xlane.xlu1 %5457 }
0x166a   : > { %10971 = vpow2.f32 %v5467_v2  ;;  %v5462_v5 = vsub.f32 %v5446_v59, %v5458_v49 }
0x166c   : > { %v5469_v6 = vmul.f32 1.442695, %v5462_v5 }
0x166e   : > { %10973 = vpow2.f32 %v5469_v6 }
0x1672   : > { %v5473_v7 = vpop.xlane.xlu0 %5472 }
0x1673   : > { %10975 = vrcp.f32 %v5473_v7 }
0x1674   : > { %v10972_v10 = vpop.eup %10971 }
0x1675   : > { %v5477_v14 = vsel %vm1756_vm9, %v10972_v10, 0.0 }
0x1676   : > { %v5476_v17 = vpop.xlane.xlu1 %5475  ;;  %5478 = vadd.xlane.f32.xlu0 %v5477_v14  ;;  %v5786_v8 = vpop.permute.xlu0 %5785 }
0x1677   : > { %10977 = vrcp.f32 %v5476_v17 }
0x1678   : > { %v10974_v21 = vpop.eup %10973 }
0x1679   : > { %v5480_v22 = vsel %vm1756_vm9, %v10974_v21, 0.0 }
0x167a   : > { %5481 = vadd.xlane.f32.xlu1 %v5480_v22  ;;  %v5864_v28 = vpop.permute.xlu1 %5863 }
0x167d   : > { %v10976_v27 = vpop.eup %10975 }
0x167e   : > { %v5487_v29 = vmul.f32 %v10976_v27, %v10968_v38  ;;  %v5784_v36 = vpop.permute.xlu1 %5783 }
0x1680   : > { %10263 = vmatmul.mubr.msk.f32.vlgmr.msra.gmra.mrb[64].mxu1 %vm1756_vm9, %v5487_v29 }
0x1681   : > { %v10978_v33 = vpop.eup %10977  ;;  %10271 = vmatpush3.msra.mxu1 %v12468_v16  ;;  %10272 = vmatprep.mubr.msk.f32.mxu1 %vm11132_vm0, %v11131_v0 }
0x1682   : > { %v5488_v40 = vmul.f32 %v10978_v33, %v10970_v62  ;;  %10280 = vmatprep.subr.mxu1 %v11131_v0  ;;  %v5942_v31 = vpop.permute.xlu1 %5941 }
0x1684   : > { %10268 = vmatmul.mubr.msk.f32.vlgmr.msra.gmra.mrb[54].mxu0 %vm1756_vm9, %v5488_v40 }
0x1685   : > { %10276 = vmatpush3.msra.mxu0 %v12477_v3  ;;  %10277 = vmatprep.mubr.msk.f32.mxu0 %vm11132_vm0, %v11131_v0 }
0x1686   : > { %10285 = vmatprep.subr.mxu0 %v11131_v0 }
0x168b   : > { %5939 = vrot.lane.b32.xlu1 %v12409_v24, %s13252_s26 }
0x168c   : > { %5861 = vrot.lane.b32.xlu0 %v12393_v15, %s13252_s26 }
0x1690   : > { %6019 = vrot.lane.b32.xlu0 %v12415_v32, %s13251_s3 }
0x1694   : > { %6017 = vrot.lane.b32.xlu0 %v12415_v32, %s13252_s26 }
0x1703   : > { %v5479_v34 = vpop.xlane.xlu0 %5478 }
0x1704   : > { %10979 = vrcp.f32 %v5479_v34 }
0x1707   : > { %v5482_v42 = vpop.xlane.xlu1 %5481  ;;  %v5862_v46 = vpop.permute.xlu0 %5861 }
0x1708   : > { %10981 = vrcp.f32 %v5482_v42 }
0x170b   : > { %v6020_v25 = vpop.permute.xlu0 %6019  ;;  %v5940_v26 = vpop.permute.xlu1 %5939 }
0x170e   : > { %v10980_v43 = vpop.eup %10979 }
0x170f   : > { %v5489_v44 = vmul.f32 %v10980_v43, %v10972_v10  ;;  %v6018_v12 = vpop.permute.xlu0 %6017 }
0x1711   : > { %10273 = vmatmul.mubr.msk.f32.vlgmr.msra.gmra.mrb[66].mxu1 %vm1756_vm9, %v5489_v44 }
0x1712   : > { %v10982_v47 = vpop.eup %10981  ;;  %10281 = vmatpush3.xpose.msk.msra.mxu1 %vm1442_vm7, %v5786_v8  ;;  %10282 = vmatprep.mubr.msk.f32.mxu1 %vm11132_vm0, %v11131_v0 }
0x1713   : > { %v5490_v48 = vmul.f32 %v10982_v47, %v10974_v21  ;;  %10290 = vmatprep.subr.mxu1 %v11131_v0 }
0x1715   : > { %10278 = vmatmul.mubr.msk.f32.vlgmr.msra.gmra.mrb[56].mxu0 %vm1756_vm9, %v5490_v48  ;;  %10283 = vmatmul.mubr.msk.f32.vlgmr.msra.gmra.mrb[68].mxu1 %vm1442_vm7, %v5784_v36 }
0x1716   : > { %10286 = vmatpush3.xpose.msk.msra.mxu0 %vm1442_vm7, %v5864_v28  ;;  %10291 = vmatpush3.xpose.msk.msra.mxu1 %vm1442_vm7, %v5942_v31 }
0x1717   : > { %10287 = vmatprep.mubr.msk.f32.mxu0 %vm11132_vm0, %v11131_v0  ;;  %10292 = vmatprep.mubr.msk.f32.mxu1 %vm11132_vm0, %v11131_v0 }
0x1718   : > { %10295 = vmatprep.subr.mxu0 %v11131_v0  ;;  %10300 = vmatprep.subr.mxu1 %v11131_v0 }
0x1719   : > { %10288 = vmatmul.mubr.msk.f32.vlgmr.msra.gmra.mrb[58].mxu0 %vm1442_vm7, %v5862_v46  ;;  %10293 = vmatmul.mubr.msk.f32.vlgmr.msra.gmra.mrb[70].mxu1 %vm1442_vm7, %v5940_v26 }
0x171a   : > { %10296 = vmatpush3.xpose.msk.msra.mxu0 %vm1442_vm7, %v6020_v25  ;;  %10297 = vmatprep.mubr.msk.f32.mxu0 %vm11132_vm0, %v11131_v0 }
0x171b   : > { %10305 = vmatprep.subr.mxu0 %v11131_v0  ;;  %10302 = vmatprep.mubr.msk.f32.mxu1 %vm11132_vm0, %v11131_v0 }
0x171d   : > { %10298 = vmatmul.mubr.msk.f32.vlgmr.msra.gmra.mrb[60].mxu0 %vm1442_vm7, %v6018_v12 }
0x171e   : > { %10307 = vmatprep.mubr.msk.f32.mxu0 %vm11132_vm0, %v11131_v0 }
0x1753   : > { %v12518_v50 = vpop.f32.mrb[64].mxu1 }
0x1754   : > { %v10264_v51 = vpop.f32.mrb[65].mxu1 }
0x1757   : > { %v12520_v52 = vpop.f32.mrb[54].mxu0 }
0x1758   : > { %v10269_v54 = vpop.f32.mrb[55].mxu0 }
0x17e4   : > { %v12522_v55 = vpop.f32.mrb[66].mxu1 }
0x17e5   : > { %v10274_v56 = vpop.f32.mrb[67].mxu1 }
0x17e8   : > { %v12524_v57 = vpop.f32.mrb[56].mxu0  ;;  %v5857_v23 = vpop.f32.mrb[68].mxu1 }
0x17e9   : > { %v6095_v58 = vmul.f32 0.25, %v5857_v23  ;;  %v10279_v59 = vpop.f32.mrb[57].mxu0  ;;  %v10284_v35 = vpop.f32.mrb[69].mxu1 }
0x17eb   : > { %v6099_v60 = vadd.f32 %v6095_v58, %v11746_v53 }
0x17ec   : > { %v5935_v61 = vpop.f32.mrb[58].mxu0  ;;  %v6013_v38 = vpop.f32.mrb[70].mxu1 }
0x17ed   : > { %v6096_v37 = vmul.f32 0.25, %v5935_v61  ;;  %v6097_v62 = vmul.f32 0.25, %v6013_v38  ;;  %v10289_v63 = vpop.f32.mrb[59].mxu0  ;;  %v10294_v1 = vpop.f32.mrb[71].mxu1  ;;  %v6103_v13 = vsel %vm1756_vm9, %v6099_v60, -inf  ;;  %v9391_v61 = vld [vmem:[%s13249_s10 + $0x48] sm:$0xff] }
0x17ee   : > { %6104 = vmax.xlane.f32.xlu1 %v6103_v13  ;;  %v9392_v1 = vld [vmem:[%s13249_s10 + $0x50] sm:$0xff]  ;;  %v9393_v13 = vld [vmem:[%s13249_s10 + $0x58] sm:$0xff] }
0x17ef   : > { %v6100_v2 = vadd.f32 %v6096_v37, %v11746_v53  ;;  %v6101_v5 = vadd.f32 %v6097_v62, %v11746_v53 }
0x17f0   : > { %v6091_v49 = vpop.f32.mrb[60].mxu0 }
0x17f1   : > { %v6098_v6 = vmul.f32 0.25, %v6091_v49  ;;  %v10299_v7 = vpop.f32.mrb[61].mxu0  ;;  %v6106_v10 = vsel %vm1756_vm9, %v6100_v2, -inf  ;;  %v6109_v17 = vsel %vm1756_vm9, %v6101_v5, -inf }
0x17f2   : > { %6107 = vmax.xlane.f32.xlu0 %v6106_v10 }
0x17f3   : > { %v6102_v14 = vadd.f32 %v6098_v6, %v11746_v53 }
0x17f5   : > { %v6112_v21 = vsel %vm1756_vm9, %v6102_v14, -inf }
0x17f6   : > { %6110 = vmax.xlane.f32.xlu0 %v6109_v17  ;;  %6113 = vmax.xlane.f32.xlu1 %v6112_v21 }
0x1807   : > { %6225 = vrot.lane.b32.xlu1 %v12437_v39, %s13252_s26 }
0x180c   : > { %6148 = vrot.lane.b32.xlu0 %v12427_v19, %s13252_s26 }
0x187b   : > { %v6105_v22 = vpop.xlane.xlu1 %6104 }
0x187c   : > { %v6115_v27 = vsub.f32 %v6099_v60, %v6105_v22  ;;  %v9390_v60 = vld [vmem:[%s13249_s10 + $0x40] sm:$0xff] }
0x187d   : > { %v10694_v63 = vpack.c.bf16 %v9391_v61, %v9390_v60 }
0x187e   : > { %v6119_v29 = vmul.f32 1.442695, %v6115_v27 }
0x187f   : > { %v6108_v33 = vpop.xlane.xlu0 %6107 }
0x1880   : > { %10983 = vpow2.f32 %v6119_v29  ;;  %v6116_v40 = vsub.f32 %v6100_v2, %v6108_v33 }
0x1882   : > { %v6121_v28 = vmul.f32 1.442695, %v6116_v40 }
0x1883   : > { %v6114_v36 = vpop.xlane.xlu1 %6113  ;;  %v6111_v8 = vpop.xlane.xlu0 %6110 }
0x1884   : > { %10985 = vpow2.f32 %v6121_v28  ;;  %v6118_v31 = vsub.f32 %v6102_v14, %v6114_v36  ;;  %v6117_v34 = vsub.f32 %v6101_v5, %v6111_v8  ;;  %v10690_v5 = vpack.c.bf16 %v9393_v13, %v9392_v1 }
0x1886   : > { %v6125_v42 = vmul.f32 1.442695, %v6118_v31  ;;  %v6123_v43 = vmul.f32 1.442695, %v6117_v34 }
0x1887   : > { %v6226_v44 = vpop.permute.xlu1 %6225  ;;  %v6149_v46 = vpop.permute.xlu0 %6148 }
0x1888   : > { %10987 = vpow2.f32 %v6125_v42  ;;  %10301 = vmatpush3.msra.mxu1 %v6149_v46  ;;  %10306 = vmatpush3.msra.mxu0 %v6226_v44 }
0x1889   : > { %10989 = vpow2.f32 %v6123_v43  ;;  %10310 = vmatprep.subr.mxu1 %v11131_v0  ;;  %10315 = vmatprep.subr.mxu0 %v11131_v0 }
0x188a   : > { %v10984_v47 = vpop.eup %10983 }
0x188b   : > { %v6127_v48 = vsel %vm1756_vm9, %v10984_v47, 0.0 }
0x188c   : > { %6128 = vadd.xlane.f32.xlu0 %v6127_v48 }
0x188e   : > { %v10986_v25 = vpop.eup %10985 }
0x188f   : > { %v6130_v26 = vsel %vm1756_vm9, %v10986_v25, 0.0 }
0x1890   : > { %6131 = vadd.xlane.f32.xlu1 %v6130_v26 }
0x1892   : > { %v10988_v12 = vpop.eup %10987 }
0x1893   : > { %v10990_v51 = vpop.eup %10989  ;;  %v6136_v54 = vsel %vm1756_vm9, %v10988_v12, 0.0 }
0x1894   : > { %6137 = vadd.xlane.f32.xlu1 %v6136_v54  ;;  %v6133_v56 = vsel %vm1756_vm9, %v10990_v51, 0.0 }
0x1895   : > { %6134 = vadd.xlane.f32.xlu0 %v6133_v56 }
0x18a5   : > { %6302 = vrot.lane.b32.xlu1 %v12468_v16, %s13252_s26 }
0x18a9   : > { %6651 = vrot.lane.b32.xlu1 %v12389_v9, %s13253_s28 }
0x18ab   : > { %6379 = vrot.lane.b32.xlu0 %v12477_v3, %s13252_s26 }
0x18ad   : > { %6729 = vrot.lane.b32.xlu1 %v12393_v15, %s13253_s28 }
0x18af   : > { %6649 = vrot.lane.b32.xlu0 %v12389_v9, %s13254_s29 }
0x18b1   : > { %6807 = vrot.lane.b32.xlu1 %v12409_v24, %s13253_s28 }
0x18b3   : > { %6727 = vrot.lane.b32.xlu0 %v12393_v15, %s13254_s29 }
0x18b5   : > { %6885 = vrot.lane.b32.xlu1 %v12415_v32, %s13253_s28  ;;  %s13255_s28 = smov 16  }
0x18b7   : > { %6805 = vrot.lane.b32.xlu0 %v12409_v24, %s13254_s29 }
0x18bb   : > { %6883 = vrot.lane.b32.xlu0 %v12415_v32, %s13254_s29 }
0x1919   : > { %v6129_v23 = vpop.xlane.xlu0 %6128 }
0x191a   : > { %10991 = vrcp.f32 %v6129_v23 }
0x191d   : > { %v6132_v58 = vpop.xlane.xlu1 %6131 }
0x191e   : > { %10993 = vrcp.f32 %v6132_v58 }
0x1921   : > { %v6138_v59 = vpop.xlane.xlu1 %6137 }
0x1922   : > { %10995 = vrcp.f32 %v6138_v59  ;;  %v6135_v35 = vpop.xlane.xlu0 %6134 }
0x1923   : > { %10997 = vrcp.f32 %v6135_v35 }
0x1924   : > { %v10992_v38 = vpop.eup %10991 }
0x1925   : > { %v6143_v37 = vmul.f32 %v10992_v38, %v10984_v47  ;;  %v6303_v62 = vpop.permute.xlu1 %6302 }
0x1926   : > { %v6380_v6 = vpop.permute.xlu0 %6379 }
0x1927   : > { %10303 = vmatmul.mubr.msk.f32.vlgmr.msra.gmra.mrb[72].mxu1 %vm1756_vm9, %v6143_v37 }
0x1928   : > { %v10994_v2 = vpop.eup %10993  ;;  %10311 = vmatpush3.msra.mxu1 %v6303_v62  ;;  %10312 = vmatprep.mubr.msk.f32.mxu1 %vm11132_vm0, %v11131_v0 }
0x1929   : > { %v6144_v49 = vmul.f32 %v10994_v2, %v10986_v25  ;;  %10695 = vmatprep.subr.bf16.mxu1 %v10694_v63  ;;  %v6652_v27 = vpop.permute.xlu1 %6651 }
0x192b   : > { %10308 = vmatmul.mubr.msk.f32.vlgmr.msra.gmra.mrb[62].mxu0 %vm1756_vm9, %v6144_v49 }
0x192c   : > { %v10996_v7 = vpop.eup %10995  ;;  %10316 = vmatpush3.msra.mxu0 %v6380_v6  ;;  %10317 = vmatprep.mubr.msk.f32.mxu0 %vm11132_vm0, %v11131_v0 }
0x192d   : > { %v10998_v10 = vpop.eup %10997  ;;  %v6146_v14 = vmul.f32 %v10996_v7, %v10988_v12  ;;  %10691 = vmatprep.subr.bf16.mxu0 %v10690_v5  ;;  %v6730_v28 = vpop.permute.xlu1 %6729 }
0x192e   : > { %v6145_v17 = vmul.f32 %v10998_v10, %v10990_v51 }
0x192f   : > { %10318 = vmatmul.mubr.msk.f32.vlgmr.msra.gmra.mrb[64].mxu0 %vm1756_vm9, %v6146_v14 }
0x1930   : > { %10313 = vmatmul.mubr.msk.f32.vlgmr.msra.gmra.mrb[74].mxu1 %vm1756_vm9, %v6145_v17  ;;  %10693 = vmatpush3.bf16.msra.mxu0 %v10690_v5 }
0x1931   : > { %10697 = vmatpush3.bf16.msra.mxu1 %v10694_v63  ;;  %10334 = vmatprep.mubr.msk.f32.mxu1 %vm1442_vm7, %v12518_v50  ;;  %v6808_v8 = vpop.permute.xlu1 %6807 }
0x1932   : > { %10340 = vmatprep.subr.mxu0 %v11131_v0  ;;  %10360 = vmatprep.subr.mxu1 %v11131_v0 }
0x1934   : > { %10335 = vmatmul.mubr.msk.f32.vlgmr.msra.gmra.mrb[76].mxu1 %vm1442_vm7, %v12520_v52  ;;  %v6650_v52 = vpop.permute.xlu0 %6649 }
0x1935   : > { %10337 = vmatprep.mubr.msk.f32.mxu1 %vm1442_vm7, %v12522_v55  ;;  %v6886_v34 = vpop.permute.xlu1 %6885 }
0x1938   : > { %10338 = vmatmul.mubr.msk.f32.gmra.mrb[78].mxu1 %vm1442_vm7, %v12524_v57  ;;  %v6728_v36 = vpop.permute.xlu0 %6727 }
0x1939   : > { %10362 = vmatprep.mubr.msk.f32.mxu1 %vm11132_vm0, %v11131_v0 }
0x193c   : > { %v6806_v31 = vpop.permute.xlu0 %6805 }
0x1940   : > { %v6884_v42 = vpop.permute.xlu0 %6883 }
0x19fa   : > { %v6220_v21 = vpop.f32.mrb[72].mxu1 }
0x19fb   : > { %v10304_v22 = vpop.f32.mrb[73].mxu1  ;;  %10324 = vmatprep.mubr.msk.f32.mxu0 %vm1442_vm7, %v6220_v21 }
0x19fe   : > { %v6297_v50 = vpop.f32.mrb[62].mxu0 }
0x19ff   : > { %v10309_v29 = vpop.f32.mrb[63].mxu0  ;;  %10325 = vmatmul.mubr.msk.f32.vlgmr.msra.gmra.mrb[66].mxu0 %vm1442_vm7, %v6297_v50 }
0x1a00   : > { %10341 = vmatpush3.xpose.msk.msra.mxu0 %vm1442_vm7, %v6652_v27 }
0x1a01   : > { %10345 = vmatprep.subr.mxu0 %v11131_v0 }
0x1a02   : > { %v6451_v55 = vpop.f32.mrb[64].mxu0 }
0x1a03   : > { %v6374_v33 = vpop.f32.mrb[74].mxu1  ;;  %v10319_v57 = vpop.f32.mrb[65].mxu0 }
0x1a04   : > { %v10314_v40 = vpop.f32.mrb[75].mxu1  ;;  %10327 = vmatprep.mubr.msk.f32.mxu0 %vm1442_vm7, %v6374_v33 }
0x1a05   : > { %10328 = vmatmul.mubr.msk.f32.gmra.mrb[68].mxu0 %vm1442_vm7, %v6451_v55 }
0x1a06   : > { %10342 = vmatprep.mubr.msk.f32.mxu0 %vm11132_vm0, %v11131_v0 }
0x1a09   : > { %10343 = vmatmul.mubr.msk.f32.vlgmr.msra.gmra.mrb[70].mxu0 %vm1442_vm7, %v6650_v52 }
0x1a0a   : > { %10346 = vmatpush3.xpose.msk.msra.mxu0 %vm1442_vm7, %v6730_v28  ;;  %10347 = vmatprep.mubr.msk.f32.mxu0 %vm11132_vm0, %v11131_v0 }
0x1a0b   : > { %10350 = vmatprep.subr.mxu0 %v11131_v0 }
0x1a0d   : > { %10348 = vmatmul.mubr.msk.f32.vlgmr.msra.gmra.mrb[72].mxu0 %vm1442_vm7, %v6728_v36 }
0x1a0e   : > { %10351 = vmatpush3.xpose.msk.msra.mxu0 %vm1442_vm7, %v6808_v8  ;;  %10352 = vmatprep.mubr.msk.f32.mxu0 %vm11132_vm0, %v11131_v0 }
0x1a0f   : > { %10355 = vmatprep.subr.mxu0 %v11131_v0 }
0x1a11   : > { %10353 = vmatmul.mubr.msk.f32.vlgmr.msra.gmra.mrb[74].mxu0 %vm1442_vm7, %v6806_v31 }
0x1a12   : > { %10356 = vmatpush3.xpose.msk.msra.mxu0 %vm1442_vm7, %v6886_v34  ;;  %10357 = vmatprep.mubr.msk.f32.mxu0 %vm11132_vm0, %v11131_v0 }
0x1a13   : > { %10365 = vmatprep.subr.mxu0 %v11131_v0 }
0x1a15   : > { %10358 = vmatmul.mubr.msk.f32.vlgmr.msra.gmra.mrb[76].mxu0 %vm1442_vm7, %v6884_v42 }
0x1a16   : > { %10367 = vmatprep.mubr.msk.f32.mxu0 %vm11132_vm0, %v11131_v0 }
0x1ad2   : > { %v12622_v43 = vpop.f32.mrb[66].mxu0 }
0x1ad3   : > { %v12624_v44 = vpop.f32.mrb[67].mxu0 }
0x1ad8   : > { %v12626_v46 = vpop.f32.mrb[68].mxu0 }
0x1ad9   : > { %v12628_v47 = vpop.f32.mrb[69].mxu0 }
0x1adc   : > { %v6723_v48 = vpop.f32.mrb[70].mxu0 }
0x1add   : > { %v6961_v25 = vmul.f32 0.25, %v6723_v48  ;;  %v10344_v26 = vpop.f32.mrb[71].mxu0 }
0x1ade   : > { %v9395_v26 = vld [vmem:[%s13249_s10 + $0x68] sm:$0xff] }
0x1adf   : > { %v6965_v12 = vadd.f32 %v6961_v25, %v11746_v53 }
0x1ae0   : > { %v6801_v51 = vpop.f32.mrb[72].mxu0 }
0x1ae1   : > { %v6962_v54 = vmul.f32 0.25, %v6801_v51  ;;  %v10349_v56 = vpop.f32.mrb[73].mxu0  ;;  %v6969_v23 = vsel %vm1756_vm9, %v6965_v12, -inf }
0x1ae2   : > { %6970 = vmax.xlane.f32.xlu1 %v6969_v23 }
0x1ae3   : > { %v6966_v58 = vadd.f32 %v6962_v54, %v11746_v53 }
0x1ae4   : > { %v6879_v59 = vpop.f32.mrb[74].mxu0 }
0x1ae5   : > { %v6963_v35 = vmul.f32 0.25, %v6879_v59  ;;  %v10354_v60 = vpop.f32.mrb[75].mxu0  ;;  %v6972_v61 = vsel %vm1756_vm9, %v6966_v58, -inf }
0x1ae6   : > { %6973 = vmax.xlane.f32.xlu0 %v6972_v61 }
0x1ae7   : > { %v6967_v38 = vadd.f32 %v6963_v35, %v11746_v53 }
0x1ae8   : > { %v6957_v37 = vpop.f32.mrb[76].mxu0 }
0x1ae9   : > { %v6964_v62 = vmul.f32 0.25, %v6957_v37  ;;  %v10359_v63 = vpop.f32.mrb[77].mxu0  ;;  %v6975_v1 = vsel %vm1756_vm9, %v6967_v38, -inf }
0x1aea   : > { %6976 = vmax.xlane.f32.xlu0 %v6975_v1 }
0x1aeb   : > { %v6968_v13 = vadd.f32 %v6964_v62, %v11746_v53 }
0x1aed   : > { %v6978_v2 = vsel %vm1756_vm9, %v6968_v13, -inf }
0x1aee   : > { %6979 = vmax.xlane.f32.xlu1 %v6978_v2 }
0x1aff   : > { %7089 = vrot.lane.b32.xlu1 %v12437_v39, %s13254_s29 }
0x1b00   : > { %7013 = vrot.lane.b32.xlu0 %v12427_v19, %s13254_s29 }
0x1b6f   : > { %v6971_v49 = vpop.xlane.xlu1 %6970 }
0x1b70   : > { %v6981_v5 = vsub.f32 %v6965_v12, %v6971_v49 }
0x1b72   : > { %v6985_v6 = vmul.f32 1.442695, %v6981_v5 }
0x1b73   : > { %v6974_v7 = vpop.xlane.xlu0 %6973 }
0x1b74   : > { %10999 = vpow2.f32 %v6985_v6  ;;  %v6982_v10 = vsub.f32 %v6966_v58, %v6974_v7 }
0x1b76   : > { %v6987_v14 = vmul.f32 1.442695, %v6982_v10 }
0x1b77   : > { %v6977_v17 = vpop.xlane.xlu0 %6976 }
0x1b78   : > { %11001 = vpow2.f32 %v6987_v14  ;;  %v6983_v21 = vsub.f32 %v6967_v38, %v6977_v17 }
0x1b7a   : > { %v6989_v22 = vmul.f32 1.442695, %v6983_v21 }
0x1b7b   : > { %v6980_v50 = vpop.xlane.xlu1 %6979  ;;  %v7014_v27 = vpop.permute.xlu0 %7013 }
0x1b7c   : > { %11003 = vpow2.f32 %v6989_v22  ;;  %v6984_v29 = vsub.f32 %v6968_v13, %v6980_v50  ;;  %10361 = vmatpush3.msra.mxu1 %v7014_v27 }
0x1b7d   : > { %10370 = vmatprep.subr.mxu1 %v11131_v0 }
0x1b7e   : > { %v11000_v52 = vpop.eup %10999  ;;  %v6991_v55 = vmul.f32 1.442695, %v6984_v29 }
0x1b7f   : > { %v7090_v33 = vpop.permute.xlu1 %7089  ;;  %v6993_v57 = vsel %vm1756_vm9, %v11000_v52, 0.0 }
0x1b80   : > { %11005 = vpow2.f32 %v6991_v55  ;;  %6994 = vadd.xlane.f32.xlu0 %v6993_v57  ;;  %10366 = vmatpush3.msra.mxu0 %v7090_v33 }
0x1b81   : > { %10375 = vmatprep.subr.mxu0 %v11131_v0 }
0x1b82   : > { %v11002_v40 = vpop.eup %11001 }
0x1b83   : > { %v6996_v28 = vsel %vm1756_vm9, %v11002_v40, 0.0 }
0x1b84   : > { %6997 = vadd.xlane.f32.xlu1 %v6996_v28 }
0x1b86   : > { %v11004_v36 = vpop.eup %11003 }
0x1b87   : > { %v6999_v8 = vsel %vm1756_vm9, %v11004_v36, 0.0 }
0x1b88   : > { %7000 = vadd.xlane.f32.xlu0 %v6999_v8 }
0x1b8a   : > { %v11006_v31 = vpop.eup %11005 }
0x1b8b   : > { %v7002_v34 = vsel %vm1756_vm9, %v11006_v31, 0.0 }
0x1b8c   : > { %7003 = vadd.xlane.f32.xlu1 %v7002_v34 }
0x1b9d   : > { %7165 = vrot.lane.b32.xlu1 %v12468_v16, %s13254_s29 }
0x1b9e   : > { %7241 = vrot.lane.b32.xlu0 %v12477_v3, %s13254_s29  ;;  %s760_s29 = sand.u32 1, %s11121_s2  }
0x1b9f   : > { %s761_s27 = scalar_lea.vmem [#allocation3], %s760_s29  ;;  %s9185_s8 = scalar_lea.sflag [#allocation4], %s760_s29 }
0x1ba0   : > { %s9200_s3 = sshll.u32 %s761_s27, 4  ;;  %s13123_s3 = int_to_ptr.vmem [resolvable:$true] %s9200_s3 }
0x1ba1   : > { %7420 = vrot.lane.b32.xlu1 %v12389_v9, %s13255_s28  ;;  %s11067_s6 = scalar_lea.vmem %s13123_s3, 16 }
0x1ba2   : > { %7418 = vrot.lane.b32.xlu0 %v12389_v9, %s13256_s30  ;;  %p11068_p11 = scmp.ne.s32.totalorder %s13123_s3, %s11067_s6 }
0x1ba4   : > { %p11069_p12 = pnand %p11068_p11, %p11311_p5 }
0x1ba5   : > { %7498 = vrot.lane.b32.xlu1 %v12393_v15, %s13255_s28 }
0x1ba6   : > { %7496 = vrot.lane.b32.xlu0 %v12393_v15, %s13256_s30  ;;  %v9394_v15 = vld [vmem:[%s13249_s10 + $0x60] sm:$0xff]  ;;  %p11070_p13 = pneg %p11069_p12 }
0x1ba9   : > { %7576 = vrot.lane.b32.xlu1 %v12409_v24, %s13255_s28 }
0x1baa   : > { %7654 = vrot.lane.b32.xlu0 %v12415_v32, %s13255_s28 }
0x1bad   : > { %7574 = vrot.lane.b32.xlu1 %v12409_v24, %s13256_s30 }
0x1bae   : > { %7652 = vrot.lane.b32.xlu0 %v12415_v32, %s13256_s30  ;;  %v10698_v32 = vpack.c.bf16 %v9395_v26, %v9394_v15 }
0x1c0d   : > { %v6995_v42 = vpop.xlane.xlu0 %6994 }
0x1c0e   : > { %11007 = vrcp.f32 %v6995_v42 }
0x1c11   : > { %v6998_v9 = vpop.xlane.xlu1 %6997 }
0x1c12   : > { %11009 = vrcp.f32 %v6998_v9 }
0x1c15   : > { %v7001_v48 = vpop.xlane.xlu0 %7000 }
0x1c16   : > { %11011 = vrcp.f32 %v7001_v48 }
0x1c18   : > { %v11008_v25 = vpop.eup %11007 }
0x1c19   : > { %v7009_v12 = vmul.f32 %v11008_v25, %v11000_v52  ;;  %v7004_v24 = vpop.xlane.xlu1 %7003  ;;  %v7242_v51 = vpop.permute.xlu0 %7241 }
0x1c1a   : > { %11013 = vrcp.f32 %v7004_v24 }
0x1c1b   : > { %10363 = vmatmul.mubr.msk.f32.vlgmr.msra.gmra.mrb[80].mxu1 %vm1756_vm9, %v7009_v12 }
0x1c1c   : > { %v11010_v54 = vpop.eup %11009  ;;  %10372 = vmatprep.mubr.msk.f32.mxu1 %vm11132_vm0, %v11131_v0 }
0x1c1d   : > { %v7010_v56 = vmul.f32 %v11010_v54, %v11002_v40  ;;  %v7166_v23 = vpop.permute.xlu1 %7165  ;;  %v7419_v59 = vpop.permute.xlu0 %7418 }
0x1c1e   : > { %10371 = vmatpush3.msra.mxu1 %v7166_v23 }
0x1c1f   : > { %10368 = vmatmul.mubr.msk.f32.vlgmr.msra.gmra.mrb[78].mxu0 %vm1756_vm9, %v7010_v56  ;;  %10699 = vmatprep.subr.bf16.mxu1 %v10698_v32 }
0x1c20   : > { %v11012_v58 = vpop.eup %11011  ;;  %10376 = vmatpush3.msra.mxu0 %v7242_v51  ;;  %10377 = vmatprep.mubr.msk.f32.mxu0 %vm11132_vm0, %v11131_v0 }
0x1c21   : > { %v7011_v35 = vmul.f32 %v11012_v58, %v11004_v36  ;;  %10390 = vmatprep.subr.mxu0 %v11131_v0  ;;  %v7421_v38 = vpop.permute.xlu1 %7420  ;;  %v7497_v37 = vpop.permute.xlu0 %7496 }
0x1c23   : > { %10373 = vmatmul.mubr.msk.f32.vlgmr.msra.gmra.mrb[82].mxu1 %vm1756_vm9, %v7011_v35 }
0x1c24   : > { %v11014_v60 = vpop.eup %11013  ;;  %10701 = vmatpush3.bf16.msra.mxu1 %v10698_v32 }
0x1c25   : > { %v7012_v61 = vmul.f32 %v11014_v60, %v11006_v31  ;;  %10400 = vmatprep.subr.mxu1 %v11131_v0  ;;  %v7499_v62 = vpop.permute.xlu1 %7498  ;;  %v7655_v63 = vpop.permute.xlu0 %7654 }
0x1c27   : > { %10378 = vmatmul.mubr.msk.f32.vlgmr.msra.gmra.mrb[80].mxu0 %vm1756_vm9, %v7012_v61 }
0x1c28   : > { %10391 = vmatpush3.xpose.msk.msra.mxu0 %vm1442_vm7, %v7421_v38  ;;  %10392 = vmatprep.mubr.msk.f32.mxu0 %vm11132_vm0, %v11131_v0 }
0x1c29   : > { %10395 = vmatprep.subr.mxu0 %v11131_v0  ;;  %v7653_v1 = vpop.permute.xlu0 %7652  ;;  %v7577_v5 = vpop.permute.xlu1 %7576 }
0x1c2b   : > { %10393 = vmatmul.mubr.msk.f32.vlgmr.msra.gmra.mrb[82].mxu0 %vm1442_vm7, %v7419_v59 }
0x1c2c   : > { %10396 = vmatpush3.xpose.msk.msra.mxu0 %vm1442_vm7, %v7499_v62  ;;  %10397 = vmatprep.mubr.msk.f32.mxu0 %vm11132_vm0, %v11131_v0 }
0x1c2d   : > { %10405 = vmatprep.subr.mxu0 %v11131_v0  ;;  %v7575_v21 = vpop.permute.xlu1 %7574 }
0x1c2f   : > { %10398 = vmatmul.mubr.msk.f32.vlgmr.msra.gmra.mrb[84].mxu0 %vm1442_vm7, %v7497_v37 }
0x1c30   : > { %10406 = vmatpush3.xpose.msk.msra.mxu0 %vm1442_vm7, %v7655_v63  ;;  %10407 = vmatprep.mubr.msk.f32.mxu0 %vm11132_vm0, %v11131_v0 }
0x1c31   : > { %10415 = vmatprep.subr.mxu0 %v11131_v0 }
0x1c33   : > { %10408 = vmatmul.mubr.msk.f32.vlgmr.msra.gmra.mrb[86].mxu0 %vm1442_vm7, %v7653_v1 }
0x1c34   : > { %10417 = vmatprep.mubr.msk.f32.mxu0 %vm11132_vm0, %v11131_v0 }
0x1cee   : > { %v7085_v13 = vpop.f32.mrb[80].mxu1 }
0x1cef   : > { %v10364_v2 = vpop.f32.mrb[81].mxu1  ;;  %10384 = vmatprep.mubr.msk.f32.mxu1 %vm1442_vm7, %v7085_v13 }
0x1cf2   : > { %v7161_v49 = vpop.f32.mrb[78].mxu0 }
0x1cf3   : > { %v10369_v6 = vpop.f32.mrb[79].mxu0  ;;  %10385 = vmatmul.mubr.msk.f32.vlgmr.msra.gmra.mrb[76].mxu1 %vm1442_vm7, %v7161_v49 }
0x1cf4   : > { %10401 = vmatpush3.xpose.msk.msra.mxu1 %vm1442_vm7, %v7577_v5 }
0x1cf5   : > { %10410 = vmatprep.subr.mxu1 %v11131_v0 }
0x1cf6   : > { %v7237_v7 = vpop.f32.mrb[82].mxu1 }
0x1cf7   : > { %v10374_v10 = vpop.f32.mrb[83].mxu1  ;;  %10387 = vmatprep.mubr.msk.f32.mxu1 %vm1442_vm7, %v7237_v7 }
0x1cfa   : > { %v7313_v14 = vpop.f32.mrb[80].mxu0 }
0x1cfb   : > { %v10379_v17 = vpop.f32.mrb[81].mxu0  ;;  %10388 = vmatmul.mubr.msk.f32.gmra.mrb[78].mxu1 %vm1442_vm7, %v7313_v14 }
0x1cfc   : > { %10402 = vmatprep.mubr.msk.f32.mxu1 %vm11132_vm0, %v11131_v0 }
0x1cfe   : > { %v7492_v22 = vpop.f32.mrb[82].mxu0 }
0x1cff   : > { %v7730_v50 = vmul.f32 0.25, %v7492_v22  ;;  %v10394_v27 = vpop.f32.mrb[83].mxu0  ;;  %10403 = vmatmul.mubr.msk.f32.vlgmr.msra.gmra.mrb[84].mxu1 %vm1442_vm7, %v7575_v21  ;;  %v9396_v21 = vld [vmem:[%s13249_s10 + $0x70] sm:$0xff]  ;;  %v9397_v22 = vld [vmem:[%s13249_s10 + $0x78] sm:$0xff] }
0x1d00   : > { %10412 = vmatprep.mubr.msk.f32.mxu1 %vm11132_vm0, %v11131_v0 }
0x1d01   : > { %v7734_v29 = vadd.f32 %v7730_v50, %v11746_v53  ;;  %v10702_v50 = vpack.c.bf16 %v9397_v22, %v9396_v21  ;;  %v9477_v21 = vld [vmem:[%s13177_s14 + $0xc8] sm:$0xff]  ;;  %v9479_v22 = vld [vmem:[%s13177_s14 + $0xd8] sm:$0xff] }
0x1d02   : > { %v7570_v52 = vpop.f32.mrb[84].mxu0 }
0x1d03   : > { %v7731_v55 = vmul.f32 0.25, %v7570_v52  ;;  %v10399_v33 = vpop.f32.mrb[85].mxu0  ;;  %v7738_v57 = vsel %vm1756_vm9, %v7734_v29, -inf }
0x1d04   : > { %7739 = vmax.xlane.f32.xlu1 %v7738_v57 }
0x1d05   : > { %v7735_v40 = vadd.f32 %v7731_v55, %v11746_v53 }
0x1d06   : > { %v7726_v28 = vpop.f32.mrb[86].mxu0 }
0x1d07   : > { %v7733_v36 = vmul.f32 0.25, %v7726_v28  ;;  %v10409_v8 = vpop.f32.mrb[87].mxu0  ;;  %v7741_v31 = vsel %vm1756_vm9, %v7735_v40, -inf }
0x1d08   : > { %7742 = vmax.xlane.f32.xlu0 %v7741_v31 }
0x1d09   : > { %v7737_v34 = vadd.f32 %v7733_v36, %v11746_v53 }
0x1d0b   : > { %v7747_v42 = vsel %vm1756_vm9, %v7737_v34, -inf }
0x1d0c   : > { %7748 = vmax.xlane.f32.xlu1 %v7747_v42 }
0x1d91   : > { %v7740_v9 = vpop.xlane.xlu1 %7739 }
0x1d92   : > { %v7750_v23 = vsub.f32 %v7734_v29, %v7740_v9 }
0x1d94   : > { %v7754_v58 = vmul.f32 1.442695, %v7750_v23 }
0x1d95   : > { %v7743_v48 = vpop.xlane.xlu0 %7742 }
0x1d96   : > { %v7751_v25 = vsub.f32 %v7735_v40, %v7743_v48 }
0x1d98   : > { %v7756_v15 = vmul.f32 1.442695, %v7751_v25 }
0x1d99   : > { %v7749_v26 = vpop.xlane.xlu1 %7748 }
0x1d9a   : > { %11015 = vpow2.f32 %v7756_v15  ;;  %v7753_v12 = vsub.f32 %v7737_v34, %v7749_v26  ;;  %v9463_v15 = vld [vmem:[%s13174_s11 + $0x1] ss:$0 sm:$0xff] }
0x1d9c   : > { %v7760_v24 = vmul.f32 1.442695, %v7753_v12 }
0x1d9e   : > { %11017 = vpow2.f32 %v7760_v24 }
0x1d9f   : > { %11019 = vpow2.f32 %v7754_v58 }
0x1da4   : > { %v11016_v51 = vpop.eup %11015 }
0x1da5   : > { %v7765_v32 = vsel %vm1756_vm9, %v11016_v51, 0.0 }
0x1da6   : > { %7766 = vadd.xlane.f32.xlu1 %v7765_v32 }
0x1da8   : > { %v11018_v54 = vpop.eup %11017 }
0x1da9   : > { %v7771_v56 = vsel %vm1756_vm9, %v11018_v54, 0.0  ;;  %v11020_v37 = vpop.eup %11019 }
0x1daa   : > { %7772 = vadd.xlane.f32.xlu1 %v7771_v56  ;;  %v7762_v62 = vsel %vm1756_vm9, %v11020_v37, 0.0 }
0x1dbb   : > { %7858 = vrot.lane.b32.xlu1 %v12437_v39, %s13256_s30 }
0x1dbf   : > { %7934 = vrot.lane.b32.xlu1 %v12468_v16, %s13256_s30 }
0x1dd2   : > { %v7648_v59 = vpop.f32.mrb[84].mxu1 }
0x1dd3   : > { %v7732_v35 = vmul.f32 0.25, %v7648_v59  ;;  %v10404_v60 = vpop.f32.mrb[85].mxu1 }
0x1dd5   : > { %v7736_v61 = vadd.f32 %v7732_v35, %v11746_v53 }
0x1dd7   : > { %v7744_v38 = vsel %vm1756_vm9, %v7736_v61, -inf }
0x1dd8   : > { %7745 = vmax.xlane.f32.xlu0 %v7744_v38 }
0x1ddc   : > { %7763 = vadd.xlane.f32.xlu0 %v7762_v62 }
0x1df2   : > { %7782 = vrot.lane.b32.xlu0 %v12427_v19, %s13256_s30 }
0x1e33   : > { %v7767_v39 = vpop.xlane.xlu1 %7766 }
0x1e34   : > { %11021 = vrcp.f32 %v7767_v39 }
0x1e37   : > { %v7773_v16 = vpop.xlane.xlu1 %7772 }
0x1e3b   : > { %v7859_v63 = vpop.permute.xlu1 %7858 }
0x1e3c   : > { %10416 = vmatpush3.msra.mxu0 %v7859_v63 }
0x1e3d   : > { %10425 = vmatprep.subr.mxu0 %v11131_v0 }
0x1e3e   : > { %v11022_v1 = vpop.eup %11021 }
0x1e3f   : > { %v7779_v13 = vmul.f32 %v11022_v1, %v11016_v51  ;;  %v7935_v17 = vpop.permute.xlu1 %7934  ;;  %v9469_v1 = vld [vmem:[%s13177_s14 + $0x88] sm:$0xff] }
0x1e41   : > { %10418 = vmatmul.mubr.msk.f32.vlgmr.msra.gmra.mrb[88].mxu0 %vm1756_vm9, %v7779_v13  ;;  %v9471_v13 = vld [vmem:[%s13177_s14 + $0x98] sm:$0xff] }
0x1e42   : > { %10427 = vmatprep.mubr.msk.f32.mxu0 %vm11132_vm0, %v11131_v0 }
0x1e65   : > { %v7746_v53 = vpop.xlane.xlu0 %7745 }
0x1e66   : > { %v7752_v2 = vsub.f32 %v7736_v61, %v7746_v53  ;;  %v10706_v53 = vpack.c.bf16 %v9471_v13, %v9469_v1  ;;  %v9507_v1 = vld [vmem:[%s13179_s16 + $0x190] sm:$0xff]  ;;  %v9508_v13 = vld [vmem:[%s13179_s16 + $0x198] sm:$0xff] }
0x1e68   : > { %v7758_v49 = vmul.f32 1.442695, %v7752_v2  ;;  %v9468_v2 = vld [vmem:[%s13177_s14 + $0x80] sm:$0xff] }
0x1e69   : > { %v7764_v5 = vpop.xlane.xlu0 %7763 }
0x1e6a   : > { %11023 = vpow2.f32 %v7758_v49  ;;  %v9470_v49 = vld [vmem:[%s13177_s14 + $0x90] sm:$0xff] }
0x1e6b   : > { %11025 = vrcp.f32 %v7764_v5  ;;  %v10708_v5 = vpack.c.bf16 %v9470_v49, %v9468_v2  ;;  %v9491_v2 = vld [vmem:[%s13179_s16 + $0x110] sm:$0xff]  ;;  %v9492_v49 = vld [vmem:[%s13179_s16 + $0x118] sm:$0xff] }
0x1e6c   : > { %11027 = vrcp.f32 %v7773_v16 }
0x1e6d   : > { %v7783_v19 = vpop.permute.xlu0 %7782 }
0x1e6e   : > { %10411 = vmatpush3.msra.mxu1 %v7783_v19  ;;  %v9473_v19 = vld [vmem:[%s13177_s14 + $0xa8] sm:$0xff] }
0x1e6f   : > { %10420 = vmatprep.subr.mxu1 %v11131_v0 }
0x1e74   : > { %v11024_v6 = vpop.eup %11023 }
0x1e75   : > { %v11026_v7 = vpop.eup %11025  ;;  %v7768_v10 = vsel %vm1756_vm9, %v11024_v6, 0.0 }
0x1e76   : > { %v7778_v14 = vmul.f32 %v11026_v7, %v11020_v37  ;;  %7769 = vadd.xlane.f32.xlu0 %v7768_v10  ;;  %v11028_v29 = vpop.eup %11027  ;;  %v9472_v10 = vld [vmem:[%s13177_s14 + $0xa0] sm:$0xff] }
0x1e77   : > { %v7781_v52 = vmul.f32 %v11028_v29, %v11018_v54  ;;  %v9478_v29 = vld [vmem:[%s13177_s14 + $0xd0] sm:$0xff] }
0x1e78   : > { %10413 = vmatmul.mubr.msk.f32.vlgmr.msra.gmra.mrb[86].mxu1 %vm1756_vm9, %v7778_v14  ;;  %v9474_v14 = vld [vmem:[%s13177_s14 + $0xb0] sm:$0xff] }
0x1e79   : > { %10421 = vmatpush3.msra.mxu1 %v7935_v17  ;;  %10422 = vmatprep.mubr.msk.f32.mxu1 %vm11132_vm0, %v11131_v0  ;;  %v10712_v17 = vpack.c.bf16 %v9474_v14, %v9472_v10  ;;  %v9493_v10 = vld [vmem:[%s13179_s16 + $0x120] sm:$0xff]  ;;  %v9494_v14 = vld [vmem:[%s13179_s16 + $0x128] sm:$0xff] }
0x1e7a   : > { %10703 = vmatprep.subr.bf16.mxu1 %v10702_v50 }
0x1e8c   : > { %8010 = vrot.lane.b32.xlu0 %v12477_v3, %s13256_s30  ;;  %s13258_s30 = sld [smem:[#allocation24_spill]] }
0x1e92   : > { %s13259_s0 = smov %s13258_s30  ;;  %s13121_s1 = scalar_lea.hbm %s13258_s30, %s9532_s5 }
0x1f03   : > { %v7770_v27 = vpop.xlane.xlu0 %7769 }
0x1f04   : > { %11029 = vrcp.f32 %v7770_v27  ;;  %v9476_v27 = vld [vmem:[%s13177_s14 + $0xc0] sm:$0xff] }
0x1f07   : > { %v8011_v55 = vpop.permute.xlu0 %8010 }
0x1f08   : > { %10426 = vmatpush3.msra.mxu0 %v8011_v55  ;;  %v9481_v55 = vld [vmem:[%s13177_s14 + $0xe8] sm:$0xff] }
0x1f09   : > { %10428 = vmatmul.mubr.msk.f32.vlgmr.msra.gmra.mrb[90].mxu0 %vm1756_vm9, %v7781_v52  ;;  %10707 = vmatprep.subr.bf16.mxu0 %v10706_v53  ;;  %v10716_v52 = vpack.c.bf16 %v9478_v29, %v9476_v27  ;;  %v10726_v53 = vpack.c.bf16 %v9508_v13, %v9507_v1  ;;  %v9495_v27 = vld [vmem:[%s13179_s16 + $0x130] sm:$0xff]  ;;  %v9496_v29 = vld [vmem:[%s13179_s16 + $0x138] sm:$0xff] }
0x1f0a   : > { %8385 = vmatprep.mubr.f32.mxu0 %v11131_v0  ;;  %10709 = vmatpush1.bf16.msra.mxu0 %v10708_v5  ;;  %v10728_v5 = vpack.c.bf16 %v9492_v49, %v9491_v2 }
0x1f0e   : > { %v11030_v3 = vpop.eup %11029 }
0x1f0f   : > { %v7780_v33 = vmul.f32 %v11030_v3, %v11024_v6  ;;  %v9475_v6 = vld [vmem:[%s13177_s14 + $0xb8] sm:$0xff] }
0x1f10   : > { %v10710_v7 = vpack.c.bf16 %v9475_v6, %v9473_v19  ;;  %v9483_v3 = vld [vmem:[%s13177_s14 + $0xf8] sm:$0xff]  ;;  %v9509_v19 = vld [vmem:[%s13179_s16 + $0x1a0] sm:$0xff]  ;;  %v9510_v6 = vld [vmem:[%s13179_s16 + $0x1a8] sm:$0xff] }
0x1f11   : > { %10423 = vmatmul.mubr.msk.f32.vlgmr.msra.gmra.mrb[88].mxu1 %vm1756_vm9, %v7780_v33  ;;  %v9480_v33 = vld [vmem:[%s13177_s14 + $0xe0] sm:$0xff] }
0x1f12   : > { %10705 = vmatpush3.bf16.msra.mxu1 %v10702_v50  ;;  %10711 = vmatprep.subr.bf16.mxu0 %v10710_v7  ;;  %v10714_v50 = vpack.c.bf16 %v9479_v22, %v9477_v21  ;;  %v10730_v7 = vpack.c.bf16 %v9510_v6, %v9509_v19  ;;  %v9511_v21 = vld [vmem:[%s13179_s16 + $0x1b0] sm:$0xff]  ;;  %v9512_v22 = vld [vmem:[%s13179_s16 + $0x1b8] sm:$0xff] }
0x1f13   : > { %10713 = vmatpush1.bf16.msra.mxu0 %v10712_v17  ;;  %v10732_v17 = vpack.c.bf16 %v9494_v14, %v9493_v10 }
0x1f14   : > { %v7930_v57 = vpop.f32.mrb[88].mxu0  ;;  %10715 = vmatprep.subr.bf16.mxu0 %v10714_v50  ;;  %v10734_v50 = vpack.c.bf16 %v9512_v22, %v9511_v21 }
0x1f15   : > { %v10419_v40 = vpop.f32.mrb[89].mxu0 }
0x1f16   : > { %v9482_v40 = vld [vmem:[%s13177_s14 + $0xf0] sm:$0xff] }
0x1f17   : > { %10717 = vmatpush1.bf16.msra.mxu0 %v10716_v52  ;;  %v10736_v52 = vpack.c.bf16 %v9496_v29, %v9495_v27 }
0x1f4b   : > { %v7854_v28 = vpop.f32.mrb[86].mxu1 }
0x1f4c   : > { %v10414_v36 = vpop.f32.mrb[87].mxu1  ;;  %10434 = vmatprep.mubr.msk.f32.mxu1 %vm1442_vm7, %v7854_v28  ;;  %v10720_v28 = vpack.c.bf16 %v9482_v40, %v9480_v33  ;;  %v9498_v40 = vld [vmem:[%s13179_s16 + $0x148] sm:$0xff] }
0x1f4d   : > { %10435 = vmatmul.mubr.msk.f32.vlgmr.msra.gmra.mrb[76].mxu1 %vm1442_vm7, %v7930_v57  ;;  %v10718_v57 = vpack.c.bf16 %v9483_v3, %v9481_v55  ;;  %v9513_v55 = vld [vmem:[%s13179_s16 + $0x1c0] sm:$0xff]  ;;  %v9514_v3 = vld [vmem:[%s13179_s16 + $0x1c8] sm:$0xff] }
0x1f4e   : > { %v10738_v33 = vpack.c.bf16 %v9514_v3, %v9513_v55 }
0x1f4f   : > { %10719 = vmatprep.subr.bf16.mxu0 %v10718_v57  ;;  %v9497_v57 = vld [vmem:[%s13179_s16 + $0x140] sm:$0xff] }
0x1f50   : > { %10721 = vmatpush1.bf16.msra.mxu0 %v10720_v28  ;;  %v10740_v28 = vpack.c.bf16 %v9498_v40, %v9497_v57 }
0x1f51   : > { %10754 = vmatprep.subr.bf16.mxu0 %v11134_v4 }
0x1fdc   : > { %v8082_v8 = vpop.f32.mrb[90].mxu0 }
0x1fdd   : > { %v10429_v31 = vpop.f32.mrb[91].mxu0 }
0x1fe4   : > { %v8006_v34 = vpop.f32.mrb[88].mxu1 }
0x1fe5   : > { %v10424_v42 = vpop.f32.mrb[89].mxu1  ;;  %10437 = vmatprep.mubr.msk.f32.mxu1 %vm1442_vm7, %v8006_v34 }
0x1fe6   : > { %10438 = vmatmul.mubr.msk.f32.gmra.mrb[78].mxu1 %vm1442_vm7, %v8082_v8 }
0x2020   : > { %v10436_v9 = vpop.f32.mrb[76].mxu1 }
0x2021   : > { %v10778_v48 = vadd.f32 %v10436_v9, %v12622_v43  ;;  %v8164_v25 = vpop.f32.mrb[77].mxu1 }
0x2022   : > { %v10779_v26 = vadd.f32 %v8164_v25, %v12624_v44 }
0x2023   : > { %v8188_v12 = vadd.f32 %v10778_v48, %v12289_v41 }
0x2024   : > { %v8187_v24 = vadd.f32 %v10779_v26, %v12284_v30 }
0x2025   : > { %v12760_v51 = vadd.f32 %v9463_v15, %v8188_v12 }
0x2026   : > { %v12762_v32 = vadd.f32 %v9463_v15, %v8187_v24 }
0x2027   : > { %v8210_v54 = vsel %vm1228_vm6, %v12760_v51, 0.0 }
0x2028   : > { %8211 = vadd.xlane.f32.xlu0 %v8210_v54  ;;  %v8207_v43 = vsel %vm1228_vm6, %v12762_v32, 0.0 }
0x2029   : > { %8208 = vadd.xlane.f32.xlu1 %v8207_v43 }
0x20b5   : > { %v8212_v56 = vpop.xlane.xlu0 %8211 }
0x20b6   : > { %v8209_v23 = vpop.xlane.xlu1 %8208  ;;  %v8220_v58 = vmul.f32 0.015625, %v8212_v56 }
0x20b7   : > { %v8219_v44 = vmul.f32 0.015625, %v8209_v23 }
0x20b8   : > { %v12771_v60 = vsub.f32 %v12760_v51, %v8220_v58 }
0x20b9   : > { %v10439_v59 = vpop.f32.mrb[78].mxu1  ;;  %v12775_v38 = vsub.f32 %v12762_v32, %v8219_v44 }
0x20ba   : > { %v10780_v41 = vadd.f32 %v10439_v59, %v12626_v46  ;;  %v8174_v30 = vpop.f32.mrb[79].mxu1  ;;  %v12856_v59 = vld [vmem:[%s13175_s12 + $0x1] ss:$0 sm:$0xff] }
0x20bb   : > { %v10781_v35 = vadd.f32 %v8174_v30, %v12628_v47  ;;  %v8228_v47 = vmul.f32 %v12771_v60, %v12771_v60 }
0x20bc   : > { %v8190_v61 = vadd.f32 %v10780_v41, %v12302_v45  ;;  %v8227_v45 = vmul.f32 %v12775_v38, %v12775_v38 }
0x20bd   : > { %v8189_v37 = vadd.f32 %v10781_v35, %v12294_v11  ;;  %v8234_v11 = vsel %vm1228_vm6, %v8228_v47, 0.0  ;;  %v12863_v35 = vld [vmem:[%s13176_s13 + $0x1] ss:$0 sm:$0xff] }
0x20be   : > { %v12778_v62 = vadd.f32 %v9463_v15, %v8190_v61  ;;  %v8231_v63 = vsel %vm1228_vm6, %v8227_v45, 0.0  ;;  %v9489_v45 = vld [vmem:[%s13179_s16 + $0x100] sm:$0xff] }
0x20bf   : > { %v12780_v39 = vadd.f32 %v9463_v15, %v8189_v37 }
0x20c0   : > { %v8216_v46 = vsel %vm1228_vm6, %v12778_v62, 0.0 }
0x20c1   : > { %8217 = vadd.xlane.f32.xlu1 %v8216_v46  ;;  %v8213_v16 = vsel %vm1228_vm6, %v12780_v39, 0.0 }
0x20c2   : > { %8214 = vadd.xlane.f32.xlu0 %v8213_v16 }
0x20c5   : > { %8235 = vadd.xlane.f32.xlu1 %v8234_v11  ;;  %v9490_v11 = vld [vmem:[%s13179_s16 + $0x108] sm:$0xff] }
0x20c6   : > { %8232 = vadd.xlane.f32.xlu0 %v8231_v63  ;;  %v10724_v63 = vpack.c.bf16 %v9490_v11, %v9489_v45 }
0x214e   : > { %v8218_v36 = vpop.xlane.xlu1 %8217 }
0x214f   : > { %v8222_v8 = vmul.f32 0.015625, %v8218_v36  ;;  %v8215_v31 = vpop.xlane.xlu0 %8214  ;;  %v9515_v36 = vld [vmem:[%s13179_s16 + $0x1d0] sm:$0xff] }
0x2150   : > { %v8221_v34 = vmul.f32 0.015625, %v8215_v31 }
0x2151   : > { %v12842_v42 = vsub.f32 %v12778_v62, %v8222_v8  ;;  %v9516_v8 = vld [vmem:[%s13179_s16 + $0x1d8] sm:$0xff] }
0x2152   : > { %v12845_v9 = vsub.f32 %v12780_v39, %v8221_v34  ;;  %v8236_v48 = vpop.xlane.xlu1 %8235  ;;  %v10742_v31 = vpack.c.bf16 %v9516_v8, %v9515_v36  ;;  %v9499_v34 = vld [vmem:[%s13179_s16 + $0x150] sm:$0xff] }
0x2153   : > { %v8244_v25 = vmul.f32 0.015625, %v8236_v48  ;;  %v8233_v15 = vpop.xlane.xlu0 %8232  ;;  %v8230_v26 = vmul.f32 %v12842_v42, %v12842_v42  ;;  %v9500_v48 = vld [vmem:[%s13179_s16 + $0x158] sm:$0xff] }
0x2154   : > { %v8243_v12 = vmul.f32 0.015625, %v8233_v15  ;;  %v8229_v24 = vmul.f32 %v12845_v9, %v12845_v9  ;;  %v9517_v15 = vld [vmem:[%s13179_s16 + $0x1e0] sm:$0xff] }
0x2155   : > { %v8248_v54 = vadd.f32 1e-06, %v8244_v25  ;;  %v8240_v43 = vsel %vm1228_vm6, %v8230_v26, 0.0  ;;  %v10744_v25 = vpack.c.bf16 %v9500_v48, %v9499_v34  ;;  %v9518_v26 = vld [vmem:[%s13179_s16 + $0x1e8] sm:$0xff] }
0x2156   : > { %v8247_v56 = vadd.f32 1e-06, %v8243_v12  ;;  %8241 = vadd.xlane.f32.xlu1 %v8240_v43  ;;  %v8237_v23 = vsel %vm1228_vm6, %v8229_v24, 0.0  ;;  %v10746_v12 = vpack.c.bf16 %v9518_v26, %v9517_v15  ;;  %v9501_v24 = vld [vmem:[%s13179_s16 + $0x160] sm:$0xff] }
0x2157   : > { %11031 = vrsqrt.f32 %v8248_v54  ;;  %8238 = vadd.xlane.f32.xlu0 %v8237_v23  ;;  %v9502_v54 = vld [vmem:[%s13179_s16 + $0x168] sm:$0xff]  ;;  %v9520_v23 = vld [vmem:[%s13179_s16 + $0x1f8] sm:$0xff] }
0x2158   : > { %11033 = vrsqrt.f32 %v8247_v56  ;;  %v10748_v43 = vpack.c.bf16 %v9502_v54, %v9501_v24  ;;  %v9519_v56 = vld [vmem:[%s13179_s16 + $0x1f0] sm:$0xff] }
0x2161   : > { %v11032_v58 = vpop.eup %11031 }
0x2162   : > { %v11034_v44 = vpop.eup %11033  ;;  %v8256_v30 = vmul.f32 %v11032_v58, %v12771_v60  ;;  %v9505_v60 = vld [vmem:[%s13179_s16 + $0x180] sm:$0xff]  ;;  %v10750_v58 = vpack.c.bf16 %v9520_v23, %v9519_v56 }
0x2163   : > { %v8255_v41 = vmul.f32 %v11034_v44, %v12775_v38  ;;  %v9506_v38 = vld [vmem:[%s13179_s16 + $0x188] sm:$0xff]  ;;  %v9503_v44 = vld [vmem:[%s13179_s16 + $0x170] sm:$0xff] }
0x2164   : > { %v8266_v46 = vmul.f32 %v12856_v59, %v8256_v30  ;;  %v10722_v16 = vpack.c.bf16 %v9506_v38, %v9505_v60 }
0x2165   : > { %v8265_v61 = vmul.f32 %v12856_v59, %v8255_v41  ;;  %v9504_v41 = vld [vmem:[%s13179_s16 + $0x178] sm:$0xff] }
0x2166   : > { %v8276_v47 = vadd.f32 %v12863_v35, %v8266_v46  ;;  %10723 = vmatprep.subr.bf16.mxu1 %v10722_v16  ;;  %v10752_v30 = vpack.c.bf16 %v9504_v41, %v9503_v44 }
0x2167   : > { %v8275_v37 = vadd.f32 %v12863_v35, %v8265_v61  ;;  %10725 = vmatpush3.bf16.msra.mxu1 %v10724_v63 }
0x2168   : > { %10727 = vmatprep.subr.bf16.mxu1 %v10726_v53 }
0x2169   : > { %9485 = vmatmul.mubr.msk.f32.vlgmr.msra.gmra.mrb[92].mxu0 %vm1228_vm6, %v8275_v37 }
0x216a   : > { %8391 = vmatprep.mubr.f32.mxu0 %v11131_v0 }
0x216b   : > { %10729 = vmatpush3.bf16.msra.mxu1 %v10728_v5 }
0x216c   : > { %10731 = vmatprep.subr.bf16.mxu1 %v10730_v7 }
0x216d   : > { %9486 = vmatmul.mubr.msk.f32.gmra.mrb[94].mxu0 %vm1228_vm6, %v8276_v47 }
0x216e   : > { %8397 = vmatprep.mubr.f32.mxu0 %v11131_v0 }
0x216f   : > { %10733 = vmatpush3.bf16.msra.mxu1 %v10732_v17 }
0x2170   : > { %10735 = vmatprep.subr.bf16.mxu1 %v10734_v50 }
0x2173   : > { %10737 = vmatpush3.bf16.msra.mxu1 %v10736_v52 }
0x2174   : > { %10739 = vmatprep.subr.bf16.mxu1 %v10738_v33 }
0x2177   : > { %10741 = vmatpush3.bf16.msra.mxu1 %v10740_v28 }
0x2178   : > { %10743 = vmatprep.subr.bf16.mxu1 %v10742_v31 }
0x217b   : > { %10745 = vmatpush3.bf16.msra.mxu1 %v10744_v25 }
0x217c   : > { %10747 = vmatprep.subr.bf16.mxu1 %v10746_v12 }
0x217f   : > { %10749 = vmatpush3.bf16.msra.mxu1 %v10748_v43 }
0x2180   : > { %10751 = vmatprep.subr.bf16.mxu1 %v10750_v58 }
0x2183   : > { %10753 = vmatpush3.bf16.msra.mxu1 %v10752_v30 }
0x2184   : > { %10478 = vmatprep.subr.mxu1 %v11131_v0 }
0x21e3   : > { %v8242_v61 = vpop.xlane.xlu1 %8241 }
0x21e4   : > { %v8246_v37 = vmul.f32 0.015625, %v8242_v61  ;;  %v8239_v46 = vpop.xlane.xlu0 %8238 }
0x21e5   : > { %v8245_v47 = vmul.f32 0.015625, %v8239_v46 }
0x21e6   : > { %v8250_v60 = vadd.f32 1e-06, %v8246_v37 }
0x21e7   : > { %v8249_v38 = vadd.f32 1e-06, %v8245_v47 }
0x21e8   : > { %11035 = vrsqrt.f32 %v8250_v60 }
0x21e9   : > { %11037 = vrsqrt.f32 %v8249_v38 }
0x21f2   : > { %v11036_v16 = vpop.eup %11035 }
0x21f3   : > { %v11038_v45 = vpop.eup %11037  ;;  %v8258_v63 = vmul.f32 %v11036_v16, %v12842_v42  ;;  %v9484_v42 = vld [vmem:[%s13178_s15 + $0x2] sm:$0x3] }
0x21f4   : > { %v8257_v11 = vmul.f32 %v11038_v45, %v12845_v9  ;;  %v8302_v9 = vrot.slane %v9484_v42, %v11684_v18  ;;  %v12986_v49 = vrot.slane %v9484_v42, %v11689_v20 }
0x21f5   : > { %v8268_v53 = vmul.f32 %v12856_v59, %v8258_v63 }
0x21f6   : > { %v8267_v1 = vmul.f32 %v12856_v59, %v8257_v11 }
0x21f7   : > { %v8278_v2 = vadd.f32 %v12863_v35, %v8268_v53 }
0x21f8   : > { %v8277_v13 = vadd.f32 %v12863_v35, %v8267_v1 }
0x21fa   : > { %9487 = vmatmul.mubr.msk.f32.gmra.mrb[96].mxu0 %vm1228_vm6, %v8277_v13 }
0x21fb   : > { %8403 = vmatprep.mubr.f32.mxu0 %v11131_v0 }
0x21fe   : > { %9488 = vmatmul.mubr.msk.f32.gmra.mrb[98].mxu0 %vm1228_vm6, %v8278_v2 }
0x21ff   : > { %10456 = vmatprep.mubr.msk.f32.mxu0 %vm11132_vm0, %v11131_v0 }
0x223c   : > { %v8387_v59 = vpop.f32.mrb[92].mxu0 }
0x223d   : > { %v8388_v5 = vadd.f32 %v8387_v59, %v8302_v9  ;;  %v8389_v19 = vpop.f32.mrb[93].mxu0 }
0x223e   : > { %v8390_v6 = vadd.f32 %v8389_v19, %v12986_v49 }
0x223f   : > { %v8410_v35 = vmul.f32 %v8388_v5, %v8388_v5 }
0x2240   : > { %v8411_v7 = vmul.f32 %v8390_v6, %v8390_v6  ;;  %v8393_v10 = vpop.f32.mrb[94].mxu0 }
0x2241   : > { %v8418_v14 = vmul.f32 %v8410_v35, %v8388_v5  ;;  %v8394_v17 = vadd.f32 %v8393_v10, %v8302_v9  ;;  %v8395_v21 = vpop.f32.mrb[95].mxu0 }
0x2242   : > { %v8419_v22 = vmul.f32 %v8411_v7, %v8390_v6  ;;  %v8396_v50 = vadd.f32 %v8395_v21, %v12986_v49 }
0x2243   : > { %v8426_v27 = vmul.f32 0.044715, %v8418_v14  ;;  %v8412_v29 = vmul.f32 %v8394_v17, %v8394_v17 }
0x2244   : > { %v8427_v18 = vmul.f32 0.044715, %v8419_v22  ;;  %v8413_v52 = vmul.f32 %v8396_v50, %v8396_v50 }
0x2245   : > { %v8434_v20 = vadd.f32 %v8426_v27, %v8388_v5  ;;  %v8420_v55 = vmul.f32 %v8412_v29, %v8394_v17 }
0x2246   : > { %v8435_v3 = vadd.f32 %v8427_v18, %v8390_v6  ;;  %v8421_v33 = vmul.f32 %v8413_v52, %v8396_v50 }
0x2247   : > { %v8442_v57 = vmul.f32 0.7978846, %v8434_v20  ;;  %v8428_v40 = vmul.f32 0.044715, %v8420_v55 }
0x2248   : > { %v8443_v28 = vmul.f32 0.7978846, %v8435_v3  ;;  %v8429_v36 = vmul.f32 0.044715, %v8421_v33 }
0x2249   : > { %11039 = vtanh.f32 %v8442_v57  ;;  %v8436_v8 = vadd.f32 %v8428_v40, %v8394_v17 }
0x224a   : > { %v8437_v31 = vadd.f32 %v8429_v36, %v8396_v50  ;;  %11041 = vtanh.f32 %v8443_v28 }
0x224b   : > { %v8444_v34 = vmul.f32 0.7978846, %v8436_v8 }
0x224c   : > { %v8445_v48 = vmul.f32 0.7978846, %v8437_v31 }
0x224d   : > { %11043 = vtanh.f32 %v8444_v34 }
0x224e   : > { %11045 = vtanh.f32 %v8445_v48 }
0x2253   : > { %v11040_v25 = vpop.eup %11039 }
0x2254   : > { %v11042_v15 = vpop.eup %11041  ;;  %v8458_v26 = vadd.f32 1.0, %v11040_v25 }
0x2255   : > { %v8459_v12 = vadd.f32 1.0, %v11042_v15 }
0x2256   : > { %v8466_v24 = vmul.f32 0.5, %v8458_v26 }
0x2257   : > { %v11044_v54 = vpop.eup %11043  ;;  %v8467_v43 = vmul.f32 0.5, %v8459_v12  ;;  %v9522_v12 = vld [vmem:[%s13180_s17 + $0x1] ss:$0 sm:$0xff] }
0x2258   : > { %v11046_v56 = vpop.eup %11045  ;;  %v8460_v23 = vadd.f32 1.0, %v11044_v54  ;;  %v8474_v41 = vmul.f32 %v8466_v24, %v8388_v5 }
0x2259   : > { %v8475_v58 = vmul.f32 %v8467_v43, %v8390_v6  ;;  %v8461_v44 = vadd.f32 1.0, %v11046_v56 }
0x225a   : > { %v8468_v30 = vmul.f32 0.5, %v8460_v23 }
0x225b   : > { %8587 = vmatprep.mubr.f32.mxu1 %v8475_v58  ;;  %v8469_v61 = vmul.f32 0.5, %v8461_v44 }
0x225c   : > { %8588 = vmatmul.mubr.f32.vlgmr.msra.gmra.mrb[90].mxu1 %v8474_v41  ;;  %v8476_v46 = vmul.f32 %v8468_v30, %v8394_v17 }
0x225d   : > { %v8477_v37 = vmul.f32 %v8469_v61, %v8396_v50 }
0x225f   : > { %8592 = vmatprep.mubr.f32.mxu1 %v8477_v37 }
0x2260   : > { %8593 = vmatmul.mubr.f32.gmra.mrb[92].mxu1 %v8476_v46 }
0x22cd   : > { %v8399_v47 = vpop.f32.mrb[96].mxu0 }
0x22ce   : > { %v8400_v60 = vadd.f32 %v8399_v47, %v8302_v9  ;;  %v8401_v38 = vpop.f32.mrb[97].mxu0 }
0x22cf   : > { %v8402_v16 = vadd.f32 %v8401_v38, %v12986_v49 }
0x22d0   : > { %v8414_v45 = vmul.f32 %v8400_v60, %v8400_v60 }
0x22d1   : > { %v8415_v11 = vmul.f32 %v8402_v16, %v8402_v16  ;;  %v8405_v63 = vpop.f32.mrb[98].mxu0 }
0x22d2   : > { %v8422_v1 = vmul.f32 %v8414_v45, %v8400_v60  ;;  %v8406_v13 = vadd.f32 %v8405_v63, %v8302_v9  ;;  %v8407_v53 = vpop.f32.mrb[99].mxu0 }
0x22d3   : > { %v8423_v2 = vmul.f32 %v8415_v11, %v8402_v16  ;;  %v8408_v42 = vadd.f32 %v8407_v53, %v12986_v49 }
0x22d4   : > { %v8430_v59 = vmul.f32 0.044715, %v8422_v1  ;;  %v8416_v5 = vmul.f32 %v8406_v13, %v8406_v13 }
0x22d5   : > { %v8431_v19 = vmul.f32 0.044715, %v8423_v2  ;;  %v8417_v6 = vmul.f32 %v8408_v42, %v8408_v42 }
0x22d6   : > { %v8438_v35 = vadd.f32 %v8430_v59, %v8400_v60  ;;  %v8424_v7 = vmul.f32 %v8416_v5, %v8406_v13 }
0x22d7   : > { %v8439_v10 = vadd.f32 %v8431_v19, %v8402_v16  ;;  %v8425_v14 = vmul.f32 %v8417_v6, %v8408_v42 }
0x22d8   : > { %v8446_v17 = vmul.f32 0.7978846, %v8438_v35  ;;  %v8432_v21 = vmul.f32 0.044715, %v8424_v7 }
0x22d9   : > { %v8447_v22 = vmul.f32 0.7978846, %v8439_v10  ;;  %v8433_v50 = vmul.f32 0.044715, %v8425_v14 }
0x22da   : > { %v8440_v27 = vadd.f32 %v8432_v21, %v8406_v13  ;;  %11047 = vtanh.f32 %v8446_v17 }
0x22db   : > { %v8441_v29 = vadd.f32 %v8433_v50, %v8408_v42  ;;  %11049 = vtanh.f32 %v8447_v22 }
0x22dc   : > { %v8448_v9 = vmul.f32 0.7978846, %v8440_v27 }
0x22dd   : > { %v8449_v18 = vmul.f32 0.7978846, %v8441_v29 }
0x22de   : > { %11051 = vtanh.f32 %v8448_v9 }
0x22df   : > { %11053 = vtanh.f32 %v8449_v18  ;;  %v8694_v18 = vld [vmem:[%s13183_s20] sm:$0xff] }
0x22e4   : > { %v11048_v49 = vpop.eup %11047 }
0x22e5   : > { %v11050_v52 = vpop.eup %11049  ;;  %v8462_v20 = vadd.f32 1.0, %v11048_v49  ;;  %v8695_v49 = vld [vmem:[%s13183_s20 + $0x8] sm:$0xff] }
0x22e6   : > { %v8463_v55 = vadd.f32 1.0, %v11050_v52  ;;  %v10755_v52 = vpack.c.bf16 %v8695_v49, %v8694_v18 }
0x22e7   : > { %v8470_v3 = vmul.f32 0.5, %v8462_v20  ;;  %v8696_v20 = vld [vmem:[%s13183_s20 + $0x10] sm:$0xff] }
0x22e8   : > { %v11052_v33 = vpop.eup %11051  ;;  %v8471_v57 = vmul.f32 0.5, %v8463_v55  ;;  %10756 = vmatpush3.bf16.msra.mxu0 %v10755_v52  ;;  %v8697_v55 = vld [vmem:[%s13183_s20 + $0x18] sm:$0xff] }
0x22e9   : > { %v11054_v40 = vpop.eup %11053  ;;  %v8464_v28 = vadd.f32 1.0, %v11052_v33  ;;  %v8478_v31 = vmul.f32 %v8470_v3, %v8400_v60  ;;  %10757 = vmatprep.subr.bf16.mxu0 %v11134_v4  ;;  %v10758_v3 = vpack.c.bf16 %v8697_v55, %v8696_v20  ;;  %v8698_v33 = vld [vmem:[%s13183_s20 + $0x20] sm:$0xff] }
0x22ea   : > { %v8479_v36 = vmul.f32 %v8471_v57, %v8402_v16  ;;  %v8465_v8 = vadd.f32 1.0, %v11054_v40  ;;  %v8699_v57 = vld [vmem:[%s13183_s20 + $0x28] sm:$0xff] }
0x22eb   : > { %v8472_v34 = vmul.f32 0.5, %v8464_v28  ;;  %v10761_v40 = vpack.c.bf16 %v8699_v57, %v8698_v33  ;;  %v8700_v28 = vld [vmem:[%s13183_s20 + $0x30] sm:$0xff]  ;;  %v9525_v57 = vld [vmem:[%s13184_s21] ss:$0 sm:$0xff] }
0x22ec   : > { %8597 = vmatprep.mubr.f32.mxu1 %v8479_v36  ;;  %v8473_v48 = vmul.f32 0.5, %v8465_v8  ;;  %10759 = vmatpush3.bf16.msra.mxu0 %v10758_v3  ;;  %v8701_v36 = vld [vmem:[%s13183_s20 + $0x38] sm:$0xff] }
0x22ed   : > { %8598 = vmatmul.mubr.f32.gmra.mrb[94].mxu1 %v8478_v31  ;;  %v8480_v15 = vmul.f32 %v8472_v34, %v8406_v13  ;;  %10760 = vmatprep.subr.bf16.mxu0 %v11134_v4  ;;  %v10764_v8 = vpack.c.bf16 %v8701_v36, %v8700_v28  ;;  %v8878_v31 = vld [vmem:[%s13185_s22] sm:$0xff] }
0x22ee   : > { %v8481_v25 = vmul.f32 %v8473_v48, %v8408_v42  ;;  %10479 = vmatpush3.msra.mxu1 %v8878_v31  ;;  %v9028_v31 = vld [vmem:[%s13185_s22 + $0x10] sm:$0xff] }
0x22ef   : > { %10483 = vmatprep.subr.mxu1 %v11131_v0 }
0x22f0   : > { %8602 = vmatprep.mubr.f32.mxu1 %v8481_v25  ;;  %10762 = vmatpush3.bf16.msra.mxu0 %v10761_v40 }
0x22f1   : > { %8603 = vmatmul.mubr.f32.gmra.mrb[96].mxu1 %v8480_v15  ;;  %10763 = vmatprep.subr.bf16.mxu0 %v11134_v4 }
0x22f2   : > { %10480 = vmatprep.mubr.msk.f32.mxu1 %vm11132_vm0, %v11131_v0 }
0x22f4   : > { %10765 = vmatpush3.bf16.msra.mxu0 %v10764_v8 }
0x22f5   : > { %10766 = vmatprep.subr.bf16.mxu0 %v11134_v4 }
0x232f   : > { %v9857_v26 = vpop.f32.mrb[90].mxu1 }
0x2330   : > { %v9858_v24 = vpop.f32.mrb[91].mxu1 }
0x2331   : > { %v9859_v54 = vadd.f32 %v9858_v24, %v9857_v26 }
0x2333   : > { %v8590_v43 = vadd.f32 %v9859_v54, %v9522_v12  ;;  %v9860_v56 = vpop.f32.mrb[92].mxu1 }
0x2334   : > { %v9861_v23 = vpop.f32.mrb[93].mxu1 }
0x2335   : > { %v9862_v58 = vadd.f32 %v9861_v23, %v9860_v56  ;;  %v8608_v44 = vadd.f32 %v8590_v43, %v12762_v32 }
0x2337   : > { %v8595_v41 = vadd.f32 %v9862_v58, %v9522_v12  ;;  %v8615_v30 = vsel %vm8614_vm10, %v8608_v44, 0.0 }
0x2338   : > { %8616 = vadd.xlane.f32.xlu0 %v8615_v30 }
0x2339   : > { %v8609_v61 = vadd.f32 %v8595_v41, %v12760_v51 }
0x233b   : > { %v8618_v37 = vsel %vm8614_vm10, %v8609_v61, 0.0 }
0x233c   : > { %8619 = vadd.xlane.f32.xlu1 %v8618_v37  ;;  %v9523_v37 = vld [vmem:[%s13181_s18] ss:$0 sm:$0xff] }
0x23c0   : > { %v9863_v46 = vpop.f32.mrb[94].mxu1 }
0x23c1   : > { %v9864_v47 = vpop.f32.mrb[95].mxu1 }
0x23c2   : > { %v9865_v60 = vadd.f32 %v9864_v47, %v9863_v46 }
0x23c4   : > { %v8600_v38 = vadd.f32 %v9865_v60, %v9522_v12  ;;  %v9866_v16 = vpop.f32.mrb[96].mxu1 }
0x23c5   : > { %v9867_v45 = vpop.f32.mrb[97].mxu1  ;;  %v8617_v11 = vpop.xlane.xlu0 %8616 }
0x23c6   : > { %v9868_v63 = vadd.f32 %v9867_v45, %v9866_v16  ;;  %v8627_v1 = vmul.f32 0.015625, %v8617_v11  ;;  %v8610_v32 = vadd.f32 %v8600_v38, %v12780_v39  ;;  %v9524_v16 = vld [vmem:[%s13182_s19] ss:$0 sm:$0xff] }
0x23c8   : > { %v8605_v13 = vadd.f32 %v9868_v63, %v9522_v12  ;;  %v13002_v53 = vsub.f32 %v8608_v44, %v8627_v1  ;;  %v8621_v2 = vsel %vm8614_vm10, %v8610_v32, 0.0 }
0x23c9   : > { %v8620_v51 = vpop.xlane.xlu1 %8619  ;;  %8622 = vadd.xlane.f32.xlu0 %v8621_v2 }
0x23ca   : > { %v8628_v42 = vmul.f32 0.015625, %v8620_v51  ;;  %v8611_v59 = vadd.f32 %v8605_v13, %v12778_v62  ;;  %v8635_v5 = vmul.f32 %v13002_v53, %v13002_v53 }
0x23cc   : > { %v8632_v19 = vsub.f32 %v8609_v61, %v8628_v42  ;;  %v8624_v6 = vsel %vm8614_vm10, %v8611_v59, 0.0  ;;  %v8639_v35 = vsel %vm8614_vm10, %v8635_v5, 0.0  ;;  %v8789_v42 = vld [vmem:[%s13183_s20 + $0x40] sm:$0xff] }
0x23cd   : > { %8625 = vadd.xlane.f32.xlu1 %v8624_v6  ;;  %8640 = vadd.xlane.f32.xlu0 %v8639_v35 }
0x23ce   : > { %v8636_v39 = vmul.f32 %v8632_v19, %v8632_v19 }
0x23d0   : > { %v8642_v7 = vsel %vm8614_vm10, %v8636_v39, 0.0 }
0x23d1   : > { %8643 = vadd.xlane.f32.xlu1 %v8642_v7 }
0x2456   : > { %v8623_v10 = vpop.xlane.xlu0 %8622 }
0x2457   : > { %v8629_v14 = vmul.f32 0.015625, %v8623_v10  ;;  %v8791_v10 = vld [vmem:[%s13183_s20 + $0x50] sm:$0xff] }
0x2459   : > { %v8633_v17 = vsub.f32 %v8610_v32, %v8629_v14  ;;  %v8792_v14 = vld [vmem:[%s13183_s20 + $0x58] sm:$0xff] }
0x245a   : > { %v8626_v21 = vpop.xlane.xlu1 %8625  ;;  %v8641_v48 = vpop.xlane.xlu0 %8640 }
0x245b   : > { %v8630_v22 = vmul.f32 0.015625, %v8626_v21  ;;  %v8637_v62 = vmul.f32 %v8633_v17, %v8633_v17  ;;  %v8651_v15 = vmul.f32 0.015625, %v8641_v48  ;;  %v10770_v21 = vpack.c.bf16 %v8792_v14, %v8791_v10  ;;  %v9103_v48 = vld [vmem:[%s13185_s22 + $0x18] sm:$0xff] }
0x245d   : > { %v8634_v50 = vsub.f32 %v8611_v59, %v8630_v22  ;;  %v8645_v27 = vsel %vm8614_vm10, %v8637_v62, 0.0  ;;  %v8655_v12 = vadd.f32 1e-06, %v8651_v15  ;;  %v8790_v59 = vld [vmem:[%s13183_s20 + $0x48] sm:$0xff]  ;;  %v8793_v22 = vld [vmem:[%s13183_s20 + $0x60] sm:$0xff] }
0x245e   : > { %8646 = vadd.xlane.f32.xlu0 %v8645_v27  ;;  %v8644_v34 = vpop.xlane.xlu1 %8643  ;;  %v10767_v39 = vpack.c.bf16 %v8790_v59, %v8789_v42  ;;  %v8794_v62 = vld [vmem:[%s13183_s20 + $0x68] sm:$0xff]  ;;  %v8795_v27 = vld [vmem:[%s13183_s20 + $0x70] sm:$0xff]  ;;  %v8877_v15 = vld [vmem:[%s13257_s9] sm:$0x1]  ;;  %s11071_s9 = sshll.u32 %s11142_s7, 4  ;;  %s11072_s9 = int_to_ptr.vmem [resolvable:$false] %s11071_s9 }
0x245f   : > { %v8638_v29 = vmul.f32 %v8634_v50, %v8634_v50  ;;  %v8652_v25 = vmul.f32 0.015625, %v8644_v34  ;;  %s11073_s10 = scalar_lea.vmem %s11072_s9, 32  ;;  %p11074_p0 = scmp.lt.s32.totalorder %s13123_s3, %s11072_s9 }
0x2460   : > { %p11075_p1 = scmp.lt.s32.totalorder %s11073_s10, %s11067_s6 }
0x2461   : > { %v8648_v9 = vsel %vm8614_vm10, %v8638_v29, 0.0  ;;  %v8656_v26 = vadd.f32 1e-06, %v8652_v25  ;;  %v8796_v29 = vld [vmem:[%s13183_s20 + $0x78] sm:$0xff] }
0x2462   : > { %8649 = vadd.xlane.f32.xlu1 %v8648_v9  ;;  %v10776_v9 = vpack.c.bf16 %v8796_v29, %v8795_v27  ;;  %p11076_p2 = por %p11075_p1, %p11074_p0 }
0x2463   : > { %11055 = vrsqrt.f32 %v8656_v26 }
0x2464   : > { %11057 = vrsqrt.f32 %v8655_v12  ;;  %p11077_p3 = pnand %p11076_p2, %p11070_p13 }
0x246d   : > { %v11056_v58 = vpop.eup %11055 }
0x246e   : > { %v11058_v41 = vpop.eup %11057  ;;  %v8664_v30 = vmul.f32 %v11056_v58, %v8632_v19 }
0x246f   : > { %v8663_v61 = vmul.f32 %v11058_v41, %v13002_v53 }
0x2470   : > { %v8674_v46 = vmul.f32 %v9523_v37, %v8664_v30 }
0x2471   : > { %v8673_v60 = vmul.f32 %v9523_v37, %v8663_v61 }
0x2472   : > { %v8684_v45 = vadd.f32 %v9524_v16, %v8674_v46 }
0x2473   : > { %v8683_v1 = vadd.f32 %v9524_v16, %v8673_v60 }
0x2474   : > { %v8707_v53 = vrot.slane %v8684_v45, 4  ;;  %v8798_v18 = vrot.slane %v8684_v45, 5 }
0x2475   : > { %v8706_v19 = vrot.slane %v8683_v1, 5  ;;  %v8797_v52 = vrot.slane %v8683_v1, 6 }
0x2477   : > { %v8709_v6 = vsel %vm8708_vm11, %v8707_v53, %v8706_v19  ;;  %v8799_v55 = vsel %vm8708_vm11, %v8798_v18, %v8797_v52 }
0x24eb   : > { %v8647_v24 = vpop.xlane.xlu0 %8646 }
0x24ec   : > { %v8653_v54 = vmul.f32 0.015625, %v8647_v24 }
0x24ee   : > { %v8657_v43 = vadd.f32 1e-06, %v8653_v54 }
0x24ef   : > { %v8650_v56 = vpop.xlane.xlu1 %8649 }
0x24f0   : > { %11059 = vrsqrt.f32 %v8657_v43  ;;  %v8654_v23 = vmul.f32 0.015625, %v8650_v56 }
0x24f2   : > { %v8658_v44 = vadd.f32 1e-06, %v8654_v23 }
0x24f4   : > { %11061 = vrsqrt.f32 %v8658_v44 }
0x24fa   : > { %v11060_v47 = vpop.eup %11059 }
0x24fb   : > { %v8665_v38 = vmul.f32 %v11060_v47, %v8633_v17 }
0x24fd   : > { %v8675_v11 = vmul.f32 %v9523_v37, %v8665_v38 }
0x24fe   : > { %v11062_v63 = vpop.eup %11061 }
0x24ff   : > { %v8685_v32 = vadd.f32 %v9524_v16, %v8675_v11  ;;  %v8666_v13 = vmul.f32 %v11062_v63, %v8634_v50  ;;  %v10773_v50 = vpack.c.bf16 %v8794_v62, %v8793_v22 }
0x2501   : > { %v8676_v2 = vmul.f32 %v9523_v37, %v8666_v13  ;;  %v8710_v51 = vrot.slane %v8685_v32, 3  ;;  %v8800_v49 = vrot.slane %v8685_v32, 4 }
0x2503   : > { %v8686_v5 = vadd.f32 %v9524_v16, %v8676_v2  ;;  %v8712_v7 = vsel %vm8711_vm12, %v8710_v51, %v8709_v6  ;;  %v8801_v3 = vsel %vm8711_vm12, %v8800_v49, %v8799_v55 }
0x2505   : > { %v8713_v35 = vrot.slane %v8686_v5, 2  ;;  %v8802_v20 = vrot.slane %v8686_v5, 3 }
0x2507   : > { %v8715_v17 = vsel %vm8714_vm13, %v8713_v35, %v8712_v7  ;;  %v8803_v33 = vsel %vm8714_vm13, %v8802_v20, %v8801_v3 }
0x2508   : > { %10457 = vmatmul.mubr.msk.f32.vlgmr.msra.gmra.mrb[100].mxu0 %vm1228_vm6, %v8715_v17 }
0x2509   : > { %10768 = vmatpush3.bf16.msra.mxu0 %v10767_v39  ;;  %10475 = vmatprep.mubr.msk.f32.mxu0 %vm11132_vm0, %v11131_v0 }
0x250a   : > { %10769 = vmatprep.subr.bf16.mxu0 %v11134_v4 }
0x250d   : > { %10771 = vmatpush3.bf16.msra.mxu0 %v10770_v21 }
0x250e   : > { %10772 = vmatprep.subr.bf16.mxu0 %v11134_v4 }
0x2511   : > { %10774 = vmatpush3.bf16.msra.mxu0 %v10773_v50 }
0x2512   : > { %10775 = vmatprep.subr.bf16.mxu0 %v11134_v4  ;;  %v8953_v4 = vld [vmem:[%s13185_s22 + $0x8] sm:$0xff] }
0x2515   : > { %10777 = vmatpush3.bf16.msra.mxu0 %v10776_v9 }
0x2518   : > { %10476 = vmatmul.mubr.msk.f32.vlgmr.msra.gmra.mrb[100].mxu0 %vm1228_vm6, %v8803_v33 }
0x25eb   : > { %v8872_v40 = vpop.f32.mrb[100].mxu0 }
0x25ec   : > { %v10782_v28 = vadd.f32 %v9525_v57, %v8872_v40  ;;  %v10477_v36 = vpop.f32.mrb[101].mxu0 }
0x25ee   : > { %10481 = vmatmul.mubr.msk.f32.vlgmr.msra.gmra.mrb[98].mxu1 %vm1756_vm9, %v10782_v28  ;;  %v8954_v8 = vrot.slane %v10782_v28, 1  ;;  %v9029_v34 = vrot.slane %v10782_v28, 2  ;;  %v9104_v25 = vrot.slane %v10782_v28, 3 }
0x25ef   : > { %10484 = vmatpush3.msra.mxu1 %v8953_v4  ;;  %10485 = vmatprep.mubr.msk.f32.mxu1 %vm11132_vm0, %v11131_v0 }
0x25f0   : > { %10488 = vmatprep.subr.mxu1 %v11131_v0 }
0x25f6   : > { %10486 = vmatmul.mubr.msk.f32.vlgmr.msra.gmra.mrb[98].mxu1 %vm1756_vm9, %v8954_v8 }
0x25f7   : > { %10489 = vmatpush3.msra.mxu1 %v9028_v31  ;;  %10490 = vmatprep.mubr.msk.f32.mxu1 %vm11132_vm0, %v11131_v0 }
0x25f8   : > { %10493 = vmatprep.subr.mxu1 %v11131_v0 }
0x25fe   : > { %10491 = vmatmul.mubr.msk.f32.vlgmr.msra.gmra.mrb[98].mxu1 %vm1756_vm9, %v9029_v34 }
0x25ff   : > { %10494 = vmatpush3.msra.mxu1 %v9103_v48  ;;  %10495 = vmatprep.mubr.msk.f32.mxu1 %vm11132_vm0, %v11131_v0 }
0x2606   : > { %10496 = vmatmul.mubr.msk.f32.vlgmr.msra.gmra.mrb[98].mxu1 %vm1756_vm9, %v9104_v25 }
0x26d9   : > { %v9173_v26 = vpop.f32.mrb[98].mxu1 }
0x26da   : > { %v10783_v12 = vadd.f32 %v9173_v26, %v8877_v15  ;;  %v10497_v24 = vpop.f32.mrb[99].mxu1 }
0x26dc   : > { %9179 = vst.msk [vmem:[%s761_s27] sm:$0x1] %vm9178_vm14, %v10783_v12 }
0x26dd   : > { %11080 = shalt.err (!%p11077_p3)
}
0x26de   : > { %s11081_s29 = scalar_lea.hbm %s13121_s1, 16  ;;  %s11085_s26 = scalar_lea.hbm %s13259_s0, 32 }
0x26df   : > { %p11082_p4 = scmp.ne.s32.totalorder %s13121_s1, %s11081_s29  ;;  %p11086_p9 = scmp.lt.u32.totalorder %s13121_s1, %s13259_s0 }
0x26e0   : > { %p11087_p10 = scmp.lt.u32.totalorder %s11085_s26, %s11081_s29  ;;  %p11089_p12 = scmp.lt.u32.totalorder %s11081_s29, %s13121_s1 }
0x26e1   : > { %p11083_p7 = pnand %p11082_p4, %p11311_p5 }
0x26e2   : > { %p11088_p11 = por %p11087_p10, %p11086_p9 }
0x26e3   : > { %p11084_p8 = pneg %p11083_p7 }
0x26e4   : > { %p11090_p13 = por %p11089_p12, %p11088_p11 }
0x26e6   : > { %p11091_p0 = pnand %p11090_p13, %p11084_p8 }
0x26e8   : > { %11094 = shalt.err (!%p11091_p0)
}
0x26e9   : > { %10812 = dma.vmem_to_hbm [thread:$0]  (%p11311_p5), %s13123_s3, 16, %s13121_s1, %s9185_s8  }
0x26ea PF: > { %s13260_s10 = sld [smem:[#allocation8_spill]]  ;;  %s13261_s6 = sld [smem:[#allocation6_spill]] }
0x26f0   : > { %p10818_p1 = scmp.ge.s32.totalorder %s13260_s10, 2  ;;  %s9219_s9 = sand.u32 1, %s13261_s6  }
0x26f1   : > { %s9220_s5 = scalar_lea.sflag [#allocation4], %s9219_s9 }
0x26f2   : > { %p10815_p2 = pnand %p10818_p1, %p11315_p6 }
0x26f4   : > { %11112 = dma.done.wait (!%p10815_p2), %s9220_s5, 16  }
0x26f5   : > { %11114 = vsyncadd (!%p10815_p2), %s9220_s5, 4294967280  ;;  %s13263_s30 = sld [smem:[#allocation9_spill]]  ;;  %s13264_s27 = sld [smem:[#allocation7_spill]] }
0x26f6   : > { %s13265_s6 = sld [smem:[#allocation10_spill]]  ;;  %s13266_s29 = smov %s11121_s2 }
0x26fb   : > { %p36_p3 = scmp.ge.s32.totalorder %s13263_s30, 4   ;;  %s13267_s2 = smov %s13264_s27 }
0x26fd   :  { %38 = sbr.rel (!%p36_p3) target bundleno = 17 (0x11), region = 175 }
0x2704   :  { %9224 = vsyncpa [#allocation4], 1 }
0x2705   :  { %9226 = vsyncpa [#allocation4 + $0x1], 1 }

</bundles_post_ra>
